<compile_context>
chip_gen: v6e
topology: v6e:2x2x1
jax: 0.10.0
libtpu: 0.0.40
codegen_flags: <defaults>
</compile_context>

<pallas_src>
import functools

import jax
import jax.numpy as jnp
from jax import lax
from jax.experimental import pallas as pl

MIN_STD_DEV = 0.1


def _softplus(x):
    # Numerically stable softplus; same formula in kernel and reference.
    return jnp.maximum(x, 0.0) + jnp.log1p(jnp.exp(-jnp.abs(x)))


def _round_up(x, m):
    return ((x + m - 1) // m) * m


def _weight_layout(S, Hb, Hd):
    """Row offsets of each fused weight inside the single packed weight slab."""
    segs = [("w_sa_s", S, Hb),
            ("w_gru", 2 * Hb, 4 * Hb),
            ("w_emb_b", Hb, 2 * Hd),
            ("w_head", 2 * Hd, 4 * S)]
    layout, rows = {}, 0
    for name, r, c in segs:
        layout[name] = (rows, r, c)
        rows += _round_up(r, 8)
    lanes = _round_up(max(c for _, _, c in segs), 128)
    return layout, rows, lanes


def make_transition_kernel(T1, Bp, Hb, S, Hd, w_layout, out_lanes, min_std_dev):
    """Whole-sequence RSSM transition: one invocation, in-kernel time loop."""
    dot = functools.partial(jnp.dot, preferred_element_type=jnp.float32)

    # Input-slab lane offsets: [acts_proj | embadd | nonterm | noise_q].
    o_act = 0
    o_emb = Hb
    o_nt = Hb + 2 * Hd
    o_nq = Hb + 2 * Hd + S
    out_pad = out_lanes - (Hb + 5 * S)

    r_sa = w_layout["w_sa_s"][0]
    r_gru = w_layout["w_gru"][0]
    r_emb = w_layout["w_emb_b"][0]
    r_hd = w_layout["w_head"][0]

    def kernel(x_ref, carry0_ref, w_ref, b_ref, out_ref):
        # ---- prologue: weights / biases loaded & broadcast once --------
        w_sa_s = w_ref[r_sa:r_sa + S, 0:Hb]                    # (S, Hb)
        w_gru = w_ref[r_gru:r_gru + 2 * Hb, 0:4 * Hb]          # (2Hb, 4Hb)
        w_emb_b = w_ref[r_emb:r_emb + Hb, 0:2 * Hd]            # (Hb, 2Hd)
        w_head = w_ref[r_hd:r_hd + 2 * Hd, 0:4 * S]            # (2Hd, 4S)
        b_gru = jnp.broadcast_to(b_ref[:, 0:4 * Hb], (Bp, 4 * Hb))
        b_head = jnp.broadcast_to(b_ref[:, 4 * Hb:4 * Hb + 4 * S], (Bp, 4 * S))
        pad = (jnp.zeros((Bp, out_pad), jnp.float32) if out_pad > 0 else None)

        carry0 = carry0_ref[...]                               # (Bp, S + Hb)
        state0 = carry0[:, 0:S]
        belief0 = carry0[:, S:S + Hb]

        def step(t, carry):
            belief, post_state = carry
            row = x_ref[t]                                     # (Bp, 128)
            acts_t = row[:, o_act:o_act + Hb]                  # W_sa_a@a + b_sa
            embadd_t = row[:, o_emb:o_emb + 2 * Hd]            # [b_bp | W_o@o+b_bq]
            nonterm_t = row[:, o_nt:o_nt + S]
            noise_q_t = row[:, o_nq:o_nq + S]

            # hidden = relu(fc_embed_state_action([state*nonterm, action]))
            hidden = jnp.maximum(
                dot(post_state * nonterm_t, w_sa_s) + acts_t, 0.0)  # (Bp, Hb)

            # GRUCell: single fused matmul -> [r_pre | z_pre | gi_n | gh_n].
            g = dot(jnp.concatenate([hidden, belief], axis=1), w_gru) + b_gru
            r = jax.nn.sigmoid(g[:, 0:Hb])
            z = jax.nn.sigmoid(g[:, Hb:2 * Hb])
            n = jnp.tanh(g[:, 2 * Hb:3 * Hb] + r * g[:, 3 * Hb:4 * Hb])
            new_belief = (1.0 - z) * n + z * belief             # (Bp, Hb)

            # Prior + posterior belief embeddings fused: [hid_p | hid_q].
            hq = jnp.maximum(dot(new_belief, w_emb_b) + embadd_t, 0.0)

            # Prior + posterior state heads fused (block-diagonal weight):
            #   [p_mean | p_std_raw | q_mean | q_std_raw]
            heads = dot(hq, w_head) + b_head                    # (Bp, 4S)
            p_mean = heads[:, 0:S]
            p_std = _softplus(heads[:, S:2 * S]) + min_std_dev
            q_mean = heads[:, 2 * S:3 * S]
            q_std = _softplus(heads[:, 3 * S:4 * S]) + min_std_dev
            q_state = q_mean + q_std * noise_q_t

            pieces = [new_belief, p_mean, p_std, q_state, q_mean, q_std]
            if pad is not None:
                pieces.append(pad)
            out_ref[t] = jnp.concatenate(pieces, axis=1)        # one full vst
            return (new_belief, q_state)

        # Full unroll only for short sequences; rolled loop otherwise.
        lax.fori_loop(0, T1, step, (belief0, state0), unroll=(T1 <= 32))

    return kernel


def _fuse_params(params, Hb, S, Hd):
    """Fused weights (built once): GRU gate slab, emb slab, block-diag heads."""
    f32 = jnp.float32
    zhh = jnp.zeros((Hb, Hb), f32)
    w_ih, w_hh = params["w_ih"], params["w_hh"]                 # (Hb, 3Hb) [r|z|n]
    w_gru = jnp.concatenate(
        [jnp.concatenate([w_ih[:, :2 * Hb], w_ih[:, 2 * Hb:], zhh], axis=1),
         jnp.concatenate([w_hh[:, :2 * Hb], zhh, w_hh[:, 2 * Hb:]], axis=1)],
        axis=0)                                                 # (2Hb, 4Hb)
    b_gru = jnp.concatenate(
        [params["b_ih"][:, :2 * Hb] + params["b_hh"][:, :2 * Hb],
         params["b_ih"][:, 2 * Hb:], params["b_hh"][:, 2 * Hb:]], axis=1)
    w_emb_b = jnp.concatenate([params["w_bp"], params["w_bq_b"]], axis=1)
    w_head = jnp.concatenate(
        [jnp.concatenate([params["w_sp"], jnp.zeros((Hd, 2 * S), f32)], axis=1),
         jnp.concatenate([jnp.zeros((Hd, 2 * S), f32), params["w_sq"]], axis=1)],
        axis=0)                                                 # (2Hd, 4S)
    b_head = jnp.concatenate([params["b_sp"], params["b_sq"]], axis=1)
    weights = dict(w_sa_s=params["w_sa_s"], w_gru=w_gru,
                   w_emb_b=w_emb_b, w_head=w_head)
    return weights, b_gru, b_head


def transition_forward(params, prev_state, prev_belief, actions, observations,
                       nonterminals, noise_prior, noise_post,
                       min_std_dev=MIN_STD_DEV):
    T1, B, _ = actions.shape
    S = prev_state.shape[1]
    Hb = prev_belief.shape[1]
    Hd = params["w_bp"].shape[1]
    Bp = _round_up(B, 8)            # fill fp32 sublanes; extra rows stay finite

    # ---- carry-independent projections hoisted out of the recurrence ------
    # (one (T1*B, .) matmul each, executed by XLA; biases folded in)
    acts_proj = actions @ params["w_sa_a"] + params["b_sa"]      # (T1, B, Hb)
    obs_proj = observations @ params["w_bq_o"] + params["b_bq"]  # (T1, B, Hd)
    embadd = jnp.concatenate(
        [jnp.broadcast_to(params["b_bp"], (T1, B, Hd)), obs_proj], axis=-1)
    nonterm_b = jnp.broadcast_to(nonterminals, (T1, B, S))

    # ---- ONE lane-dense per-step input slab -------------------------------
    slab = jnp.concatenate([acts_proj, embadd, nonterm_b, noise_post], axis=-1)
    Lin = _round_up(slab.shape[-1], 128)
    slab = jnp.pad(slab, ((0, 0), (0, Bp - B), (0, Lin - slab.shape[-1])))

    carry0 = jnp.concatenate([prev_state, prev_belief], axis=1)  # (B, S+Hb)
    carry0 = jnp.pad(carry0, ((0, Bp - B), (0, 0)))

    # ---- ONE weight slab + ONE bias row ------------------------------------
    weights, b_gru, b_head = _fuse_params(params, Hb, S, Hd)
    w_layout, w_rows, w_lanes = _weight_layout(S, Hb, Hd)
    w_slab = jnp.zeros((w_rows, w_lanes), jnp.float32)
    for name, (r0, rows, cols) in w_layout.items():
        w_slab = w_slab.at[r0:r0 + rows, :cols].set(weights[name])
    b_all = jnp.concatenate([b_gru, b_head], axis=1)             # (1, 4Hb+4S)

    Lout = _round_up(Hb + 5 * S, 128)

    # VMEM-residency guard: whole-sequence design; v7x has only 64 MiB
    # physical VMEM (32 MiB default scoped; 16 MiB on v5e).
    resident_bytes = 4 * (slab.size + carry0.size + w_slab.size + b_all.size
                          + T1 * Bp * Lout)
    if resident_bytes > 10 * 2 ** 20:
        # TODO(synk): for long sequences switch to a T-chunked "arbitrary"
        # grid axis with the (belief, state) carry kept in VMEM scratch.
        raise NotImplementedError(
            f"whole-sequence VMEM footprint {resident_bytes} B too large; "
            "chunk the time axis")

    kernel = make_transition_kernel(T1, Bp, Hb, S, Hd, w_layout, Lout,
                                    min_std_dev)

    # No grid / no BlockSpecs: 4 whole-array VMEM-resident operands, 1 output.
    out = pl.pallas_call(
        kernel,
        out_shape=jax.ShapeDtypeStruct((T1, Bp, Lout), jnp.float32),
    )(slab, carry0, w_slab, b_all)

    o = out[:, :B]                                               # drop batch pad
    belief = o[..., 0:Hb]
    p_mean = o[..., Hb:Hb + S]
    p_std = o[..., Hb + S:Hb + 2 * S]
    q_state = o[..., Hb + 2 * S:Hb + 3 * S]
    q_mean = o[..., Hb + 3 * S:Hb + 4 * S]
    q_std = o[..., Hb + 4 * S:Hb + 5 * S]
    # The prior sample never feeds the recurrence -> computed here, off the
    # kernel's serial per-step chain (one fused elementwise XLA op).
    p_state = p_mean + p_std * noise_prior
    return [belief, p_state, p_mean, p_std, q_state, q_mean, q_std]


def reference_forward(params, prev_state, prev_belief, actions, observations,
                      nonterminals, noise_prior, noise_post,
                      min_std_dev=MIN_STD_DEV):
    """Pure-JAX port of the PyTorch forward (posterior branch), unfused."""
    T1 = actions.shape[0]
    Hb = prev_belief.shape[1]
    S = prev_state.shape[1]
    belief, post_state = prev_belief, prev_state
    outs = [[] for _ in range(7)]
    for t in range(T1):
        s = post_state * nonterminals[t]
        hidden = jnp.maximum(
            s @ params["w_sa_s"] + actions[t] @ params["w_sa_a"]
            + params["b_sa"], 0.0)
        gi = hidden @ params["w_ih"] + params["b_ih"]
        gh = belief @ params["w_hh"] + params["b_hh"]
        r = jax.nn.sigmoid(gi[:, :Hb] + gh[:, :Hb])
        z = jax.nn.sigmoid(gi[:, Hb:2 * Hb] + gh[:, Hb:2 * Hb])
        n = jnp.tanh(gi[:, 2 * Hb:] + r * gh[:, 2 * Hb:])
        belief = (1.0 - z) * n + z * belief
        hid_p = jnp.maximum(belief @ params["w_bp"] + params["b_bp"], 0.0)
        prior = hid_p @ params["w_sp"] + params["b_sp"]
        p_mean = prior[:, :S]
        p_std = _softplus(prior[:, S:]) + min_std_dev
        p_state = p_mean + p_std * noise_prior[t]
        hid_q = jnp.maximum(
            belief @ params["w_bq_b"] + observations[t] @ params["w_bq_o"]
            + params["b_bq"], 0.0)
        post = hid_q @ params["w_sq"] + params["b_sq"]
        q_mean = post[:, :S]
        q_std = _softplus(post[:, S:]) + min_std_dev
        q_state = q_mean + q_std * noise_post[t]
        post_state = q_state
        for o, v in zip(outs, (belief, p_state, p_mean, p_std,
                               q_state, q_mean, q_std)):
            o.append(v)
    return [jnp.stack(o) for o in outs]


if __name__ == "__main__":
    # Small sizes implied by the module: belief=32, state=16, action=8,
    # hidden=32, embedding=32, batch=2, T-1=8 steps.
    Hb, S, A, Hd, E = 32, 16, 8, 32, 32
    B, T1 = 2, 8

    key = jax.random.PRNGKey(0)
    ks = list(jax.random.split(key, 16))

    def linear_init(k, fan_in, fan_out):
        kw, kb = jax.random.split(k)
        bound = 1.0 / (fan_in ** 0.5)
        w = jax.random.uniform(kw, (fan_in, fan_out), jnp.float32, -bound, bound)
        b = jax.random.uniform(kb, (1, fan_out), jnp.float32, -bound, bound)
        return w, b

    w_sa_full, b_sa = linear_init(ks[0], S + A, Hb)       # fc_embed_state_action
    w_ih, b_ih = linear_init(ks[1], Hb, 3 * Hb)           # GRUCell weight_ih
    w_hh, b_hh = linear_init(ks[2], Hb, 3 * Hb)           # GRUCell weight_hh
    w_bp, b_bp = linear_init(ks[3], Hb, Hd)               # fc_embed_belief_prior
    w_sp, b_sp = linear_init(ks[4], Hd, 2 * S)            # fc_state_prior
    w_bq_full, b_bq = linear_init(ks[5], Hb + E, Hd)      # fc_embed_belief_posterior
    w_sq, b_sq = linear_init(ks[6], Hd, 2 * S)            # fc_state_posterior

    params = dict(
        w_sa_s=w_sa_full[:S], w_sa_a=w_sa_full[S:], b_sa=b_sa,
        w_ih=w_ih, b_ih=b_ih, w_hh=w_hh, b_hh=b_hh,
        w_bp=w_bp, b_bp=b_bp, w_sp=w_sp, b_sp=b_sp,
        w_bq_b=w_bq_full[:Hb], w_bq_o=w_bq_full[Hb:], b_bq=b_bq,
        w_sq=w_sq, b_sq=b_sq,
    )

    prev_state = jax.random.normal(ks[7], (B, S), jnp.float32)
    prev_belief = jax.random.normal(ks[8], (B, Hb), jnp.float32)
    actions = jax.random.normal(ks[9], (T1, B, A), jnp.float32)
    observations = jax.random.normal(ks[10], (T1, B, E), jnp.float32)
    nonterminals = (jax.random.uniform(ks[11], (T1, B, 1)) > 0.1
                    ).astype(jnp.float32)
    # Deterministic stand-in for torch.randn_like inside the forward.
    noise_prior = jax.random.normal(ks[12], (T1, B, S), jnp.float32)
    noise_post = jax.random.normal(ks[13], (T1, B, S), jnp.float32)

    outs = transition_forward(params, prev_state, prev_belief, actions,
                              observations, nonterminals, noise_prior,
                              noise_post)
    outs = jax.block_until_ready(outs)

    refs = reference_forward(params, prev_state, prev_belief, actions,
                             observations, nonterminals, noise_prior,
                             noise_post)

    names = ["beliefs", "prior_states", "prior_means", "prior_std_devs",
             "posterior_states", "posterior_means", "posterior_std_devs"]
    # 10x tighter than before so layout/fusion regressions are caught; still
    # above any residual matmul-pass / accumulation-order noise.
    for name, got, want in zip(names, outs, refs):
        assert got.shape == want.shape, (name, got.shape, want.shape)
        assert jnp.allclose(got, want, atol=2e-3, rtol=2e-3), (
            name, float(jnp.max(jnp.abs(got - want))))

    print("KERNEL_OK")
</pallas_src>

<mosaic_0001>
module attributes {stable_mosaic.version = 11 : i64} {
  func.func @kernel(%arg0: memref<8x8x128xf32, #tpu.memory_space<vmem>>, %arg1: memref<8x48xf32, #tpu.memory_space<vmem>>, %arg2: memref<176x128xf32, #tpu.memory_space<vmem>>, %arg3: memref<1x192xf32, #tpu.memory_space<vmem>>, %arg4: memref<8x8x128xf32, #tpu.memory_space<vmem>>) attributes {dimension_semantics = [], scalar_prefetch = 0 : i64, scratch_operands = 0 : i64, tpu.core_type = #tpu.core_type<tc>} {
    %c0 = arith.constant 0 : index
    %c0_0 = arith.constant 0 : index
    %0 = vector.load %arg2[%c0, %c0_0] : memref<176x128xf32, #tpu.memory_space<vmem>>, vector<16x32xf32>
    %c16 = arith.constant 16 : index
    %c0_1 = arith.constant 0 : index
    %1 = vector.load %arg2[%c16, %c0_1] : memref<176x128xf32, #tpu.memory_space<vmem>>, vector<64x128xf32>
    %c80 = arith.constant 80 : index
    %c0_2 = arith.constant 0 : index
    %2 = vector.load %arg2[%c80, %c0_2] : memref<176x128xf32, #tpu.memory_space<vmem>>, vector<32x64xf32>
    %c112 = arith.constant 112 : index
    %c0_3 = arith.constant 0 : index
    %3 = vector.load %arg2[%c112, %c0_3] : memref<176x128xf32, #tpu.memory_space<vmem>>, vector<64x64xf32>
    %c0_4 = arith.constant 0 : index
    %c0_5 = arith.constant 0 : index
    %4 = vector.load %arg3[%c0_4, %c0_5] : memref<1x192xf32, #tpu.memory_space<vmem>>, vector<1x128xf32>
    %5 = vector.shape_cast %4 : vector<1x128xf32> to vector<1x128xf32>
    %6 = vector.broadcast %5 : vector<1x128xf32> to vector<8x128xf32>
    %c0_6 = arith.constant 0 : index
    %c128 = arith.constant 128 : index
    %7 = vector.load %arg3[%c0_6, %c128] : memref<1x192xf32, #tpu.memory_space<vmem>>, vector<1x64xf32>
    %8 = vector.shape_cast %7 : vector<1x64xf32> to vector<1x64xf32>
    %9 = vector.broadcast %8 : vector<1x64xf32> to vector<8x64xf32>
    %cst = arith.constant 0.000000e+00 : f32
    %10 = vector.broadcast %cst : f32 to vector<8x16xf32>
    %c0_7 = arith.constant 0 : index
    %c0_8 = arith.constant 0 : index
    %11 = vector.load %arg1[%c0_7, %c0_8] : memref<8x48xf32, #tpu.memory_space<vmem>>, vector<8x48xf32>
    %12 = vector.extract_strided_slice %11 {offsets = [0, 0], sizes = [8, 16], strides = [1, 1]} : vector<8x48xf32> to vector<8x16xf32>
    %13 = vector.extract_strided_slice %11 {offsets = [0, 16], sizes = [8, 32], strides = [1, 1]} : vector<8x48xf32> to vector<8x32xf32>
    %c0_i32 = arith.constant 0 : i32
    %14 = arith.index_cast %c0_i32 : i32 to index
    %c0_9 = arith.constant 0 : index
    %c0_10 = arith.constant 0 : index
    %15 = vector.load %arg0[%14, %c0_9, %c0_10] : memref<8x8x128xf32, #tpu.memory_space<vmem>>, vector<1x8x128xf32>
    %16 = vector.shape_cast %15 : vector<1x8x128xf32> to vector<8x128xf32>
    %17 = vector.extract_strided_slice %16 {offsets = [0, 0], sizes = [8, 32], strides = [1, 1]} : vector<8x128xf32> to vector<8x32xf32>
    %18 = vector.extract_strided_slice %16 {offsets = [0, 32], sizes = [8, 64], strides = [1, 1]} : vector<8x128xf32> to vector<8x64xf32>
    %19 = vector.extract_strided_slice %16 {offsets = [0, 96], sizes = [8, 16], strides = [1, 1]} : vector<8x128xf32> to vector<8x16xf32>
    %20 = vector.extract_strided_slice %16 {offsets = [0, 112], sizes = [8, 16], strides = [1, 1]} : vector<8x128xf32> to vector<8x16xf32>
    %21 = arith.mulf %12, %19 : vector<8x16xf32>
    %cst_11 = arith.constant dense<0.000000e+00> : vector<8x32xf32>
    %22 = tpu.matmul %21, %0, %cst_11 {dimension_numbers = #tpu.dot_dimension_numbers<[1], [0], [0], [1], [0, 0, 1, 1], [], []>} : vector<8x16xf32>, vector<16x32xf32>, vector<8x32xf32> -> vector<8x32xf32>
    %23 = arith.addf %22, %17 : vector<8x32xf32>
    %cst_12 = arith.constant 0.000000e+00 : f32
    %24 = vector.broadcast %cst_12 : f32 to vector<8x32xf32>
    %25 = arith.maximumf %23, %24 : vector<8x32xf32>
    %26 = tpu.concatenate %25, %13 in 1 : vector<8x32xf32>, vector<8x32xf32> -> vector<8x64xf32>
    %cst_13 = arith.constant dense<0.000000e+00> : vector<8x128xf32>
    %27 = tpu.matmul %26, %1, %cst_13 {dimension_numbers = #tpu.dot_dimension_numbers<[1], [0], [0], [1], [0, 0, 1, 1], [], []>} : vector<8x64xf32>, vector<64x128xf32>, vector<8x128xf32> -> vector<8x128xf32>
    %28 = arith.addf %27, %6 : vector<8x128xf32>
    %29 = vector.extract_strided_slice %28 {offsets = [0, 0], sizes = [8, 32], strides = [1, 1]} : vector<8x128xf32> to vector<8x32xf32>
    %30 = arith.negf %29 : vector<8x32xf32>
    %31 = math.exp %30 : vector<8x32xf32>
    %cst_14 = arith.constant 1.000000e+00 : f32
    %32 = vector.broadcast %cst_14 : f32 to vector<8x32xf32>
    %33 = arith.addf %32, %31 : vector<8x32xf32>
    %34 = arith.divf %32, %33 : vector<8x32xf32>
    %35 = vector.extract_strided_slice %28 {offsets = [0, 32], sizes = [8, 32], strides = [1, 1]} : vector<8x128xf32> to vector<8x32xf32>
    %36 = arith.negf %35 : vector<8x32xf32>
    %37 = math.exp %36 : vector<8x32xf32>
    %cst_15 = arith.constant 1.000000e+00 : f32
    %38 = vector.broadcast %cst_15 : f32 to vector<8x32xf32>
    %39 = arith.addf %38, %37 : vector<8x32xf32>
    %40 = arith.divf %38, %39 : vector<8x32xf32>
    %41 = vector.extract_strided_slice %28 {offsets = [0, 64], sizes = [8, 32], strides = [1, 1]} : vector<8x128xf32> to vector<8x32xf32>
    %42 = vector.extract_strided_slice %28 {offsets = [0, 96], sizes = [8, 32], strides = [1, 1]} : vector<8x128xf32> to vector<8x32xf32>
    %43 = arith.mulf %34, %42 : vector<8x32xf32>
    %44 = arith.addf %41, %43 : vector<8x32xf32>
    %45 = math.tanh %44 : vector<8x32xf32>
    %cst_16 = arith.constant 1.000000e+00 : f32
    %46 = vector.broadcast %cst_16 : f32 to vector<8x32xf32>
    %47 = arith.subf %46, %40 : vector<8x32xf32>
    %48 = arith.mulf %47, %45 : vector<8x32xf32>
    %49 = arith.mulf %40, %13 : vector<8x32xf32>
    %50 = arith.addf %48, %49 : vector<8x32xf32>
    %cst_17 = arith.constant dense<0.000000e+00> : vector<8x64xf32>
    %51 = tpu.matmul %50, %2, %cst_17 {dimension_numbers = #tpu.dot_dimension_numbers<[1], [0], [0], [1], [0, 0, 1, 1], [], []>} : vector<8x32xf32>, vector<32x64xf32>, vector<8x64xf32> -> vector<8x64xf32>
    %52 = arith.addf %51, %18 : vector<8x64xf32>
    %cst_18 = arith.constant 0.000000e+00 : f32
    %53 = vector.broadcast %cst_18 : f32 to vector<8x64xf32>
    %54 = arith.maximumf %52, %53 : vector<8x64xf32>
    %cst_19 = arith.constant dense<0.000000e+00> : vector<8x64xf32>
    %55 = tpu.matmul %54, %3, %cst_19 {dimension_numbers = #tpu.dot_dimension_numbers<[1], [0], [0], [1], [0, 0, 1, 1], [], []>} : vector<8x64xf32>, vector<64x64xf32>, vector<8x64xf32> -> vector<8x64xf32>
    %56 = arith.addf %55, %9 : vector<8x64xf32>
    %57 = vector.extract_strided_slice %56 {offsets = [0, 0], sizes = [8, 16], strides = [1, 1]} : vector<8x64xf32> to vector<8x16xf32>
    %58 = vector.extract_strided_slice %56 {offsets = [0, 16], sizes = [8, 16], strides = [1, 1]} : vector<8x64xf32> to vector<8x16xf32>
    %cst_20 = arith.constant 0.000000e+00 : f32
    %59 = vector.broadcast %cst_20 : f32 to vector<8x16xf32>
    %60 = arith.maximumf %58, %59 : vector<8x16xf32>
    %61 = math.absf %58 : vector<8x16xf32>
    %cst_21 = arith.constant 0.000000e+00 : f32
    %62 = vector.broadcast %cst_21 : f32 to vector<8x16xf32>
    %63 = arith.subf %62, %61 : vector<8x16xf32>
    %64 = math.exp %63 : vector<8x16xf32>
    %65 = math.log1p %64 : vector<8x16xf32>
    %66 = arith.addf %60, %65 : vector<8x16xf32>
    %cst_22 = arith.constant 1.000000e-01 : f32
    %67 = vector.broadcast %cst_22 : f32 to vector<8x16xf32>
    %68 = arith.addf %66, %67 : vector<8x16xf32>
    %69 = vector.extract_strided_slice %56 {offsets = [0, 32], sizes = [8, 16], strides = [1, 1]} : vector<8x64xf32> to vector<8x16xf32>
    %70 = vector.extract_strided_slice %56 {offsets = [0, 48], sizes = [8, 16], strides = [1, 1]} : vector<8x64xf32> to vector<8x16xf32>
    %cst_23 = arith.constant 0.000000e+00 : f32
    %71 = vector.broadcast %cst_23 : f32 to vector<8x16xf32>
    %72 = arith.maximumf %70, %71 : vector<8x16xf32>
    %73 = math.absf %70 : vector<8x16xf32>
    %cst_24 = arith.constant 0.000000e+00 : f32
    %74 = vector.broadcast %cst_24 : f32 to vector<8x16xf32>
    %75 = arith.subf %74, %73 : vector<8x16xf32>
    %76 = math.exp %75 : vector<8x16xf32>
    %77 = math.log1p %76 : vector<8x16xf32>
    %78 = arith.addf %72, %77 : vector<8x16xf32>
    %cst_25 = arith.constant 1.000000e-01 : f32
    %79 = vector.broadcast %cst_25 : f32 to vector<8x16xf32>
    %80 = arith.addf %78, %79 : vector<8x16xf32>
    %81 = arith.mulf %80, %20 : vector<8x16xf32>
    %82 = arith.addf %69, %81 : vector<8x16xf32>
    %83 = tpu.concatenate %50, %57, %68, %82, %69, %80, %10 in 1 : vector<8x32xf32>, vector<8x16xf32>, vector<8x16xf32>, vector<8x16xf32>, vector<8x16xf32>, vector<8x16xf32>, vector<8x16xf32> -> vector<8x128xf32>
    %84 = arith.index_cast %c0_i32 : i32 to index
    %c0_26 = arith.constant 0 : index
    %c0_27 = arith.constant 0 : index
    %85 = vector.load %arg4[%84, %c0_26, %c0_27] : memref<8x8x128xf32, #tpu.memory_space<vmem>>, vector<1x8x128xf32>
    %86 = vector.shape_cast %85 : vector<1x8x128xf32> to vector<8x128xf32>
    %87 = vector.shape_cast %83 : vector<8x128xf32> to vector<1x8x128xf32>
    tpu.vector_store %arg4[%84, %c0_26, %c0_27], %87 {strides = array<i32>} : memref<8x8x128xf32, #tpu.memory_space<vmem>>, vector<1x8x128xf32>,
    %c1_i32 = arith.constant 1 : i32
    %88 = arith.index_cast %c1_i32 : i32 to index
    %c0_28 = arith.constant 0 : index
    %c0_29 = arith.constant 0 : index
    %89 = vector.load %arg0[%88, %c0_28, %c0_29] : memref<8x8x128xf32, #tpu.memory_space<vmem>>, vector<1x8x128xf32>
    %90 = vector.shape_cast %89 : vector<1x8x128xf32> to vector<8x128xf32>
    %91 = vector.extract_strided_slice %90 {offsets = [0, 0], sizes = [8, 32], strides = [1, 1]} : vector<8x128xf32> to vector<8x32xf32>
    %92 = vector.extract_strided_slice %90 {offsets = [0, 32], sizes = [8, 64], strides = [1, 1]} : vector<8x128xf32> to vector<8x64xf32>
    %93 = vector.extract_strided_slice %90 {offsets = [0, 96], sizes = [8, 16], strides = [1, 1]} : vector<8x128xf32> to vector<8x16xf32>
    %94 = vector.extract_strided_slice %90 {offsets = [0, 112], sizes = [8, 16], strides = [1, 1]} : vector<8x128xf32> to vector<8x16xf32>
    %95 = arith.mulf %82, %93 : vector<8x16xf32>
    %cst_30 = arith.constant dense<0.000000e+00> : vector<8x32xf32>
    %96 = tpu.matmul %95, %0, %cst_30 {dimension_numbers = #tpu.dot_dimension_numbers<[1], [0], [0], [1], [0, 0, 1, 1], [], []>} : vector<8x16xf32>, vector<16x32xf32>, vector<8x32xf32> -> vector<8x32xf32>
    %97 = arith.addf %96, %91 : vector<8x32xf32>
    %cst_31 = arith.constant 0.000000e+00 : f32
    %98 = vector.broadcast %cst_31 : f32 to vector<8x32xf32>
    %99 = arith.maximumf %97, %98 : vector<8x32xf32>
    %100 = tpu.concatenate %99, %50 in 1 : vector<8x32xf32>, vector<8x32xf32> -> vector<8x64xf32>
    %cst_32 = arith.constant dense<0.000000e+00> : vector<8x128xf32>
    %101 = tpu.matmul %100, %1, %cst_32 {dimension_numbers = #tpu.dot_dimension_numbers<[1], [0], [0], [1], [0, 0, 1, 1], [], []>} : vector<8x64xf32>, vector<64x128xf32>, vector<8x128xf32> -> vector<8x128xf32>
    %102 = arith.addf %101, %6 : vector<8x128xf32>
    %103 = vector.extract_strided_slice %102 {offsets = [0, 0], sizes = [8, 32], strides = [1, 1]} : vector<8x128xf32> to vector<8x32xf32>
    %104 = arith.negf %103 : vector<8x32xf32>
    %105 = math.exp %104 : vector<8x32xf32>
    %cst_33 = arith.constant 1.000000e+00 : f32
    %106 = vector.broadcast %cst_33 : f32 to vector<8x32xf32>
    %107 = arith.addf %106, %105 : vector<8x32xf32>
    %108 = arith.divf %106, %107 : vector<8x32xf32>
    %109 = vector.extract_strided_slice %102 {offsets = [0, 32], sizes = [8, 32], strides = [1, 1]} : vector<8x128xf32> to vector<8x32xf32>
    %110 = arith.negf %109 : vector<8x32xf32>
    %111 = math.exp %110 : vector<8x32xf32>
    %cst_34 = arith.constant 1.000000e+00 : f32
    %112 = vector.broadcast %cst_34 : f32 to vector<8x32xf32>
    %113 = arith.addf %112, %111 : vector<8x32xf32>
    %114 = arith.divf %112, %113 : vector<8x32xf32>
    %115 = vector.extract_strided_slice %102 {offsets = [0, 64], sizes = [8, 32], strides = [1, 1]} : vector<8x128xf32> to vector<8x32xf32>
    %116 = vector.extract_strided_slice %102 {offsets = [0, 96], sizes = [8, 32], strides = [1, 1]} : vector<8x128xf32> to vector<8x32xf32>
    %117 = arith.mulf %108, %116 : vector<8x32xf32>
    %118 = arith.addf %115, %117 : vector<8x32xf32>
    %119 = math.tanh %118 : vector<8x32xf32>
    %cst_35 = arith.constant 1.000000e+00 : f32
    %120 = vector.broadcast %cst_35 : f32 to vector<8x32xf32>
    %121 = arith.subf %120, %114 : vector<8x32xf32>
    %122 = arith.mulf %121, %119 : vector<8x32xf32>
    %123 = arith.mulf %114, %50 : vector<8x32xf32>
    %124 = arith.addf %122, %123 : vector<8x32xf32>
    %cst_36 = arith.constant dense<0.000000e+00> : vector<8x64xf32>
    %125 = tpu.matmul %124, %2, %cst_36 {dimension_numbers = #tpu.dot_dimension_numbers<[1], [0], [0], [1], [0, 0, 1, 1], [], []>} : vector<8x32xf32>, vector<32x64xf32>, vector<8x64xf32> -> vector<8x64xf32>
    %126 = arith.addf %125, %92 : vector<8x64xf32>
    %cst_37 = arith.constant 0.000000e+00 : f32
    %127 = vector.broadcast %cst_37 : f32 to vector<8x64xf32>
    %128 = arith.maximumf %126, %127 : vector<8x64xf32>
    %cst_38 = arith.constant dense<0.000000e+00> : vector<8x64xf32>
    %129 = tpu.matmul %128, %3, %cst_38 {dimension_numbers = #tpu.dot_dimension_numbers<[1], [0], [0], [1], [0, 0, 1, 1], [], []>} : vector<8x64xf32>, vector<64x64xf32>, vector<8x64xf32> -> vector<8x64xf32>
    %130 = arith.addf %129, %9 : vector<8x64xf32>
    %131 = vector.extract_strided_slice %130 {offsets = [0, 0], sizes = [8, 16], strides = [1, 1]} : vector<8x64xf32> to vector<8x16xf32>
    %132 = vector.extract_strided_slice %130 {offsets = [0, 16], sizes = [8, 16], strides = [1, 1]} : vector<8x64xf32> to vector<8x16xf32>
    %cst_39 = arith.constant 0.000000e+00 : f32
    %133 = vector.broadcast %cst_39 : f32 to vector<8x16xf32>
    %134 = arith.maximumf %132, %133 : vector<8x16xf32>
    %135 = math.absf %132 : vector<8x16xf32>
    %cst_40 = arith.constant 0.000000e+00 : f32
    %136 = vector.broadcast %cst_40 : f32 to vector<8x16xf32>
    %137 = arith.subf %136, %135 : vector<8x16xf32>
    %138 = math.exp %137 : vector<8x16xf32>
    %139 = math.log1p %138 : vector<8x16xf32>
    %140 = arith.addf %134, %139 : vector<8x16xf32>
    %cst_41 = arith.constant 1.000000e-01 : f32
    %141 = vector.broadcast %cst_41 : f32 to vector<8x16xf32>
    %142 = arith.addf %140, %141 : vector<8x16xf32>
    %143 = vector.extract_strided_slice %130 {offsets = [0, 32], sizes = [8, 16], strides = [1, 1]} : vector<8x64xf32> to vector<8x16xf32>
    %144 = vector.extract_strided_slice %130 {offsets = [0, 48], sizes = [8, 16], strides = [1, 1]} : vector<8x64xf32> to vector<8x16xf32>
    %cst_42 = arith.constant 0.000000e+00 : f32
    %145 = vector.broadcast %cst_42 : f32 to vector<8x16xf32>
    %146 = arith.maximumf %144, %145 : vector<8x16xf32>
    %147 = math.absf %144 : vector<8x16xf32>
    %cst_43 = arith.constant 0.000000e+00 : f32
    %148 = vector.broadcast %cst_43 : f32 to vector<8x16xf32>
    %149 = arith.subf %148, %147 : vector<8x16xf32>
    %150 = math.exp %149 : vector<8x16xf32>
    %151 = math.log1p %150 : vector<8x16xf32>
    %152 = arith.addf %146, %151 : vector<8x16xf32>
    %cst_44 = arith.constant 1.000000e-01 : f32
    %153 = vector.broadcast %cst_44 : f32 to vector<8x16xf32>
    %154 = arith.addf %152, %153 : vector<8x16xf32>
    %155 = arith.mulf %154, %94 : vector<8x16xf32>
    %156 = arith.addf %143, %155 : vector<8x16xf32>
    %157 = tpu.concatenate %124, %131, %142, %156, %143, %154, %10 in 1 : vector<8x32xf32>, vector<8x16xf32>, vector<8x16xf32>, vector<8x16xf32>, vector<8x16xf32>, vector<8x16xf32>, vector<8x16xf32> -> vector<8x128xf32>
    %158 = arith.index_cast %c1_i32 : i32 to index
    %c0_45 = arith.constant 0 : index
    %c0_46 = arith.constant 0 : index
    %159 = vector.load %arg4[%158, %c0_45, %c0_46] : memref<8x8x128xf32, #tpu.memory_space<vmem>>, vector<1x8x128xf32>
    %160 = vector.shape_cast %159 : vector<1x8x128xf32> to vector<8x128xf32>
    %161 = vector.shape_cast %157 : vector<8x128xf32> to vector<1x8x128xf32>
    tpu.vector_store %arg4[%158, %c0_45, %c0_46], %161 {strides = array<i32>} : memref<8x8x128xf32, #tpu.memory_space<vmem>>, vector<1x8x128xf32>,
    %c2_i32 = arith.constant 2 : i32
    %162 = arith.index_cast %c2_i32 : i32 to index
    %c0_47 = arith.constant 0 : index
    %c0_48 = arith.constant 0 : index
    %163 = vector.load %arg0[%162, %c0_47, %c0_48] : memref<8x8x128xf32, #tpu.memory_space<vmem>>, vector<1x8x128xf32>
    %164 = vector.shape_cast %163 : vector<1x8x128xf32> to vector<8x128xf32>
    %165 = vector.extract_strided_slice %164 {offsets = [0, 0], sizes = [8, 32], strides = [1, 1]} : vector<8x128xf32> to vector<8x32xf32>
    %166 = vector.extract_strided_slice %164 {offsets = [0, 32], sizes = [8, 64], strides = [1, 1]} : vector<8x128xf32> to vector<8x64xf32>
    %167 = vector.extract_strided_slice %164 {offsets = [0, 96], sizes = [8, 16], strides = [1, 1]} : vector<8x128xf32> to vector<8x16xf32>
    %168 = vector.extract_strided_slice %164 {offsets = [0, 112], sizes = [8, 16], strides = [1, 1]} : vector<8x128xf32> to vector<8x16xf32>
    %169 = arith.mulf %156, %167 : vector<8x16xf32>
    %cst_49 = arith.constant dense<0.000000e+00> : vector<8x32xf32>
    %170 = tpu.matmul %169, %0, %cst_49 {dimension_numbers = #tpu.dot_dimension_numbers<[1], [0], [0], [1], [0, 0, 1, 1], [], []>} : vector<8x16xf32>, vector<16x32xf32>, vector<8x32xf32> -> vector<8x32xf32>
    %171 = arith.addf %170, %165 : vector<8x32xf32>
    %cst_50 = arith.constant 0.000000e+00 : f32
    %172 = vector.broadcast %cst_50 : f32 to vector<8x32xf32>
    %173 = arith.maximumf %171, %172 : vector<8x32xf32>
    %174 = tpu.concatenate %173, %124 in 1 : vector<8x32xf32>, vector<8x32xf32> -> vector<8x64xf32>
    %cst_51 = arith.constant dense<0.000000e+00> : vector<8x128xf32>
    %175 = tpu.matmul %174, %1, %cst_51 {dimension_numbers = #tpu.dot_dimension_numbers<[1], [0], [0], [1], [0, 0, 1, 1], [], []>} : vector<8x64xf32>, vector<64x128xf32>, vector<8x128xf32> -> vector<8x128xf32>
    %176 = arith.addf %175, %6 : vector<8x128xf32>
    %177 = vector.extract_strided_slice %176 {offsets = [0, 0], sizes = [8, 32], strides = [1, 1]} : vector<8x128xf32> to vector<8x32xf32>
    %178 = arith.negf %177 : vector<8x32xf32>
    %179 = math.exp %178 : vector<8x32xf32>
    %cst_52 = arith.constant 1.000000e+00 : f32
    %180 = vector.broadcast %cst_52 : f32 to vector<8x32xf32>
    %181 = arith.addf %180, %179 : vector<8x32xf32>
    %182 = arith.divf %180, %181 : vector<8x32xf32>
    %183 = vector.extract_strided_slice %176 {offsets = [0, 32], sizes = [8, 32], strides = [1, 1]} : vector<8x128xf32> to vector<8x32xf32>
    %184 = arith.negf %183 : vector<8x32xf32>
    %185 = math.exp %184 : vector<8x32xf32>
    %cst_53 = arith.constant 1.000000e+00 : f32
    %186 = vector.broadcast %cst_53 : f32 to vector<8x32xf32>
    %187 = arith.addf %186, %185 : vector<8x32xf32>
    %188 = arith.divf %186, %187 : vector<8x32xf32>
    %189 = vector.extract_strided_slice %176 {offsets = [0, 64], sizes = [8, 32], strides = [1, 1]} : vector<8x128xf32> to vector<8x32xf32>
    %190 = vector.extract_strided_slice %176 {offsets = [0, 96], sizes = [8, 32], strides = [1, 1]} : vector<8x128xf32> to vector<8x32xf32>
    %191 = arith.mulf %182, %190 : vector<8x32xf32>
    %192 = arith.addf %189, %191 : vector<8x32xf32>
    %193 = math.tanh %192 : vector<8x32xf32>
    %cst_54 = arith.constant 1.000000e+00 : f32
    %194 = vector.broadcast %cst_54 : f32 to vector<8x32xf32>
    %195 = arith.subf %194, %188 : vector<8x32xf32>
    %196 = arith.mulf %195, %193 : vector<8x32xf32>
    %197 = arith.mulf %188, %124 : vector<8x32xf32>
    %198 = arith.addf %196, %197 : vector<8x32xf32>
    %cst_55 = arith.constant dense<0.000000e+00> : vector<8x64xf32>
    %199 = tpu.matmul %198, %2, %cst_55 {dimension_numbers = #tpu.dot_dimension_numbers<[1], [0], [0], [1], [0, 0, 1, 1], [], []>} : vector<8x32xf32>, vector<32x64xf32>, vector<8x64xf32> -> vector<8x64xf32>
    %200 = arith.addf %199, %166 : vector<8x64xf32>
    %cst_56 = arith.constant 0.000000e+00 : f32
    %201 = vector.broadcast %cst_56 : f32 to vector<8x64xf32>
    %202 = arith.maximumf %200, %201 : vector<8x64xf32>
    %cst_57 = arith.constant dense<0.000000e+00> : vector<8x64xf32>
    %203 = tpu.matmul %202, %3, %cst_57 {dimension_numbers = #tpu.dot_dimension_numbers<[1], [0], [0], [1], [0, 0, 1, 1], [], []>} : vector<8x64xf32>, vector<64x64xf32>, vector<8x64xf32> -> vector<8x64xf32>
    %204 = arith.addf %203, %9 : vector<8x64xf32>
    %205 = vector.extract_strided_slice %204 {offsets = [0, 0], sizes = [8, 16], strides = [1, 1]} : vector<8x64xf32> to vector<8x16xf32>
    %206 = vector.extract_strided_slice %204 {offsets = [0, 16], sizes = [8, 16], strides = [1, 1]} : vector<8x64xf32> to vector<8x16xf32>
    %cst_58 = arith.constant 0.000000e+00 : f32
    %207 = vector.broadcast %cst_58 : f32 to vector<8x16xf32>
    %208 = arith.maximumf %206, %207 : vector<8x16xf32>
    %209 = math.absf %206 : vector<8x16xf32>
    %cst_59 = arith.constant 0.000000e+00 : f32
    %210 = vector.broadcast %cst_59 : f32 to vector<8x16xf32>
    %211 = arith.subf %210, %209 : vector<8x16xf32>
    %212 = math.exp %211 : vector<8x16xf32>
    %213 = math.log1p %212 : vector<8x16xf32>
    %214 = arith.addf %208, %213 : vector<8x16xf32>
    %cst_60 = arith.constant 1.000000e-01 : f32
    %215 = vector.broadcast %cst_60 : f32 to vector<8x16xf32>
    %216 = arith.addf %214, %215 : vector<8x16xf32>
    %217 = vector.extract_strided_slice %204 {offsets = [0, 32], sizes = [8, 16], strides = [1, 1]} : vector<8x64xf32> to vector<8x16xf32>
    %218 = vector.extract_strided_slice %204 {offsets = [0, 48], sizes = [8, 16], strides = [1, 1]} : vector<8x64xf32> to vector<8x16xf32>
    %cst_61 = arith.constant 0.000000e+00 : f32
    %219 = vector.broadcast %cst_61 : f32 to vector<8x16xf32>
    %220 = arith.maximumf %218, %219 : vector<8x16xf32>
    %221 = math.absf %218 : vector<8x16xf32>
    %cst_62 = arith.constant 0.000000e+00 : f32
    %222 = vector.broadcast %cst_62 : f32 to vector<8x16xf32>
    %223 = arith.subf %222, %221 : vector<8x16xf32>
    %224 = math.exp %223 : vector<8x16xf32>
    %225 = math.log1p %224 : vector<8x16xf32>
    %226 = arith.addf %220, %225 : vector<8x16xf32>
    %cst_63 = arith.constant 1.000000e-01 : f32
    %227 = vector.broadcast %cst_63 : f32 to vector<8x16xf32>
    %228 = arith.addf %226, %227 : vector<8x16xf32>
    %229 = arith.mulf %228, %168 : vector<8x16xf32>
    %230 = arith.addf %217, %229 : vector<8x16xf32>
    %231 = tpu.concatenate %198, %205, %216, %230, %217, %228, %10 in 1 : vector<8x32xf32>, vector<8x16xf32>, vector<8x16xf32>, vector<8x16xf32>, vector<8x16xf32>, vector<8x16xf32>, vector<8x16xf32> -> vector<8x128xf32>
    %232 = arith.index_cast %c2_i32 : i32 to index
    %c0_64 = arith.constant 0 : index
    %c0_65 = arith.constant 0 : index
    %233 = vector.load %arg4[%232, %c0_64, %c0_65] : memref<8x8x128xf32, #tpu.memory_space<vmem>>, vector<1x8x128xf32>
    %234 = vector.shape_cast %233 : vector<1x8x128xf32> to vector<8x128xf32>
    %235 = vector.shape_cast %231 : vector<8x128xf32> to vector<1x8x128xf32>
    tpu.vector_store %arg4[%232, %c0_64, %c0_65], %235 {strides = array<i32>} : memref<8x8x128xf32, #tpu.memory_space<vmem>>, vector<1x8x128xf32>,
    %c3_i32 = arith.constant 3 : i32
    %236 = arith.index_cast %c3_i32 : i32 to index
    %c0_66 = arith.constant 0 : index
    %c0_67 = arith.constant 0 : index
    %237 = vector.load %arg0[%236, %c0_66, %c0_67] : memref<8x8x128xf32, #tpu.memory_space<vmem>>, vector<1x8x128xf32>
    %238 = vector.shape_cast %237 : vector<1x8x128xf32> to vector<8x128xf32>
    %239 = vector.extract_strided_slice %238 {offsets = [0, 0], sizes = [8, 32], strides = [1, 1]} : vector<8x128xf32> to vector<8x32xf32>
    %240 = vector.extract_strided_slice %238 {offsets = [0, 32], sizes = [8, 64], strides = [1, 1]} : vector<8x128xf32> to vector<8x64xf32>
    %241 = vector.extract_strided_slice %238 {offsets = [0, 96], sizes = [8, 16], strides = [1, 1]} : vector<8x128xf32> to vector<8x16xf32>
    %242 = vector.extract_strided_slice %238 {offsets = [0, 112], sizes = [8, 16], strides = [1, 1]} : vector<8x128xf32> to vector<8x16xf32>
    %243 = arith.mulf %230, %241 : vector<8x16xf32>
    %cst_68 = arith.constant dense<0.000000e+00> : vector<8x32xf32>
    %244 = tpu.matmul %243, %0, %cst_68 {dimension_numbers = #tpu.dot_dimension_numbers<[1], [0], [0], [1], [0, 0, 1, 1], [], []>} : vector<8x16xf32>, vector<16x32xf32>, vector<8x32xf32> -> vector<8x32xf32>
    %245 = arith.addf %244, %239 : vector<8x32xf32>
    %cst_69 = arith.constant 0.000000e+00 : f32
    %246 = vector.broadcast %cst_69 : f32 to vector<8x32xf32>
    %247 = arith.maximumf %245, %246 : vector<8x32xf32>
    %248 = tpu.concatenate %247, %198 in 1 : vector<8x32xf32>, vector<8x32xf32> -> vector<8x64xf32>
    %cst_70 = arith.constant dense<0.000000e+00> : vector<8x128xf32>
    %249 = tpu.matmul %248, %1, %cst_70 {dimension_numbers = #tpu.dot_dimension_numbers<[1], [0], [0], [1], [0, 0, 1, 1], [], []>} : vector<8x64xf32>, vector<64x128xf32>, vector<8x128xf32> -> vector<8x128xf32>
    %250 = arith.addf %249, %6 : vector<8x128xf32>
    %251 = vector.extract_strided_slice %250 {offsets = [0, 0], sizes = [8, 32], strides = [1, 1]} : vector<8x128xf32> to vector<8x32xf32>
    %252 = arith.negf %251 : vector<8x32xf32>
    %253 = math.exp %252 : vector<8x32xf32>
    %cst_71 = arith.constant 1.000000e+00 : f32
    %254 = vector.broadcast %cst_71 : f32 to vector<8x32xf32>
    %255 = arith.addf %254, %253 : vector<8x32xf32>
    %256 = arith.divf %254, %255 : vector<8x32xf32>
    %257 = vector.extract_strided_slice %250 {offsets = [0, 32], sizes = [8, 32], strides = [1, 1]} : vector<8x128xf32> to vector<8x32xf32>
    %258 = arith.negf %257 : vector<8x32xf32>
    %259 = math.exp %258 : vector<8x32xf32>
    %cst_72 = arith.constant 1.000000e+00 : f32
    %260 = vector.broadcast %cst_72 : f32 to vector<8x32xf32>
    %261 = arith.addf %260, %259 : vector<8x32xf32>
    %262 = arith.divf %260, %261 : vector<8x32xf32>
    %263 = vector.extract_strided_slice %250 {offsets = [0, 64], sizes = [8, 32], strides = [1, 1]} : vector<8x128xf32> to vector<8x32xf32>
    %264 = vector.extract_strided_slice %250 {offsets = [0, 96], sizes = [8, 32], strides = [1, 1]} : vector<8x128xf32> to vector<8x32xf32>
    %265 = arith.mulf %256, %264 : vector<8x32xf32>
    %266 = arith.addf %263, %265 : vector<8x32xf32>
    %267 = math.tanh %266 : vector<8x32xf32>
    %cst_73 = arith.constant 1.000000e+00 : f32
    %268 = vector.broadcast %cst_73 : f32 to vector<8x32xf32>
    %269 = arith.subf %268, %262 : vector<8x32xf32>
    %270 = arith.mulf %269, %267 : vector<8x32xf32>
    %271 = arith.mulf %262, %198 : vector<8x32xf32>
    %272 = arith.addf %270, %271 : vector<8x32xf32>
    %cst_74 = arith.constant dense<0.000000e+00> : vector<8x64xf32>
    %273 = tpu.matmul %272, %2, %cst_74 {dimension_numbers = #tpu.dot_dimension_numbers<[1], [0], [0], [1], [0, 0, 1, 1], [], []>} : vector<8x32xf32>, vector<32x64xf32>, vector<8x64xf32> -> vector<8x64xf32>
    %274 = arith.addf %273, %240 : vector<8x64xf32>
    %cst_75 = arith.constant 0.000000e+00 : f32
    %275 = vector.broadcast %cst_75 : f32 to vector<8x64xf32>
    %276 = arith.maximumf %274, %275 : vector<8x64xf32>
    %cst_76 = arith.constant dense<0.000000e+00> : vector<8x64xf32>
    %277 = tpu.matmul %276, %3, %cst_76 {dimension_numbers = #tpu.dot_dimension_numbers<[1], [0], [0], [1], [0, 0, 1, 1], [], []>} : vector<8x64xf32>, vector<64x64xf32>, vector<8x64xf32> -> vector<8x64xf32>
    %278 = arith.addf %277, %9 : vector<8x64xf32>
    %279 = vector.extract_strided_slice %278 {offsets = [0, 0], sizes = [8, 16], strides = [1, 1]} : vector<8x64xf32> to vector<8x16xf32>
    %280 = vector.extract_strided_slice %278 {offsets = [0, 16], sizes = [8, 16], strides = [1, 1]} : vector<8x64xf32> to vector<8x16xf32>
    %cst_77 = arith.constant 0.000000e+00 : f32
    %281 = vector.broadcast %cst_77 : f32 to vector<8x16xf32>
    %282 = arith.maximumf %280, %281 : vector<8x16xf32>
    %283 = math.absf %280 : vector<8x16xf32>
    %cst_78 = arith.constant 0.000000e+00 : f32
    %284 = vector.broadcast %cst_78 : f32 to vector<8x16xf32>
    %285 = arith.subf %284, %283 : vector<8x16xf32>
    %286 = math.exp %285 : vector<8x16xf32>
    %287 = math.log1p %286 : vector<8x16xf32>
    %288 = arith.addf %282, %287 : vector<8x16xf32>
    %cst_79 = arith.constant 1.000000e-01 : f32
    %289 = vector.broadcast %cst_79 : f32 to vector<8x16xf32>
    %290 = arith.addf %288, %289 : vector<8x16xf32>
    %291 = vector.extract_strided_slice %278 {offsets = [0, 32], sizes = [8, 16], strides = [1, 1]} : vector<8x64xf32> to vector<8x16xf32>
    %292 = vector.extract_strided_slice %278 {offsets = [0, 48], sizes = [8, 16], strides = [1, 1]} : vector<8x64xf32> to vector<8x16xf32>
    %cst_80 = arith.constant 0.000000e+00 : f32
    %293 = vector.broadcast %cst_80 : f32 to vector<8x16xf32>
    %294 = arith.maximumf %292, %293 : vector<8x16xf32>
    %295 = math.absf %292 : vector<8x16xf32>
    %cst_81 = arith.constant 0.000000e+00 : f32
    %296 = vector.broadcast %cst_81 : f32 to vector<8x16xf32>
    %297 = arith.subf %296, %295 : vector<8x16xf32>
    %298 = math.exp %297 : vector<8x16xf32>
    %299 = math.log1p %298 : vector<8x16xf32>
    %300 = arith.addf %294, %299 : vector<8x16xf32>
    %cst_82 = arith.constant 1.000000e-01 : f32
    %301 = vector.broadcast %cst_82 : f32 to vector<8x16xf32>
    %302 = arith.addf %300, %301 : vector<8x16xf32>
    %303 = arith.mulf %302, %242 : vector<8x16xf32>
    %304 = arith.addf %291, %303 : vector<8x16xf32>
    %305 = tpu.concatenate %272, %279, %290, %304, %291, %302, %10 in 1 : vector<8x32xf32>, vector<8x16xf32>, vector<8x16xf32>, vector<8x16xf32>, vector<8x16xf32>, vector<8x16xf32>, vector<8x16xf32> -> vector<8x128xf32>
    %306 = arith.index_cast %c3_i32 : i32 to index
    %c0_83 = arith.constant 0 : index
    %c0_84 = arith.constant 0 : index
    %307 = vector.load %arg4[%306, %c0_83, %c0_84] : memref<8x8x128xf32, #tpu.memory_space<vmem>>, vector<1x8x128xf32>
    %308 = vector.shape_cast %307 : vector<1x8x128xf32> to vector<8x128xf32>
    %309 = vector.shape_cast %305 : vector<8x128xf32> to vector<1x8x128xf32>
    tpu.vector_store %arg4[%306, %c0_83, %c0_84], %309 {strides = array<i32>} : memref<8x8x128xf32, #tpu.memory_space<vmem>>, vector<1x8x128xf32>,
    %c4_i32 = arith.constant 4 : i32
    %310 = arith.index_cast %c4_i32 : i32 to index
    %c0_85 = arith.constant 0 : index
    %c0_86 = arith.constant 0 : index
    %311 = vector.load %arg0[%310, %c0_85, %c0_86] : memref<8x8x128xf32, #tpu.memory_space<vmem>>, vector<1x8x128xf32>
    %312 = vector.shape_cast %311 : vector<1x8x128xf32> to vector<8x128xf32>
    %313 = vector.extract_strided_slice %312 {offsets = [0, 0], sizes = [8, 32], strides = [1, 1]} : vector<8x128xf32> to vector<8x32xf32>
    %314 = vector.extract_strided_slice %312 {offsets = [0, 32], sizes = [8, 64], strides = [1, 1]} : vector<8x128xf32> to vector<8x64xf32>
    %315 = vector.extract_strided_slice %312 {offsets = [0, 96], sizes = [8, 16], strides = [1, 1]} : vector<8x128xf32> to vector<8x16xf32>
    %316 = vector.extract_strided_slice %312 {offsets = [0, 112], sizes = [8, 16], strides = [1, 1]} : vector<8x128xf32> to vector<8x16xf32>
    %317 = arith.mulf %304, %315 : vector<8x16xf32>
    %cst_87 = arith.constant dense<0.000000e+00> : vector<8x32xf32>
    %318 = tpu.matmul %317, %0, %cst_87 {dimension_numbers = #tpu.dot_dimension_numbers<[1], [0], [0], [1], [0, 0, 1, 1], [], []>} : vector<8x16xf32>, vector<16x32xf32>, vector<8x32xf32> -> vector<8x32xf32>
    %319 = arith.addf %318, %313 : vector<8x32xf32>
    %cst_88 = arith.constant 0.000000e+00 : f32
    %320 = vector.broadcast %cst_88 : f32 to vector<8x32xf32>
    %321 = arith.maximumf %319, %320 : vector<8x32xf32>
    %322 = tpu.concatenate %321, %272 in 1 : vector<8x32xf32>, vector<8x32xf32> -> vector<8x64xf32>
    %cst_89 = arith.constant dense<0.000000e+00> : vector<8x128xf32>
    %323 = tpu.matmul %322, %1, %cst_89 {dimension_numbers = #tpu.dot_dimension_numbers<[1], [0], [0], [1], [0, 0, 1, 1], [], []>} : vector<8x64xf32>, vector<64x128xf32>, vector<8x128xf32> -> vector<8x128xf32>
    %324 = arith.addf %323, %6 : vector<8x128xf32>
    %325 = vector.extract_strided_slice %324 {offsets = [0, 0], sizes = [8, 32], strides = [1, 1]} : vector<8x128xf32> to vector<8x32xf32>
    %326 = arith.negf %325 : vector<8x32xf32>
    %327 = math.exp %326 : vector<8x32xf32>
    %cst_90 = arith.constant 1.000000e+00 : f32
    %328 = vector.broadcast %cst_90 : f32 to vector<8x32xf32>
    %329 = arith.addf %328, %327 : vector<8x32xf32>
    %330 = arith.divf %328, %329 : vector<8x32xf32>
    %331 = vector.extract_strided_slice %324 {offsets = [0, 32], sizes = [8, 32], strides = [1, 1]} : vector<8x128xf32> to vector<8x32xf32>
    %332 = arith.negf %331 : vector<8x32xf32>
    %333 = math.exp %332 : vector<8x32xf32>
    %cst_91 = arith.constant 1.000000e+00 : f32
    %334 = vector.broadcast %cst_91 : f32 to vector<8x32xf32>
    %335 = arith.addf %334, %333 : vector<8x32xf32>
    %336 = arith.divf %334, %335 : vector<8x32xf32>
    %337 = vector.extract_strided_slice %324 {offsets = [0, 64], sizes = [8, 32], strides = [1, 1]} : vector<8x128xf32> to vector<8x32xf32>
    %338 = vector.extract_strided_slice %324 {offsets = [0, 96], sizes = [8, 32], strides = [1, 1]} : vector<8x128xf32> to vector<8x32xf32>
    %339 = arith.mulf %330, %338 : vector<8x32xf32>
    %340 = arith.addf %337, %339 : vector<8x32xf32>
    %341 = math.tanh %340 : vector<8x32xf32>
    %cst_92 = arith.constant 1.000000e+00 : f32
    %342 = vector.broadcast %cst_92 : f32 to vector<8x32xf32>
    %343 = arith.subf %342, %336 : vector<8x32xf32>
    %344 = arith.mulf %343, %341 : vector<8x32xf32>
    %345 = arith.mulf %336, %272 : vector<8x32xf32>
    %346 = arith.addf %344, %345 : vector<8x32xf32>
    %cst_93 = arith.constant dense<0.000000e+00> : vector<8x64xf32>
    %347 = tpu.matmul %346, %2, %cst_93 {dimension_numbers = #tpu.dot_dimension_numbers<[1], [0], [0], [1], [0, 0, 1, 1], [], []>} : vector<8x32xf32>, vector<32x64xf32>, vector<8x64xf32> -> vector<8x64xf32>
    %348 = arith.addf %347, %314 : vector<8x64xf32>
    %cst_94 = arith.constant 0.000000e+00 : f32
    %349 = vector.broadcast %cst_94 : f32 to vector<8x64xf32>
    %350 = arith.maximumf %348, %349 : vector<8x64xf32>
    %cst_95 = arith.constant dense<0.000000e+00> : vector<8x64xf32>
    %351 = tpu.matmul %350, %3, %cst_95 {dimension_numbers = #tpu.dot_dimension_numbers<[1], [0], [0], [1], [0, 0, 1, 1], [], []>} : vector<8x64xf32>, vector<64x64xf32>, vector<8x64xf32> -> vector<8x64xf32>
    %352 = arith.addf %351, %9 : vector<8x64xf32>
    %353 = vector.extract_strided_slice %352 {offsets = [0, 0], sizes = [8, 16], strides = [1, 1]} : vector<8x64xf32> to vector<8x16xf32>
    %354 = vector.extract_strided_slice %352 {offsets = [0, 16], sizes = [8, 16], strides = [1, 1]} : vector<8x64xf32> to vector<8x16xf32>
    %cst_96 = arith.constant 0.000000e+00 : f32
    %355 = vector.broadcast %cst_96 : f32 to vector<8x16xf32>
    %356 = arith.maximumf %354, %355 : vector<8x16xf32>
    %357 = math.absf %354 : vector<8x16xf32>
    %cst_97 = arith.constant 0.000000e+00 : f32
    %358 = vector.broadcast %cst_97 : f32 to vector<8x16xf32>
    %359 = arith.subf %358, %357 : vector<8x16xf32>
    %360 = math.exp %359 : vector<8x16xf32>
    %361 = math.log1p %360 : vector<8x16xf32>
    %362 = arith.addf %356, %361 : vector<8x16xf32>
    %cst_98 = arith.constant 1.000000e-01 : f32
    %363 = vector.broadcast %cst_98 : f32 to vector<8x16xf32>
    %364 = arith.addf %362, %363 : vector<8x16xf32>
    %365 = vector.extract_strided_slice %352 {offsets = [0, 32], sizes = [8, 16], strides = [1, 1]} : vector<8x64xf32> to vector<8x16xf32>
    %366 = vector.extract_strided_slice %352 {offsets = [0, 48], sizes = [8, 16], strides = [1, 1]} : vector<8x64xf32> to vector<8x16xf32>
    %cst_99 = arith.constant 0.000000e+00 : f32
    %367 = vector.broadcast %cst_99 : f32 to vector<8x16xf32>
    %368 = arith.maximumf %366, %367 : vector<8x16xf32>
    %369 = math.absf %366 : vector<8x16xf32>
    %cst_100 = arith.constant 0.000000e+00 : f32
    %370 = vector.broadcast %cst_100 : f32 to vector<8x16xf32>
    %371 = arith.subf %370, %369 : vector<8x16xf32>
    %372 = math.exp %371 : vector<8x16xf32>
    %373 = math.log1p %372 : vector<8x16xf32>
    %374 = arith.addf %368, %373 : vector<8x16xf32>
    %cst_101 = arith.constant 1.000000e-01 : f32
    %375 = vector.broadcast %cst_101 : f32 to vector<8x16xf32>
    %376 = arith.addf %374, %375 : vector<8x16xf32>
    %377 = arith.mulf %376, %316 : vector<8x16xf32>
    %378 = arith.addf %365, %377 : vector<8x16xf32>
    %379 = tpu.concatenate %346, %353, %364, %378, %365, %376, %10 in 1 : vector<8x32xf32>, vector<8x16xf32>, vector<8x16xf32>, vector<8x16xf32>, vector<8x16xf32>, vector<8x16xf32>, vector<8x16xf32> -> vector<8x128xf32>
    %380 = arith.index_cast %c4_i32 : i32 to index
    %c0_102 = arith.constant 0 : index
    %c0_103 = arith.constant 0 : index
    %381 = vector.load %arg4[%380, %c0_102, %c0_103] : memref<8x8x128xf32, #tpu.memory_space<vmem>>, vector<1x8x128xf32>
    %382 = vector.shape_cast %381 : vector<1x8x128xf32> to vector<8x128xf32>
    %383 = vector.shape_cast %379 : vector<8x128xf32> to vector<1x8x128xf32>
    tpu.vector_store %arg4[%380, %c0_102, %c0_103], %383 {strides = array<i32>} : memref<8x8x128xf32, #tpu.memory_space<vmem>>, vector<1x8x128xf32>,
    %c5_i32 = arith.constant 5 : i32
    %384 = arith.index_cast %c5_i32 : i32 to index
    %c0_104 = arith.constant 0 : index
    %c0_105 = arith.constant 0 : index
    %385 = vector.load %arg0[%384, %c0_104, %c0_105] : memref<8x8x128xf32, #tpu.memory_space<vmem>>, vector<1x8x128xf32>
    %386 = vector.shape_cast %385 : vector<1x8x128xf32> to vector<8x128xf32>
    %387 = vector.extract_strided_slice %386 {offsets = [0, 0], sizes = [8, 32], strides = [1, 1]} : vector<8x128xf32> to vector<8x32xf32>
    %388 = vector.extract_strided_slice %386 {offsets = [0, 32], sizes = [8, 64], strides = [1, 1]} : vector<8x128xf32> to vector<8x64xf32>
    %389 = vector.extract_strided_slice %386 {offsets = [0, 96], sizes = [8, 16], strides = [1, 1]} : vector<8x128xf32> to vector<8x16xf32>
    %390 = vector.extract_strided_slice %386 {offsets = [0, 112], sizes = [8, 16], strides = [1, 1]} : vector<8x128xf32> to vector<8x16xf32>
    %391 = arith.mulf %378, %389 : vector<8x16xf32>
    %cst_106 = arith.constant dense<0.000000e+00> : vector<8x32xf32>
    %392 = tpu.matmul %391, %0, %cst_106 {dimension_numbers = #tpu.dot_dimension_numbers<[1], [0], [0], [1], [0, 0, 1, 1], [], []>} : vector<8x16xf32>, vector<16x32xf32>, vector<8x32xf32> -> vector<8x32xf32>
    %393 = arith.addf %392, %387 : vector<8x32xf32>
    %cst_107 = arith.constant 0.000000e+00 : f32
    %394 = vector.broadcast %cst_107 : f32 to vector<8x32xf32>
    %395 = arith.maximumf %393, %394 : vector<8x32xf32>
    %396 = tpu.concatenate %395, %346 in 1 : vector<8x32xf32>, vector<8x32xf32> -> vector<8x64xf32>
    %cst_108 = arith.constant dense<0.000000e+00> : vector<8x128xf32>
    %397 = tpu.matmul %396, %1, %cst_108 {dimension_numbers = #tpu.dot_dimension_numbers<[1], [0], [0], [1], [0, 0, 1, 1], [], []>} : vector<8x64xf32>, vector<64x128xf32>, vector<8x128xf32> -> vector<8x128xf32>
    %398 = arith.addf %397, %6 : vector<8x128xf32>
    %399 = vector.extract_strided_slice %398 {offsets = [0, 0], sizes = [8, 32], strides = [1, 1]} : vector<8x128xf32> to vector<8x32xf32>
    %400 = arith.negf %399 : vector<8x32xf32>
    %401 = math.exp %400 : vector<8x32xf32>
    %cst_109 = arith.constant 1.000000e+00 : f32
    %402 = vector.broadcast %cst_109 : f32 to vector<8x32xf32>
    %403 = arith.addf %402, %401 : vector<8x32xf32>
    %404 = arith.divf %402, %403 : vector<8x32xf32>
    %405 = vector.extract_strided_slice %398 {offsets = [0, 32], sizes = [8, 32], strides = [1, 1]} : vector<8x128xf32> to vector<8x32xf32>
    %406 = arith.negf %405 : vector<8x32xf32>
    %407 = math.exp %406 : vector<8x32xf32>
    %cst_110 = arith.constant 1.000000e+00 : f32
    %408 = vector.broadcast %cst_110 : f32 to vector<8x32xf32>
    %409 = arith.addf %408, %407 : vector<8x32xf32>
    %410 = arith.divf %408, %409 : vector<8x32xf32>
    %411 = vector.extract_strided_slice %398 {offsets = [0, 64], sizes = [8, 32], strides = [1, 1]} : vector<8x128xf32> to vector<8x32xf32>
    %412 = vector.extract_strided_slice %398 {offsets = [0, 96], sizes = [8, 32], strides = [1, 1]} : vector<8x128xf32> to vector<8x32xf32>
    %413 = arith.mulf %404, %412 : vector<8x32xf32>
    %414 = arith.addf %411, %413 : vector<8x32xf32>
    %415 = math.tanh %414 : vector<8x32xf32>
    %cst_111 = arith.constant 1.000000e+00 : f32
    %416 = vector.broadcast %cst_111 : f32 to vector<8x32xf32>
    %417 = arith.subf %416, %410 : vector<8x32xf32>
    %418 = arith.mulf %417, %415 : vector<8x32xf32>
    %419 = arith.mulf %410, %346 : vector<8x32xf32>
    %420 = arith.addf %418, %419 : vector<8x32xf32>
    %cst_112 = arith.constant dense<0.000000e+00> : vector<8x64xf32>
    %421 = tpu.matmul %420, %2, %cst_112 {dimension_numbers = #tpu.dot_dimension_numbers<[1], [0], [0], [1], [0, 0, 1, 1], [], []>} : vector<8x32xf32>, vector<32x64xf32>, vector<8x64xf32> -> vector<8x64xf32>
    %422 = arith.addf %421, %388 : vector<8x64xf32>
    %cst_113 = arith.constant 0.000000e+00 : f32
    %423 = vector.broadcast %cst_113 : f32 to vector<8x64xf32>
    %424 = arith.maximumf %422, %423 : vector<8x64xf32>
    %cst_114 = arith.constant dense<0.000000e+00> : vector<8x64xf32>
    %425 = tpu.matmul %424, %3, %cst_114 {dimension_numbers = #tpu.dot_dimension_numbers<[1], [0], [0], [1], [0, 0, 1, 1], [], []>} : vector<8x64xf32>, vector<64x64xf32>, vector<8x64xf32> -> vector<8x64xf32>
    %426 = arith.addf %425, %9 : vector<8x64xf32>
    %427 = vector.extract_strided_slice %426 {offsets = [0, 0], sizes = [8, 16], strides = [1, 1]} : vector<8x64xf32> to vector<8x16xf32>
    %428 = vector.extract_strided_slice %426 {offsets = [0, 16], sizes = [8, 16], strides = [1, 1]} : vector<8x64xf32> to vector<8x16xf32>
    %cst_115 = arith.constant 0.000000e+00 : f32
    %429 = vector.broadcast %cst_115 : f32 to vector<8x16xf32>
    %430 = arith.maximumf %428, %429 : vector<8x16xf32>
    %431 = math.absf %428 : vector<8x16xf32>
    %cst_116 = arith.constant 0.000000e+00 : f32
    %432 = vector.broadcast %cst_116 : f32 to vector<8x16xf32>
    %433 = arith.subf %432, %431 : vector<8x16xf32>
    %434 = math.exp %433 : vector<8x16xf32>
    %435 = math.log1p %434 : vector<8x16xf32>
    %436 = arith.addf %430, %435 : vector<8x16xf32>
    %cst_117 = arith.constant 1.000000e-01 : f32
    %437 = vector.broadcast %cst_117 : f32 to vector<8x16xf32>
    %438 = arith.addf %436, %437 : vector<8x16xf32>
    %439 = vector.extract_strided_slice %426 {offsets = [0, 32], sizes = [8, 16], strides = [1, 1]} : vector<8x64xf32> to vector<8x16xf32>
    %440 = vector.extract_strided_slice %426 {offsets = [0, 48], sizes = [8, 16], strides = [1, 1]} : vector<8x64xf32> to vector<8x16xf32>
    %cst_118 = arith.constant 0.000000e+00 : f32
    %441 = vector.broadcast %cst_118 : f32 to vector<8x16xf32>
    %442 = arith.maximumf %440, %441 : vector<8x16xf32>
    %443 = math.absf %440 : vector<8x16xf32>
    %cst_119 = arith.constant 0.000000e+00 : f32
    %444 = vector.broadcast %cst_119 : f32 to vector<8x16xf32>
    %445 = arith.subf %444, %443 : vector<8x16xf32>
    %446 = math.exp %445 : vector<8x16xf32>
    %447 = math.log1p %446 : vector<8x16xf32>
    %448 = arith.addf %442, %447 : vector<8x16xf32>
    %cst_120 = arith.constant 1.000000e-01 : f32
    %449 = vector.broadcast %cst_120 : f32 to vector<8x16xf32>
    %450 = arith.addf %448, %449 : vector<8x16xf32>
    %451 = arith.mulf %450, %390 : vector<8x16xf32>
    %452 = arith.addf %439, %451 : vector<8x16xf32>
    %453 = tpu.concatenate %420, %427, %438, %452, %439, %450, %10 in 1 : vector<8x32xf32>, vector<8x16xf32>, vector<8x16xf32>, vector<8x16xf32>, vector<8x16xf32>, vector<8x16xf32>, vector<8x16xf32> -> vector<8x128xf32>
    %454 = arith.index_cast %c5_i32 : i32 to index
    %c0_121 = arith.constant 0 : index
    %c0_122 = arith.constant 0 : index
    %455 = vector.load %arg4[%454, %c0_121, %c0_122] : memref<8x8x128xf32, #tpu.memory_space<vmem>>, vector<1x8x128xf32>
    %456 = vector.shape_cast %455 : vector<1x8x128xf32> to vector<8x128xf32>
    %457 = vector.shape_cast %453 : vector<8x128xf32> to vector<1x8x128xf32>
    tpu.vector_store %arg4[%454, %c0_121, %c0_122], %457 {strides = array<i32>} : memref<8x8x128xf32, #tpu.memory_space<vmem>>, vector<1x8x128xf32>,
    %c6_i32 = arith.constant 6 : i32
    %458 = arith.index_cast %c6_i32 : i32 to index
    %c0_123 = arith.constant 0 : index
    %c0_124 = arith.constant 0 : index
    %459 = vector.load %arg0[%458, %c0_123, %c0_124] : memref<8x8x128xf32, #tpu.memory_space<vmem>>, vector<1x8x128xf32>
    %460 = vector.shape_cast %459 : vector<1x8x128xf32> to vector<8x128xf32>
    %461 = vector.extract_strided_slice %460 {offsets = [0, 0], sizes = [8, 32], strides = [1, 1]} : vector<8x128xf32> to vector<8x32xf32>
    %462 = vector.extract_strided_slice %460 {offsets = [0, 32], sizes = [8, 64], strides = [1, 1]} : vector<8x128xf32> to vector<8x64xf32>
    %463 = vector.extract_strided_slice %460 {offsets = [0, 96], sizes = [8, 16], strides = [1, 1]} : vector<8x128xf32> to vector<8x16xf32>
    %464 = vector.extract_strided_slice %460 {offsets = [0, 112], sizes = [8, 16], strides = [1, 1]} : vector<8x128xf32> to vector<8x16xf32>
    %465 = arith.mulf %452, %463 : vector<8x16xf32>
    %cst_125 = arith.constant dense<0.000000e+00> : vector<8x32xf32>
    %466 = tpu.matmul %465, %0, %cst_125 {dimension_numbers = #tpu.dot_dimension_numbers<[1], [0], [0], [1], [0, 0, 1, 1], [], []>} : vector<8x16xf32>, vector<16x32xf32>, vector<8x32xf32> -> vector<8x32xf32>
    %467 = arith.addf %466, %461 : vector<8x32xf32>
    %cst_126 = arith.constant 0.000000e+00 : f32
    %468 = vector.broadcast %cst_126 : f32 to vector<8x32xf32>
    %469 = arith.maximumf %467, %468 : vector<8x32xf32>
    %470 = tpu.concatenate %469, %420 in 1 : vector<8x32xf32>, vector<8x32xf32> -> vector<8x64xf32>
    %cst_127 = arith.constant dense<0.000000e+00> : vector<8x128xf32>
    %471 = tpu.matmul %470, %1, %cst_127 {dimension_numbers = #tpu.dot_dimension_numbers<[1], [0], [0], [1], [0, 0, 1, 1], [], []>} : vector<8x64xf32>, vector<64x128xf32>, vector<8x128xf32> -> vector<8x128xf32>
    %472 = arith.addf %471, %6 : vector<8x128xf32>
    %473 = vector.extract_strided_slice %472 {offsets = [0, 0], sizes = [8, 32], strides = [1, 1]} : vector<8x128xf32> to vector<8x32xf32>
    %474 = arith.negf %473 : vector<8x32xf32>
    %475 = math.exp %474 : vector<8x32xf32>
    %cst_128 = arith.constant 1.000000e+00 : f32
    %476 = vector.broadcast %cst_128 : f32 to vector<8x32xf32>
    %477 = arith.addf %476, %475 : vector<8x32xf32>
    %478 = arith.divf %476, %477 : vector<8x32xf32>
    %479 = vector.extract_strided_slice %472 {offsets = [0, 32], sizes = [8, 32], strides = [1, 1]} : vector<8x128xf32> to vector<8x32xf32>
    %480 = arith.negf %479 : vector<8x32xf32>
    %481 = math.exp %480 : vector<8x32xf32>
    %cst_129 = arith.constant 1.000000e+00 : f32
    %482 = vector.broadcast %cst_129 : f32 to vector<8x32xf32>
    %483 = arith.addf %482, %481 : vector<8x32xf32>
    %484 = arith.divf %482, %483 : vector<8x32xf32>
    %485 = vector.extract_strided_slice %472 {offsets = [0, 64], sizes = [8, 32], strides = [1, 1]} : vector<8x128xf32> to vector<8x32xf32>
    %486 = vector.extract_strided_slice %472 {offsets = [0, 96], sizes = [8, 32], strides = [1, 1]} : vector<8x128xf32> to vector<8x32xf32>
    %487 = arith.mulf %478, %486 : vector<8x32xf32>
    %488 = arith.addf %485, %487 : vector<8x32xf32>
    %489 = math.tanh %488 : vector<8x32xf32>
    %cst_130 = arith.constant 1.000000e+00 : f32
    %490 = vector.broadcast %cst_130 : f32 to vector<8x32xf32>
    %491 = arith.subf %490, %484 : vector<8x32xf32>
    %492 = arith.mulf %491, %489 : vector<8x32xf32>
    %493 = arith.mulf %484, %420 : vector<8x32xf32>
    %494 = arith.addf %492, %493 : vector<8x32xf32>
    %cst_131 = arith.constant dense<0.000000e+00> : vector<8x64xf32>
    %495 = tpu.matmul %494, %2, %cst_131 {dimension_numbers = #tpu.dot_dimension_numbers<[1], [0], [0], [1], [0, 0, 1, 1], [], []>} : vector<8x32xf32>, vector<32x64xf32>, vector<8x64xf32> -> vector<8x64xf32>
    %496 = arith.addf %495, %462 : vector<8x64xf32>
    %cst_132 = arith.constant 0.000000e+00 : f32
    %497 = vector.broadcast %cst_132 : f32 to vector<8x64xf32>
    %498 = arith.maximumf %496, %497 : vector<8x64xf32>
    %cst_133 = arith.constant dense<0.000000e+00> : vector<8x64xf32>
    %499 = tpu.matmul %498, %3, %cst_133 {dimension_numbers = #tpu.dot_dimension_numbers<[1], [0], [0], [1], [0, 0, 1, 1], [], []>} : vector<8x64xf32>, vector<64x64xf32>, vector<8x64xf32> -> vector<8x64xf32>
    %500 = arith.addf %499, %9 : vector<8x64xf32>
    %501 = vector.extract_strided_slice %500 {offsets = [0, 0], sizes = [8, 16], strides = [1, 1]} : vector<8x64xf32> to vector<8x16xf32>
    %502 = vector.extract_strided_slice %500 {offsets = [0, 16], sizes = [8, 16], strides = [1, 1]} : vector<8x64xf32> to vector<8x16xf32>
    %cst_134 = arith.constant 0.000000e+00 : f32
    %503 = vector.broadcast %cst_134 : f32 to vector<8x16xf32>
    %504 = arith.maximumf %502, %503 : vector<8x16xf32>
    %505 = math.absf %502 : vector<8x16xf32>
    %cst_135 = arith.constant 0.000000e+00 : f32
    %506 = vector.broadcast %cst_135 : f32 to vector<8x16xf32>
    %507 = arith.subf %506, %505 : vector<8x16xf32>
    %508 = math.exp %507 : vector<8x16xf32>
    %509 = math.log1p %508 : vector<8x16xf32>
    %510 = arith.addf %504, %509 : vector<8x16xf32>
    %cst_136 = arith.constant 1.000000e-01 : f32
    %511 = vector.broadcast %cst_136 : f32 to vector<8x16xf32>
    %512 = arith.addf %510, %511 : vector<8x16xf32>
    %513 = vector.extract_strided_slice %500 {offsets = [0, 32], sizes = [8, 16], strides = [1, 1]} : vector<8x64xf32> to vector<8x16xf32>
    %514 = vector.extract_strided_slice %500 {offsets = [0, 48], sizes = [8, 16], strides = [1, 1]} : vector<8x64xf32> to vector<8x16xf32>
    %cst_137 = arith.constant 0.000000e+00 : f32
    %515 = vector.broadcast %cst_137 : f32 to vector<8x16xf32>
    %516 = arith.maximumf %514, %515 : vector<8x16xf32>
    %517 = math.absf %514 : vector<8x16xf32>
    %cst_138 = arith.constant 0.000000e+00 : f32
    %518 = vector.broadcast %cst_138 : f32 to vector<8x16xf32>
    %519 = arith.subf %518, %517 : vector<8x16xf32>
    %520 = math.exp %519 : vector<8x16xf32>
    %521 = math.log1p %520 : vector<8x16xf32>
    %522 = arith.addf %516, %521 : vector<8x16xf32>
    %cst_139 = arith.constant 1.000000e-01 : f32
    %523 = vector.broadcast %cst_139 : f32 to vector<8x16xf32>
    %524 = arith.addf %522, %523 : vector<8x16xf32>
    %525 = arith.mulf %524, %464 : vector<8x16xf32>
    %526 = arith.addf %513, %525 : vector<8x16xf32>
    %527 = tpu.concatenate %494, %501, %512, %526, %513, %524, %10 in 1 : vector<8x32xf32>, vector<8x16xf32>, vector<8x16xf32>, vector<8x16xf32>, vector<8x16xf32>, vector<8x16xf32>, vector<8x16xf32> -> vector<8x128xf32>
    %528 = arith.index_cast %c6_i32 : i32 to index
    %c0_140 = arith.constant 0 : index
    %c0_141 = arith.constant 0 : index
    %529 = vector.load %arg4[%528, %c0_140, %c0_141] : memref<8x8x128xf32, #tpu.memory_space<vmem>>, vector<1x8x128xf32>
    %530 = vector.shape_cast %529 : vector<1x8x128xf32> to vector<8x128xf32>
    %531 = vector.shape_cast %527 : vector<8x128xf32> to vector<1x8x128xf32>
    tpu.vector_store %arg4[%528, %c0_140, %c0_141], %531 {strides = array<i32>} : memref<8x8x128xf32, #tpu.memory_space<vmem>>, vector<1x8x128xf32>,
    %c7_i32 = arith.constant 7 : i32
    %532 = arith.index_cast %c7_i32 : i32 to index
    %c0_142 = arith.constant 0 : index
    %c0_143 = arith.constant 0 : index
    %533 = vector.load %arg0[%532, %c0_142, %c0_143] : memref<8x8x128xf32, #tpu.memory_space<vmem>>, vector<1x8x128xf32>
    %534 = vector.shape_cast %533 : vector<1x8x128xf32> to vector<8x128xf32>
    %535 = vector.extract_strided_slice %534 {offsets = [0, 0], sizes = [8, 32], strides = [1, 1]} : vector<8x128xf32> to vector<8x32xf32>
    %536 = vector.extract_strided_slice %534 {offsets = [0, 32], sizes = [8, 64], strides = [1, 1]} : vector<8x128xf32> to vector<8x64xf32>
    %537 = vector.extract_strided_slice %534 {offsets = [0, 96], sizes = [8, 16], strides = [1, 1]} : vector<8x128xf32> to vector<8x16xf32>
    %538 = vector.extract_strided_slice %534 {offsets = [0, 112], sizes = [8, 16], strides = [1, 1]} : vector<8x128xf32> to vector<8x16xf32>
    %539 = arith.mulf %526, %537 : vector<8x16xf32>
    %cst_144 = arith.constant dense<0.000000e+00> : vector<8x32xf32>
    %540 = tpu.matmul %539, %0, %cst_144 {dimension_numbers = #tpu.dot_dimension_numbers<[1], [0], [0], [1], [0, 0, 1, 1], [], []>} : vector<8x16xf32>, vector<16x32xf32>, vector<8x32xf32> -> vector<8x32xf32>
    %541 = arith.addf %540, %535 : vector<8x32xf32>
    %cst_145 = arith.constant 0.000000e+00 : f32
    %542 = vector.broadcast %cst_145 : f32 to vector<8x32xf32>
    %543 = arith.maximumf %541, %542 : vector<8x32xf32>
    %544 = tpu.concatenate %543, %494 in 1 : vector<8x32xf32>, vector<8x32xf32> -> vector<8x64xf32>
    %cst_146 = arith.constant dense<0.000000e+00> : vector<8x128xf32>
    %545 = tpu.matmul %544, %1, %cst_146 {dimension_numbers = #tpu.dot_dimension_numbers<[1], [0], [0], [1], [0, 0, 1, 1], [], []>} : vector<8x64xf32>, vector<64x128xf32>, vector<8x128xf32> -> vector<8x128xf32>
    %546 = arith.addf %545, %6 : vector<8x128xf32>
    %547 = vector.extract_strided_slice %546 {offsets = [0, 0], sizes = [8, 32], strides = [1, 1]} : vector<8x128xf32> to vector<8x32xf32>
    %548 = arith.negf %547 : vector<8x32xf32>
    %549 = math.exp %548 : vector<8x32xf32>
    %cst_147 = arith.constant 1.000000e+00 : f32
    %550 = vector.broadcast %cst_147 : f32 to vector<8x32xf32>
    %551 = arith.addf %550, %549 : vector<8x32xf32>
    %552 = arith.divf %550, %551 : vector<8x32xf32>
    %553 = vector.extract_strided_slice %546 {offsets = [0, 32], sizes = [8, 32], strides = [1, 1]} : vector<8x128xf32> to vector<8x32xf32>
    %554 = arith.negf %553 : vector<8x32xf32>
    %555 = math.exp %554 : vector<8x32xf32>
    %cst_148 = arith.constant 1.000000e+00 : f32
    %556 = vector.broadcast %cst_148 : f32 to vector<8x32xf32>
    %557 = arith.addf %556, %555 : vector<8x32xf32>
    %558 = arith.divf %556, %557 : vector<8x32xf32>
    %559 = vector.extract_strided_slice %546 {offsets = [0, 64], sizes = [8, 32], strides = [1, 1]} : vector<8x128xf32> to vector<8x32xf32>
    %560 = vector.extract_strided_slice %546 {offsets = [0, 96], sizes = [8, 32], strides = [1, 1]} : vector<8x128xf32> to vector<8x32xf32>
    %561 = arith.mulf %552, %560 : vector<8x32xf32>
    %562 = arith.addf %559, %561 : vector<8x32xf32>
    %563 = math.tanh %562 : vector<8x32xf32>
    %cst_149 = arith.constant 1.000000e+00 : f32
    %564 = vector.broadcast %cst_149 : f32 to vector<8x32xf32>
    %565 = arith.subf %564, %558 : vector<8x32xf32>
    %566 = arith.mulf %565, %563 : vector<8x32xf32>
    %567 = arith.mulf %558, %494 : vector<8x32xf32>
    %568 = arith.addf %566, %567 : vector<8x32xf32>
    %cst_150 = arith.constant dense<0.000000e+00> : vector<8x64xf32>
    %569 = tpu.matmul %568, %2, %cst_150 {dimension_numbers = #tpu.dot_dimension_numbers<[1], [0], [0], [1], [0, 0, 1, 1], [], []>} : vector<8x32xf32>, vector<32x64xf32>, vector<8x64xf32> -> vector<8x64xf32>
    %570 = arith.addf %569, %536 : vector<8x64xf32>
    %cst_151 = arith.constant 0.000000e+00 : f32
    %571 = vector.broadcast %cst_151 : f32 to vector<8x64xf32>
    %572 = arith.maximumf %570, %571 : vector<8x64xf32>
    %cst_152 = arith.constant dense<0.000000e+00> : vector<8x64xf32>
    %573 = tpu.matmul %572, %3, %cst_152 {dimension_numbers = #tpu.dot_dimension_numbers<[1], [0], [0], [1], [0, 0, 1, 1], [], []>} : vector<8x64xf32>, vector<64x64xf32>, vector<8x64xf32> -> vector<8x64xf32>
    %574 = arith.addf %573, %9 : vector<8x64xf32>
    %575 = vector.extract_strided_slice %574 {offsets = [0, 0], sizes = [8, 16], strides = [1, 1]} : vector<8x64xf32> to vector<8x16xf32>
    %576 = vector.extract_strided_slice %574 {offsets = [0, 16], sizes = [8, 16], strides = [1, 1]} : vector<8x64xf32> to vector<8x16xf32>
    %cst_153 = arith.constant 0.000000e+00 : f32
    %577 = vector.broadcast %cst_153 : f32 to vector<8x16xf32>
    %578 = arith.maximumf %576, %577 : vector<8x16xf32>
    %579 = math.absf %576 : vector<8x16xf32>
    %cst_154 = arith.constant 0.000000e+00 : f32
    %580 = vector.broadcast %cst_154 : f32 to vector<8x16xf32>
    %581 = arith.subf %580, %579 : vector<8x16xf32>
    %582 = math.exp %581 : vector<8x16xf32>
    %583 = math.log1p %582 : vector<8x16xf32>
    %584 = arith.addf %578, %583 : vector<8x16xf32>
    %cst_155 = arith.constant 1.000000e-01 : f32
    %585 = vector.broadcast %cst_155 : f32 to vector<8x16xf32>
    %586 = arith.addf %584, %585 : vector<8x16xf32>
    %587 = vector.extract_strided_slice %574 {offsets = [0, 32], sizes = [8, 16], strides = [1, 1]} : vector<8x64xf32> to vector<8x16xf32>
    %588 = vector.extract_strided_slice %574 {offsets = [0, 48], sizes = [8, 16], strides = [1, 1]} : vector<8x64xf32> to vector<8x16xf32>
    %cst_156 = arith.constant 0.000000e+00 : f32
    %589 = vector.broadcast %cst_156 : f32 to vector<8x16xf32>
    %590 = arith.maximumf %588, %589 : vector<8x16xf32>
    %591 = math.absf %588 : vector<8x16xf32>
    %cst_157 = arith.constant 0.000000e+00 : f32
    %592 = vector.broadcast %cst_157 : f32 to vector<8x16xf32>
    %593 = arith.subf %592, %591 : vector<8x16xf32>
    %594 = math.exp %593 : vector<8x16xf32>
    %595 = math.log1p %594 : vector<8x16xf32>
    %596 = arith.addf %590, %595 : vector<8x16xf32>
    %cst_158 = arith.constant 1.000000e-01 : f32
    %597 = vector.broadcast %cst_158 : f32 to vector<8x16xf32>
    %598 = arith.addf %596, %597 : vector<8x16xf32>
    %599 = arith.mulf %598, %538 : vector<8x16xf32>
    %600 = arith.addf %587, %599 : vector<8x16xf32>
    %601 = tpu.concatenate %568, %575, %586, %600, %587, %598, %10 in 1 : vector<8x32xf32>, vector<8x16xf32>, vector<8x16xf32>, vector<8x16xf32>, vector<8x16xf32>, vector<8x16xf32>, vector<8x16xf32> -> vector<8x128xf32>
    %602 = arith.index_cast %c7_i32 : i32 to index
    %c0_159 = arith.constant 0 : index
    %c0_160 = arith.constant 0 : index
    %603 = vector.load %arg4[%602, %c0_159, %c0_160] : memref<8x8x128xf32, #tpu.memory_space<vmem>>, vector<1x8x128xf32>
    %604 = vector.shape_cast %603 : vector<1x8x128xf32> to vector<8x128xf32>
    %605 = vector.shape_cast %601 : vector<8x128xf32> to vector<1x8x128xf32>
    tpu.vector_store %arg4[%602, %c0_159, %c0_160], %605 {strides = array<i32>} : memref<8x8x128xf32, #tpu.memory_space<vmem>>, vector<1x8x128xf32>,
    %c8_i32 = arith.constant 8 : i32
    return
  }
}

</mosaic_0001>

<bundles_post_ra>
// kernel: tpu_custom_call.1
= control target key start
LH: loop header
LB: loop body
LE: loop exit
PB: predicated region body
PF: predicated region fallthrough
CT: control target
= control target key end

     0   :  { %9 = vsyncpa [#allocation3], 0  ;;  %s5128_s0 = inlined_call_operand.hbm [shape: f32[8,8,128], index: 0, kind: input, shape index: {}]   ;;  %s5129_s1 = inlined_call_operand.hbm [shape: f32[8,48], index: 1, kind: input, shape index: {}]   ;;  %s5130_s2 = inlined_call_operand.hbm [shape: f32[176,128], index: 2, kind: input, shape index: {}]   ;;  %s5131_s3 = inlined_call_operand.vmem [shape: f32[1,192], index: 3, kind: input, shape index: {}]   ;;  %s5132_s4 = inlined_call_operand.hbm [shape: f32[8,8,128], index: 4, kind: output, shape index: {}]  }
   0x1   :  { %10 = vsyncpa [#allocation6], 0 }
   0x2   :  { %11 = vsyncpa [#allocation4], 0  ;;  %s4088_s15 = smov [#allocation5]   ;;  %s4089_s17 = smov [#allocation2]  }
   0x3   :  { %s30_s16 = sshll.u32 %s4088_s15, 4  ;;  %s17_s18 = sshll.u32 %s4089_s17, 4  ;;  %s31_s16 = int_to_ptr.vmem [resolvable:$true] %s30_s16  ;;  %s18_s18 = int_to_ptr.vmem [resolvable:$true] %s17_s18 }
   0x4   :  { %s4010_s19 = scalar_lea.vmem %s31_s16, 128  ;;  %p4015_p1 = scmp.lt.s32.totalorder %s31_s16, %s31_s16 }
   0x5   :  { %p4011_p0 = scmp.ne.s32.totalorder %s31_s16, %s4010_s19  ;;  %p4016_p2 = scmp.lt.s32.totalorder %s4010_s19, %s4010_s19 }
   0x7   :  { %p4017_p3 = por %p4016_p2, %p4015_p1 }
   0x9   :  { %p4018_p4 = pnand %p4017_p3, %p4011_p0 }
   0xb   :  { %4021 = shalt.err (!%p4018_p4)
}
   0xc   :  { %33 = dma.hbm_to_vmem [thread:$0]  %s5129_s1, 128, %s31_s16, [#allocation6]  }
   0xd   :  { %s4030_s22 = scalar_lea.vmem %s18_s18, 1024  ;;  %p4035_p6 = scmp.lt.s32.totalorder %s18_s18, %s18_s18 }
   0xe   :  { %p4031_p5 = scmp.ne.s32.totalorder %s18_s18, %s4030_s22  ;;  %p4036_p7 = scmp.lt.s32.totalorder %s4030_s22, %s4030_s22 }
  0x10   :  { %p4037_p8 = por %p4036_p7, %p4035_p6 }
  0x12   :  { %p4038_p9 = pnand %p4037_p8, %p4031_p5 }
  0x14   :  { %4041 = shalt.err (!%p4038_p9)
}
  0x15   :  { %s4090_s23 = smov 128   ;;  %s4091_s24 = smov 8  }
  0x16   :  { %23 = dma.hbm_to_vmem [thread:$0]  %s5128_s0, 1024, %s18_s18, [#allocation3], %s4090_s23, %s4090_s23, %s4091_s24  }
  0x17   :  { %s4092_s27 = smov [#allocation7]  }
  0x18   :  { %s39_s28 = sshll.u32 %s4092_s27, 4  ;;  %s40_s28 = int_to_ptr.vmem [resolvable:$true] %s39_s28 }
  0x19   :  { %s4050_s1 = scalar_lea.vmem %s40_s28, 2816  ;;  %p4055_p11 = scmp.lt.s32.totalorder %s40_s28, %s40_s28 }
  0x1a   :  { %p4051_p10 = scmp.ne.s32.totalorder %s40_s28, %s4050_s1  ;;  %p4056_p12 = scmp.lt.s32.totalorder %s4050_s1, %s4050_s1 }
  0x1c   :  { %p4057_p13 = por %p4056_p12, %p4055_p11 }
  0x1e   :  { %p4058_p0 = pnand %p4057_p13, %p4051_p10 }
  0x20   :  { %4061 = shalt.err (!%p4058_p0)
}
  0x21   :  { %45 = dma.hbm_to_vmem [thread:$0]  %s5130_s2, 2816, %s40_s28, [#allocation6], %s4090_s23, %s4090_s23, %s4091_s24  }
  0x22   :  { %4082 = dma.done.wait [#allocation3], 1024  }
  0x23   :  { %4083 = vsyncadd [#allocation3], 4294966272 }
  0x24   :  { %4084 = dma.done.wait [#allocation6], 2944  }
  0x25   :  { %4085 = vsyncadd [#allocation6], 4294964352  ;;  %v5133_v0 = vmov 0.0   ;;  %vm4094_vm0 = vmmov 0   ;;  %v4148_v1 = vld [vmem:[#allocation2] sm:$0xff]  ;;  %v4150_v2 = vld [vmem:[#allocation7 + $0x8] sm:$0xff] }
  0x26   :  { %3436 = vmatprep.subr.mxu0 %v5133_v0  ;;  %3440 = vmatprep.mubr.msk.f32.mxu0 %vm4094_vm0, %v5133_v0  ;;  %s4095_s0 = smov 32   ;;  %v4155_v3 = vld [vmem:[#allocation7] sm:$0xff]  ;;  %v4157_v4 = vld [vmem:[#allocation7 + $0x48] sm:$0xff]  ;;  %v4165_v6 = vld [vmem:[#allocation7 + $0x38] sm:$0xff]  ;;  %s4096_s2 = smov 16   ;;  %vm100_vm1 = vcmask 130048  }
  0x27   :  { %3443 = vmatprep.subr.mxu1 %v5133_v0  ;;  %3459 = vmatprep.mubr.msk.f32.mxu1 %vm4094_vm0, %v5133_v0  ;;  %v4159_v5 = vld [vmem:[#allocation7 + $0x40] sm:$0xff]  ;;  %v93_v7 = vld [vmem:[#allocation5] sm:$0xff]  ;;  %v4170_v8 = vld [vmem:[#allocation7 + $0x30] sm:$0xff]  ;;  %vm179_vm2 = vcmask 261120   ;;  %vm181_vm3 = vcmask 523264   ;;  %s4097_s7 = smov 64  }
  0x28   :  { %96 = vrot.lane.b32.xlu0 %v4148_v1, %s4095_s0  ;;  %3437 = vmatpush3.msra.mxu0 %v4150_v2  ;;  %v4174_v9 = vld [vmem:[#allocation7 + $0x28] sm:$0xff]  ;;  %v4183_v12 = vld [vmem:[#allocation7 + $0x20] sm:$0xff]  ;;  %v4187_v13 = vld [vmem:[#allocation7 + $0x18] sm:$0xff]  ;;  %s4098_s8 = smov 96   ;;  %s4099_s11 = smov 112   ;;  %vm477_vm11 = vcmask 392192  }
  0x29   :  { %3438 = vmatprep.subr.mxu0 %v5133_v0  ;;  %3444 = vmatpush3.msra.mxu1 %v4157_v4  ;;  %v4190_v14 = vld [vmem:[#allocation7 + $0x10] sm:$0xff]  ;;  %v4203_v21 = vld [vmem:[%s5131_s3] ss:$0 sm:$0xff]  ;;  %v4208_v33 = vld [vmem:[#allocation7 + $0x68] sm:$0xff]  ;;  %vm480_vm12 = vcmask 654336   ;;  %vm482_vm13 = vcmask 785408  }
  0x2a   :  { %3439 = vmatpush3.msra.mxu0 %v4155_v3  ;;  %3445 = vmatprep.subr.mxu1 %v5133_v0  ;;  %v4210_v34 = vld [vmem:[#allocation7 + $0x60] sm:$0xff]  ;;  %v4214_v35 = vld [vmem:[#allocation7 + $0x58] sm:$0xff]  ;;  %v4218_v36 = vld [vmem:[#allocation7 + $0x50] sm:$0xff]  ;;  %vm484_vm14 = vcmask 916480   ;;  %s4101_s16 = smov [#allocation8]  }
  0x2b   :  { %3446 = vmatpush3.msra.mxu1 %v4159_v5  ;;  %3473 = vmatprep.subr.mxu0 %v5133_v0  ;;  %v4227_v38 = vld [vmem:[#allocation7 + $0xa8] sm:$0xff]  ;;  %v4229_v39 = vld [vmem:[#allocation7 + $0xa0] sm:$0xff]  ;;  %v4233_v40 = vld [vmem:[#allocation7 + $0x98] sm:$0xff]  ;;  %s3173_s17 = sshll.u32 %s4101_s16, 4  ;;  %s3174_s17 = int_to_ptr.vmem [resolvable:$true] %s3173_s17 }
  0x2c   :  { %176 = vrot.lane.b32.xlu0 %v93_v7, %s4096_s2  ;;  %3447 = vmatprep.subr.mxu1 %v5133_v0  ;;  %v4237_v41 = vld [vmem:[#allocation7 + $0x90] sm:$0xff]  ;;  %v4241_v42 = vld [vmem:[#allocation7 + $0x88] sm:$0xff]  ;;  %v4245_v45 = vld [vmem:[#allocation7 + $0x80] sm:$0xff]  ;;  %s4062_s18 = scalar_lea.vmem %s3174_s17, 1024  ;;  %p4067_p2 = scmp.lt.s32.totalorder %s3174_s17, %s3174_s17 }
  0x2d   :  { %3448 = vmatpush3.msra.mxu1 %v4165_v6  ;;  %v4267_v50 = vld [vmem:[#allocation7 + $0x78] sm:$0xff]  ;;  %v4271_v51 = vld [vmem:[#allocation7 + $0x70] sm:$0xff]  ;;  %v4286_v57 = vld [vmem:[#allocation2 + $0x8] sm:$0xff]  ;;  %p4063_p1 = scmp.ne.s32.totalorder %s3174_s17, %s4062_s18  ;;  %p4068_p3 = scmp.lt.s32.totalorder %s4062_s18, %s4062_s18 }
  0x2e   :  { %3449 = vmatprep.subr.mxu1 %v5133_v0  ;;  %v4293_v58 = vld [vmem:[%s5131_s3 + $0x1] ss:$0 sm:$0xff] }
  0x2f   :  { %3450 = vmatpush3.msra.mxu1 %v4170_v8  ;;  %p4069_p4 = por %p4068_p3, %p4067_p2 }
  0x30   :  { %3451 = vmatprep.subr.mxu1 %v5133_v0 }
  0x31   :  { %3452 = vmatpush3.msra.mxu1 %v4174_v9  ;;  %p4070_p5 = pnand %p4069_p4, %p4063_p1 }
  0x32   :  { %3453 = vmatprep.subr.mxu1 %v5133_v0 }
  0x33   :  { %3454 = vmatpush3.msra.mxu1 %v4183_v12 }
  0x34   :  { %3455 = vmatprep.subr.mxu1 %v5133_v0 }
  0x35   :  { %3456 = vmatpush3.msra.mxu1 %v4187_v13 }
  0x36   :  { %3457 = vmatprep.subr.mxu1 %v5133_v0 }
  0x37   :  { %3458 = vmatpush3.msra.mxu1 %v4190_v14 }
  0x38   :  { %3462 = vmatprep.subr.mxu1 %v5133_v0 }
  0x9a   :  { %v97_v10 = vpop.permute.xlu0 %96 }
  0x9b   :  { %v99_v11 = vmul.f32 %v97_v10, %v93_v7 }
  0x9d   :  { %3441 = vmatmul.mubr.msk.f32.vlgmr.msra.gmra.mxu0 %vm100_vm1, %v99_v11 }
  0x9e   :  { %3489 = vmatprep.mubr.msk.f32.mxu0 %vm4094_vm0, %v5133_v0  ;;  %v177_v18 = vpop.permute.xlu0 %176  ;;  %3474 = vmatpush3.msra.mxu0 %v4227_v38 }
  0x9f   :  { %3475 = vmatprep.subr.mxu0 %v5133_v0 }
  0xa0   :  { %3476 = vmatpush3.msra.mxu0 %v4229_v39 }
  0xa1   :  { %3477 = vmatprep.subr.mxu0 %v5133_v0 }
  0xa2   :  { %3478 = vmatpush3.msra.mxu0 %v4233_v40 }
  0xa3   :  { %3479 = vmatprep.subr.mxu0 %v5133_v0 }
  0xa4   :  { %3480 = vmatpush3.msra.mxu0 %v4237_v41 }
  0xa5   :  { %3481 = vmatprep.subr.mxu0 %v5133_v0 }
  0xa6   :  { %3482 = vmatpush3.msra.mxu0 %v4241_v42 }
  0xa7   :  { %3483 = vmatprep.subr.mxu0 %v5133_v0 }
  0xa8   :  { %3484 = vmatpush3.msra.mxu0 %v4245_v45 }
  0xa9   :  { %3485 = vmatprep.subr.mxu0 %v5133_v0 }
  0xaa   :  { %3486 = vmatpush3.msra.mxu0 %v4267_v50 }
  0xab   :  { %3487 = vmatprep.subr.mxu0 %v5133_v0 }
  0xac   :  { %3488 = vmatpush3.msra.mxu0 %v4271_v51 }
  0xad   :  { %3518 = vmatprep.subr.mxu0 %v5133_v0 }
 0x15d   :  { %v170_v15 = vpop.f32.mrf.mxu0 }
 0x15e   :  { %v171_v16 = vadd.f32 %v170_v15, %v4148_v1 }
 0x15f   :  { %v3442_v17 = vpop.f32.mrf.mxu0 }
 0x160   :  { %v174_v19 = vmax.f32 %v171_v16, 0.0 }
 0x162   :  { %v180_v20 = vsel %vm179_vm2, %v174_v19, %v177_v18 }
 0x163   :  { %3460 = vmatmul.mubr.msk.f32.vlgmr.msra.gmra.mxu1 %vm181_vm3, %v180_v20 }
 0x164   :  { %3470 = vmatprep.mubr.msk.f32.mxu1 %vm4094_vm0, %v5133_v0  ;;  %3463 = vmatpush3.msra.mxu1 %v4208_v33 }
 0x165   :  { %3464 = vmatprep.subr.mxu1 %v5133_v0 }
 0x166   :  { %3465 = vmatpush3.msra.mxu1 %v4210_v34 }
 0x167   :  { %3466 = vmatprep.subr.mxu1 %v5133_v0 }
 0x168   :  { %3467 = vmatpush3.msra.mxu1 %v4214_v35 }
 0x169   :  { %3468 = vmatprep.subr.mxu1 %v5133_v0 }
 0x16a   :  { %3469 = vmatpush3.msra.mxu1 %v4218_v36 }
 0x16b   :  { %3492 = vmatprep.subr.mxu1 %v5133_v0 }
 0x223   :  { %v251_v22 = vpop.f32.mrf.mxu1 }
 0x224   :  { %v252_v23 = vadd.f32 %v4203_v21, %v251_v22 }
 0x225   :  { %v3461_v24 = vpop.f32.mrf.mxu1 }
 0x226   :  { %262 = vrot.lane.b32.xlu1 %v252_v23, %s4095_s0  ;;  %v3190_v25 = vmul.f32 -1.442695, %v252_v23 }
 0x228   :  { %3898 = vpow2.f32 %v3190_v25 }
 0x235   :  { %v3899_v26 = vpop.eup %3898 }
 0x236   :  { %v258_v27 = vadd.f32 1.0, %v3899_v26 }
 0x238   :  { %3900 = vrcp.f32 %v258_v27 }
 0x245   :  { %v3901_v28 = vpop.eup %3900 }
 0x246   :  { %v272_v43 = vsub.f32 1.0, %v3901_v28  ;;  %v278_v46 = vmul.f32 %v3901_v28, %v177_v18 }
 0x298   :  { %v263_v29 = vpop.permute.xlu1 %262 }
 0x299   :  { %v265_v30 = vmul.f32 %v3901_v28, %v263_v29 }
 0x29b   :  { %267 = vrot.lane.b32.xlu1 %v265_v30, %s4097_s7 }
 0x30d   :  { %v268_v31 = vpop.permute.xlu1 %267 }
 0x30e   :  { %v270_v32 = vadd.f32 %v268_v31, %v252_v23 }
 0x310   :  { %3902 = vtanh.f32 %v270_v32 }
 0x31d   :  { %v3903_v37 = vpop.eup %3902 }
 0x31e   :  { %274 = vrot.lane.b32.xlu0 %v3903_v37, %s4098_s8 }
 0x322   :  { %283 = vrot.lane.b32.xlu0 %v4148_v1, %s4098_s8 }
 0x390   :  { %v275_v44 = vpop.permute.xlu0 %274 }
 0x391   :  { %v277_v47 = vmul.f32 %v275_v44, %v272_v43 }
 0x393   :  { %v4249_v48 = vadd.f32 %v278_v46, %v277_v47 }
 0x394   :  { %v284_v52 = vpop.permute.xlu0 %283 }
 0x395   :  { %281 = vrot.lane.b32.xlu1 %v4249_v48, %s4098_s8 }
 0x399   :  { %448 = vrot.lane.b32.xlu1 %v4148_v1, %s4097_s7 }
 0x39d   :  { %490 = vrot.lane.b32.xlu1 %v4286_v57, %s4097_s7 }
 0x407   :  { %v4257_v49 = vpop.permute.xlu1 %281 }
 0x408   :  { %3471 = vmatmul.mubr.msk.f32.vlgmr.msra.gmra.mxu1 %vm179_vm2, %v4257_v49 }
 0x409   :  { %3493 = vmatpush3.msra.mxu1 %v4150_v2  ;;  %3496 = vmatprep.mubr.msk.f32.mxu1 %vm4094_vm0, %v5133_v0 }
 0x40a   :  { %3494 = vmatprep.subr.mxu1 %v5133_v0 }
 0x40b   :  { %3495 = vmatpush3.msra.mxu1 %v4155_v3  ;;  %v449_v24 = vpop.permute.xlu1 %448 }
 0x40c   :  { %3499 = vmatprep.subr.mxu1 %v5133_v0 }
 0x40f   :  { %v4304_v28 = vpop.permute.xlu1 %490 }
 0x4c8   :  { %v354_v53 = vpop.f32.mrf.mxu1 }
 0x4c9   :  { %v355_v54 = vadd.f32 %v354_v53, %v284_v52 }
 0x4ca   :  { %v3472_v55 = vpop.f32.mrf.mxu1 }
 0x4cb   :  { %v358_v56 = vmax.f32 %v355_v54, 0.0 }
 0x4cd   :  { %3490 = vmatmul.mubr.msk.f32.vlgmr.msra.gmra.mxu0 %vm181_vm3, %v358_v56 }
 0x4ce   :  { %3519 = vmatpush3.msra.mxu0 %v4208_v33  ;;  %3526 = vmatprep.mubr.msk.f32.mxu0 %vm4094_vm0, %v5133_v0 }
 0x4cf   :  { %3520 = vmatprep.subr.mxu0 %v5133_v0 }
 0x4d0   :  { %3521 = vmatpush3.msra.mxu0 %v4210_v34 }
 0x4d1   :  { %3522 = vmatprep.subr.mxu0 %v5133_v0 }
 0x4d2   :  { %3523 = vmatpush3.msra.mxu0 %v4214_v35 }
 0x4d3   :  { %3524 = vmatprep.subr.mxu0 %v5133_v0 }
 0x4d4   :  { %3525 = vmatpush3.msra.mxu0 %v4218_v36 }
 0x4d5   :  { %3529 = vmatprep.subr.mxu0 %v5133_v0 }
 0x58d   :  { %v428_v59 = vpop.f32.mrf.mxu0 }
 0x58e   :  { %v4296_v60 = vadd.f32 %v4293_v58, %v428_v59 }
 0x58f   :  { %v3491_v61 = vpop.f32.mrf.mxu0 }
 0x590   :  { %v433_v62 = vand.u32 2147483647, %v4296_v60  ;;  %v432_v20 = vmax.f32 %v4296_v60, 0.0 }
 0x592   :  { %v434_v63 = vsub.f32 0.0, %v433_v62 }
 0x594   :  { %v435_v1 = vmul.f32 1.442695, %v434_v63 }
 0x596   :  { %3904 = vpow2.f32 %v435_v1 }
 0x5a3   :  { %v3905_v7 = vpop.eup %3904 }
 0x5a4   :  { %v437_v10 = vadd.f32 1.0, %v3905_v7  ;;  %v440_v11 = vmul.f32 -0.5, %v3905_v7  ;;  %v443_v16 = vand.u32 2147483647, %v3905_v7 }
 0x5a6   :  { %3906 = vlog2.f32 %v437_v10  ;;  %v441_v15 = vadd.f32 1.0, %v440_v11  ;;  %vm444_vm4 = vcmp.lt.f32.partialorder %v443_v16, 0.0004427343 }
 0x5a8   :  { %v442_v19 = vmul.f32 %v3905_v7, %v441_v15 }
 0x5b3   :  { %v3907_v17 = vpop.eup %3906 }
 0x5b4   :  { %v439_v18 = vmul.f32 0.6931472, %v3907_v17 }
 0x5b6   :  { %v445_v22 = vsel %vm444_vm4, %v442_v19, %v439_v18 }
 0x5b7   :  { %v446_v23 = vadd.f32 %v445_v22, %v432_v20 }
 0x5b9   :  { %v4300_v25 = vadd.f32 0.1, %v446_v23  ;;  %v4385_v23 = vld [vmem:[#allocation2 + $0x10] sm:$0xff] }
 0x5bb   :  { %v451_v26 = vmul.f32 %v449_v24, %v4300_v25 }
 0x5bd   :  { %453 = vrot.lane.b32.xlu0 %v451_v26, %s4099_s11 }
 0x62f   :  { %v454_v27 = vpop.permute.xlu0 %453 }
 0x630   :  { %v4307_v29 = vadd.f32 %v454_v27, %v4296_v60 }
 0x632   :  { %v493_v30 = vmul.f32 %v4304_v28, %v4307_v29 }
 0x634   :  { %495 = vrot.lane.b32.xlu0 %v493_v30, %s4098_s8 }
 0x6a6   :  { %v496_v31 = vpop.permute.xlu0 %495 }
 0x6a7   :  { %3497 = vmatmul.mubr.msk.f32.vlgmr.msra.gmra.mxu1 %vm100_vm1, %v496_v31 }
 0x6a8   :  { %3500 = vmatpush3.msra.mxu1 %v4157_v4  ;;  %3515 = vmatprep.mubr.msk.f32.mxu1 %vm4094_vm0, %v5133_v0 }
 0x6a9   :  { %3501 = vmatprep.subr.mxu1 %v5133_v0 }
 0x6aa   :  { %3502 = vmatpush3.msra.mxu1 %v4159_v5 }
 0x6ab   :  { %3503 = vmatprep.subr.mxu1 %v5133_v0 }
 0x6ac   :  { %3504 = vmatpush3.msra.mxu1 %v4165_v6 }
 0x6ad   :  { %3505 = vmatprep.subr.mxu1 %v5133_v0 }
 0x6ae   :  { %3506 = vmatpush3.msra.mxu1 %v4170_v8 }
 0x6af   :  { %3507 = vmatprep.subr.mxu1 %v5133_v0 }
 0x6b0   :  { %3508 = vmatpush3.msra.mxu1 %v4174_v9 }
 0x6b1   :  { %3509 = vmatprep.subr.mxu1 %v5133_v0 }
 0x6b2   :  { %3510 = vmatpush3.msra.mxu1 %v4183_v12 }
 0x6b3   :  { %3511 = vmatprep.subr.mxu1 %v5133_v0 }
 0x6b4   :  { %3512 = vmatpush3.msra.mxu1 %v4187_v13 }
 0x6b5   :  { %3513 = vmatprep.subr.mxu1 %v5133_v0 }
 0x6b6   :  { %3514 = vmatpush3.msra.mxu1 %v4190_v14 }
 0x6b7   :  { %3548 = vmatprep.subr.mxu1 %v5133_v0 }
 0x767   :  { %v565_v32 = vpop.f32.mrf.mxu1 }
 0x768   :  { %v566_v37 = vadd.f32 %v565_v32, %v4286_v57 }
 0x769   :  { %v3498_v43 = vpop.f32.mrf.mxu1 }
 0x76a   :  { %v569_v44 = vmax.f32 %v566_v37, 0.0 }
 0x76c   :  { %v570_v46 = vsel %vm179_vm2, %v569_v44, %v4249_v48 }
 0x76d   :  { %3516 = vmatmul.mubr.msk.f32.vlgmr.msra.gmra.mxu1 %vm181_vm3, %v570_v46 }
 0x76e   :  { %3549 = vmatpush3.msra.mxu1 %v4150_v2  ;;  %3552 = vmatprep.mubr.msk.f32.mxu1 %vm4094_vm0, %v5133_v0 }
 0x76f   :  { %3550 = vmatprep.subr.mxu1 %v5133_v0 }
 0x770   :  { %3551 = vmatpush3.msra.mxu1 %v4155_v3 }
 0x771   :  { %3555 = vmatprep.subr.mxu1 %v5133_v0 }
 0x82d   :  { %v640_v47 = vpop.f32.mrf.mxu1 }
 0x82e   :  { %v641_v52 = vadd.f32 %v4203_v21, %v640_v47 }
 0x82f   :  { %v3517_v53 = vpop.f32.mrf.mxu1 }
 0x830   :  { %651 = vrot.lane.b32.xlu1 %v641_v52, %s4095_s0  ;;  %v3195_v54 = vmul.f32 -1.442695, %v641_v52 }
 0x832   :  { %3908 = vpow2.f32 %v3195_v54 }
 0x83f   :  { %v3909_v55 = vpop.eup %3908 }
 0x840   :  { %v647_v56 = vadd.f32 1.0, %v3909_v55 }
 0x842   :  { %3910 = vrcp.f32 %v647_v56 }
 0x84f   :  { %v3911_v59 = vpop.eup %3910 }
 0x850   :  { %v661_v10 = vsub.f32 1.0, %v3911_v59  ;;  %v667_v15 = vmul.f32 %v3911_v59, %v4249_v48 }
 0x8a2   :  { %v652_v61 = vpop.permute.xlu1 %651 }
 0x8a3   :  { %v654_v62 = vmul.f32 %v3911_v59, %v652_v61 }
 0x8a5   :  { %656 = vrot.lane.b32.xlu0 %v654_v62, %s4097_s7 }
 0x917   :  { %v657_v63 = vpop.permute.xlu0 %656 }
 0x918   :  { %v659_v1 = vadd.f32 %v657_v63, %v641_v52 }
 0x91a   :  { %3912 = vtanh.f32 %v659_v1 }
 0x927   :  { %v3913_v7 = vpop.eup %3912 }
 0x928   :  { %663 = vrot.lane.b32.xlu1 %v3913_v7, %s4098_s8 }
 0x92c   :  { %672 = vrot.lane.b32.xlu1 %v4286_v57, %s4098_s8 }
 0x930   :  { %873 = vrot.lane.b32.xlu1 %v4385_v23, %s4097_s7 }
 0x99a   :  { %v664_v11 = vpop.permute.xlu1 %663 }
 0x99b   :  { %v666_v16 = vmul.f32 %v664_v11, %v661_v10 }
 0x99d   :  { %v4348_v17 = vadd.f32 %v667_v15, %v666_v16 }
 0x99e   :  { %v673_v48 = vpop.permute.xlu1 %672 }
 0x99f   :  { %670 = vrot.lane.b32.xlu0 %v4348_v17, %s4098_s8 }
 0x9a2   :  { %v4399_v1 = vpop.permute.xlu1 %873 }
 0xa11   :  { %v4352_v18 = vpop.permute.xlu0 %670 }
 0xa12   :  { %3527 = vmatmul.mubr.msk.f32.vlgmr.msra.gmra.mxu0 %vm179_vm2, %v4352_v18 }
 0xa13   :  { %3530 = vmatpush3.msra.mxu0 %v4227_v38  ;;  %3545 = vmatprep.mubr.msk.f32.mxu0 %vm4094_vm0, %v5133_v0 }
 0xa14   :  { %3531 = vmatprep.subr.mxu0 %v5133_v0 }
 0xa15   :  { %3532 = vmatpush3.msra.mxu0 %v4229_v39 }
 0xa16   :  { %3533 = vmatprep.subr.mxu0 %v5133_v0 }
 0xa17   :  { %3534 = vmatpush3.msra.mxu0 %v4233_v40 }
 0xa18   :  { %3535 = vmatprep.subr.mxu0 %v5133_v0 }
 0xa19   :  { %3536 = vmatpush3.msra.mxu0 %v4237_v41 }
 0xa1a   :  { %3537 = vmatprep.subr.mxu0 %v5133_v0 }
 0xa1b   :  { %3538 = vmatpush3.msra.mxu0 %v4241_v42 }
 0xa1c   :  { %3539 = vmatprep.subr.mxu0 %v5133_v0 }
 0xa1d   :  { %3540 = vmatpush3.msra.mxu0 %v4245_v45 }
 0xa1e   :  { %3541 = vmatprep.subr.mxu0 %v5133_v0 }
 0xa1f   :  { %3542 = vmatpush3.msra.mxu0 %v4267_v50 }
 0xa20   :  { %3543 = vmatprep.subr.mxu0 %v5133_v0 }
 0xa21   :  { %3544 = vmatpush3.msra.mxu0 %v4271_v51 }
 0xa22   :  { %3574 = vmatprep.subr.mxu0 %v5133_v0 }
 0xad2   :  { %v743_v57 = vpop.f32.mrf.mxu0 }
 0xad3   :  { %v744_v19 = vadd.f32 %v743_v57, %v673_v48 }
 0xad4   :  { %v3528_v20 = vpop.f32.mrf.mxu0 }
 0xad5   :  { %v747_v22 = vmax.f32 %v744_v19, 0.0 }
 0xad7   :  { %3546 = vmatmul.mubr.msk.f32.vlgmr.msra.gmra.mxu0 %vm181_vm3, %v747_v22 }
 0xad8   :  { %3575 = vmatpush3.msra.mxu0 %v4208_v33  ;;  %3582 = vmatprep.mubr.msk.f32.mxu0 %vm4094_vm0, %v5133_v0 }
 0xad9   :  { %3576 = vmatprep.subr.mxu0 %v5133_v0 }
 0xada   :  { %3577 = vmatpush3.msra.mxu0 %v4210_v34 }
 0xadb   :  { %3578 = vmatprep.subr.mxu0 %v5133_v0 }
 0xadc   :  { %3579 = vmatpush3.msra.mxu0 %v4214_v35 }
 0xadd   :  { %3580 = vmatprep.subr.mxu0 %v5133_v0 }
 0xade   :  { %3581 = vmatpush3.msra.mxu0 %v4218_v36 }
 0xadf   :  { %3604 = vmatprep.subr.mxu0 %v5133_v0 }
 0xb97   :  { %v817_v24 = vpop.f32.mrf.mxu0 }
 0xb98   :  { %v4390_v26 = vadd.f32 %v4293_v58, %v817_v24 }
 0xb99   :  { %v3547_v27 = vpop.f32.mrf.mxu0 }
 0xb9a   :  { %v822_v30 = vand.u32 2147483647, %v4390_v26  ;;  %v821_v55 = vmax.f32 %v4390_v26, 0.0 }
 0xb9c   :  { %v823_v31 = vsub.f32 0.0, %v822_v30 }
 0xb9e   :  { %v824_v32 = vmul.f32 1.442695, %v823_v31 }
 0xba0   :  { %3914 = vpow2.f32 %v824_v32 }
 0xbad   :  { %v3915_v37 = vpop.eup %3914 }
 0xbae   :  { %v826_v43 = vadd.f32 1.0, %v3915_v37  ;;  %v829_v44 = vmul.f32 -0.5, %v3915_v37  ;;  %v832_v47 = vand.u32 2147483647, %v3915_v37 }
 0xbb0   :  { %3916 = vlog2.f32 %v826_v43  ;;  %v830_v46 = vadd.f32 1.0, %v829_v44  ;;  %vm833_vm5 = vcmp.lt.f32.partialorder %v832_v47, 0.0004427343 }
 0xbb2   :  { %v831_v54 = vmul.f32 %v3915_v37, %v830_v46 }
 0xbbd   :  { %v3917_v52 = vpop.eup %3916 }
 0xbbe   :  { %v828_v53 = vmul.f32 0.6931472, %v3917_v52 }
 0xbc0   :  { %v834_v56 = vsel %vm833_vm5, %v831_v54, %v828_v53 }
 0xbc1   :  { %v835_v59 = vadd.f32 %v834_v56, %v821_v55 }
 0xbc3   :  { %v4394_v61 = vadd.f32 0.1, %v835_v59 }
 0xbc5   :  { %v837_v62 = vmul.f32 %v4394_v61, %v4304_v28 }
 0xbc7   :  { %839 = vrot.lane.b32.xlu0 %v837_v62, %s4099_s11 }
 0xc39   :  { %v840_v63 = vpop.permute.xlu0 %839 }
 0xc3a   :  { %v4402_v7 = vadd.f32 %v840_v63, %v4390_v26 }
 0xc3c   :  { %v876_v10 = vmul.f32 %v4399_v1, %v4402_v7 }
 0xc3e   :  { %878 = vrot.lane.b32.xlu0 %v876_v10, %s4098_s8  ;;  %v4480_v10 = vld [vmem:[#allocation2 + $0x18] sm:$0xff] }
 0xcb0   :  { %v879_v11 = vpop.permute.xlu0 %878 }
 0xcb1   :  { %3553 = vmatmul.mubr.msk.f32.vlgmr.msra.gmra.mxu1 %vm100_vm1, %v879_v11 }
 0xcb2   :  { %3556 = vmatpush3.msra.mxu1 %v4157_v4  ;;  %3571 = vmatprep.mubr.msk.f32.mxu1 %vm4094_vm0, %v5133_v0 }
 0xcb3   :  { %3557 = vmatprep.subr.mxu1 %v5133_v0 }
 0xcb4   :  { %3558 = vmatpush3.msra.mxu1 %v4159_v5 }
 0xcb5   :  { %3559 = vmatprep.subr.mxu1 %v5133_v0 }
 0xcb6   :  { %3560 = vmatpush3.msra.mxu1 %v4165_v6 }
 0xcb7   :  { %3561 = vmatprep.subr.mxu1 %v5133_v0 }
 0xcb8   :  { %3562 = vmatpush3.msra.mxu1 %v4170_v8 }
 0xcb9   :  { %3563 = vmatprep.subr.mxu1 %v5133_v0 }
 0xcba   :  { %3564 = vmatpush3.msra.mxu1 %v4174_v9 }
 0xcbb   :  { %3565 = vmatprep.subr.mxu1 %v5133_v0 }
 0xcbc   :  { %3566 = vmatpush3.msra.mxu1 %v4183_v12 }
 0xcbd   :  { %3567 = vmatprep.subr.mxu1 %v5133_v0 }
 0xcbe   :  { %3568 = vmatpush3.msra.mxu1 %v4187_v13 }
 0xcbf   :  { %3569 = vmatprep.subr.mxu1 %v5133_v0 }
 0xcc0   :  { %3570 = vmatpush3.msra.mxu1 %v4190_v14 }
 0xcc1   :  { %3585 = vmatprep.subr.mxu1 %v5133_v0 }
 0xd71   :  { %v948_v28 = vpop.f32.mrf.mxu1 }
 0xd72   :  { %v949_v15 = vadd.f32 %v948_v28, %v4385_v23 }
 0xd73   :  { %v3554_v16 = vpop.f32.mrf.mxu1 }
 0xd74   :  { %v952_v48 = vmax.f32 %v949_v15, 0.0 }
 0xd76   :  { %v953_v57 = vsel %vm179_vm2, %v952_v48, %v4348_v17 }
 0xd77   :  { %3572 = vmatmul.mubr.msk.f32.vlgmr.msra.gmra.mxu1 %vm181_vm3, %v953_v57 }
 0xd78   :  { %3586 = vmatpush3.msra.mxu1 %v4227_v38  ;;  %3601 = vmatprep.mubr.msk.f32.mxu1 %vm4094_vm0, %v5133_v0 }
 0xd79   :  { %3587 = vmatprep.subr.mxu1 %v5133_v0 }
 0xd7a   :  { %3588 = vmatpush3.msra.mxu1 %v4229_v39 }
 0xd7b   :  { %3589 = vmatprep.subr.mxu1 %v5133_v0 }
 0xd7c   :  { %3590 = vmatpush3.msra.mxu1 %v4233_v40 }
 0xd7d   :  { %3591 = vmatprep.subr.mxu1 %v5133_v0 }
 0xd7e   :  { %3592 = vmatpush3.msra.mxu1 %v4237_v41 }
 0xd7f   :  { %3593 = vmatprep.subr.mxu1 %v5133_v0 }
 0xd80   :  { %3594 = vmatpush3.msra.mxu1 %v4241_v42 }
 0xd81   :  { %3595 = vmatprep.subr.mxu1 %v5133_v0 }
 0xd82   :  { %3596 = vmatpush3.msra.mxu1 %v4245_v45 }
 0xd83   :  { %3597 = vmatprep.subr.mxu1 %v5133_v0 }
 0xd84   :  { %3598 = vmatpush3.msra.mxu1 %v4267_v50 }
 0xd85   :  { %3599 = vmatprep.subr.mxu1 %v5133_v0 }
 0xd86   :  { %3600 = vmatpush3.msra.mxu1 %v4271_v51 }
 0xd87   :  { %3630 = vmatprep.subr.mxu1 %v5133_v0 }
 0xe37   :  { %v1023_v19 = vpop.f32.mrf.mxu1 }
 0xe38   :  { %v1024_v20 = vadd.f32 %v4203_v21, %v1023_v19 }
 0xe39   :  { %v3573_v22 = vpop.f32.mrf.mxu1 }
 0xe3a   :  { %1034 = vrot.lane.b32.xlu1 %v1024_v20, %s4095_s0  ;;  %v3200_v24 = vmul.f32 -1.442695, %v1024_v20 }
 0xe3c   :  { %3918 = vpow2.f32 %v3200_v24 }
 0xe49   :  { %v3919_v27 = vpop.eup %3918 }
 0xe4a   :  { %v1030_v30 = vadd.f32 1.0, %v3919_v27 }
 0xe4c   :  { %3920 = vrcp.f32 %v1030_v30 }
 0xe59   :  { %v3921_v31 = vpop.eup %3920 }
 0xe5a   :  { %v1044_v47 = vsub.f32 1.0, %v3921_v31  ;;  %v1050_v53 = vmul.f32 %v3921_v31, %v4348_v17 }
 0xeac   :  { %v1035_v32 = vpop.permute.xlu1 %1034 }
 0xead   :  { %v1037_v37 = vmul.f32 %v3921_v31, %v1035_v32 }
 0xeaf   :  { %1039 = vrot.lane.b32.xlu0 %v1037_v37, %s4097_s7 }
 0xf21   :  { %v1040_v43 = vpop.permute.xlu0 %1039 }
 0xf22   :  { %v1042_v44 = vadd.f32 %v1040_v43, %v1024_v20 }
 0xf24   :  { %3922 = vtanh.f32 %v1042_v44 }
 0xf31   :  { %v3923_v46 = vpop.eup %3922 }
 0xf32   :  { %1046 = vrot.lane.b32.xlu1 %v3923_v46, %s4098_s8 }
 0xf36   :  { %1055 = vrot.lane.b32.xlu1 %v4385_v23, %s4098_s8 }
 0xf3a   :  { %1256 = vrot.lane.b32.xlu1 %v4480_v10, %s4097_s7 }
 0xfa4   :  { %v1047_v52 = vpop.permute.xlu1 %1046 }
 0xfa5   :  { %v1049_v54 = vmul.f32 %v1047_v52, %v1044_v47 }
 0xfa7   :  { %v4455_v55 = vadd.f32 %v1050_v53, %v1049_v54 }
 0xfa8   :  { %v1056_v17 = vpop.permute.xlu1 %1055 }
 0xfa9   :  { %1053 = vrot.lane.b32.xlu0 %v4455_v55, %s4098_s8 }
 0xfac   :  { %v4494_v53 = vpop.permute.xlu1 %1256 }
0x101b   :  { %v4459_v56 = vpop.permute.xlu0 %1053 }
0x101c   :  { %3583 = vmatmul.mubr.msk.f32.vlgmr.msra.gmra.mxu0 %vm179_vm2, %v4459_v56 }
0x101d   :  { %3605 = vmatpush3.msra.mxu0 %v4150_v2  ;;  %3608 = vmatprep.mubr.msk.f32.mxu0 %vm4094_vm0, %v5133_v0 }
0x101e   :  { %3606 = vmatprep.subr.mxu0 %v5133_v0 }
0x101f   :  { %3607 = vmatpush3.msra.mxu0 %v4155_v3 }
0x1020   :  { %3611 = vmatprep.subr.mxu0 %v5133_v0 }
0x10dc   :  { %v1126_v23 = vpop.f32.mrf.mxu0 }
0x10dd   :  { %v1127_v59 = vadd.f32 %v1126_v23, %v1056_v17 }
0x10de   :  { %v3584_v62 = vpop.f32.mrf.mxu0 }
0x10df   :  { %v1130_v63 = vmax.f32 %v1127_v59, 0.0 }
0x10e1   :  { %3602 = vmatmul.mubr.msk.f32.vlgmr.msra.gmra.mxu1 %vm181_vm3, %v1130_v63 }
0x10e2   :  { %3631 = vmatpush3.msra.mxu1 %v4208_v33  ;;  %3638 = vmatprep.mubr.msk.f32.mxu1 %vm4094_vm0, %v5133_v0 }
0x10e3   :  { %3632 = vmatprep.subr.mxu1 %v5133_v0 }
0x10e4   :  { %3633 = vmatpush3.msra.mxu1 %v4210_v34 }
0x10e5   :  { %3634 = vmatprep.subr.mxu1 %v5133_v0 }
0x10e6   :  { %3635 = vmatpush3.msra.mxu1 %v4214_v35 }
0x10e7   :  { %3636 = vmatprep.subr.mxu1 %v5133_v0 }
0x10e8   :  { %3637 = vmatpush3.msra.mxu1 %v4218_v36 }
0x10e9   :  { %3660 = vmatprep.subr.mxu1 %v5133_v0 }
0x11a1   :  { %v1200_v11 = vpop.f32.mrf.mxu1 }
0x11a2   :  { %v4485_v28 = vadd.f32 %v4293_v58, %v1200_v11 }
0x11a3   :  { %v3603_v15 = vpop.f32.mrf.mxu1 }
0x11a4   :  { %v1205_v16 = vand.u32 2147483647, %v4485_v28  ;;  %v1204_v37 = vmax.f32 %v4485_v28, 0.0 }
0x11a6   :  { %v1206_v48 = vsub.f32 0.0, %v1205_v16 }
0x11a8   :  { %v1207_v57 = vmul.f32 1.442695, %v1206_v48 }
0x11aa   :  { %3924 = vpow2.f32 %v1207_v57 }
0x11b7   :  { %v3925_v19 = vpop.eup %3924 }
0x11b8   :  { %v1209_v20 = vadd.f32 1.0, %v3925_v19  ;;  %v1212_v22 = vmul.f32 -0.5, %v3925_v19  ;;  %v1215_v27 = vand.u32 2147483647, %v3925_v19 }
0x11ba   :  { %3926 = vlog2.f32 %v1209_v20  ;;  %v1213_v24 = vadd.f32 1.0, %v1212_v22  ;;  %vm1216_vm6 = vcmp.lt.f32.partialorder %v1215_v27, 0.0004427343 }
0x11bc   :  { %v1214_v32 = vmul.f32 %v3925_v19, %v1213_v24 }
0x11c7   :  { %v3927_v30 = vpop.eup %3926 }
0x11c8   :  { %v1211_v31 = vmul.f32 0.6931472, %v3927_v30 }
0x11ca   :  { %v1217_v43 = vsel %vm1216_vm6, %v1214_v32, %v1211_v31 }
0x11cb   :  { %v1218_v44 = vadd.f32 %v1217_v43, %v1204_v37 }
0x11cd   :  { %v4489_v46 = vadd.f32 0.1, %v1218_v44 }
0x11cf   :  { %v1220_v47 = vmul.f32 %v4489_v46, %v4399_v1 }
0x11d1   :  { %1222 = vrot.lane.b32.xlu0 %v1220_v47, %s4099_s11 }
0x1243   :  { %v1223_v52 = vpop.permute.xlu0 %1222 }
0x1244   :  { %v4497_v54 = vadd.f32 %v1223_v52, %v4485_v28 }
0x1246   :  { %v1259_v17 = vmul.f32 %v4494_v53, %v4497_v54 }
0x1248   :  { %1261 = vrot.lane.b32.xlu0 %v1259_v17, %s4098_s8 }
0x12ba   :  { %v1262_v23 = vpop.permute.xlu0 %1261 }
0x12bb   :  { %3609 = vmatmul.mubr.msk.f32.vlgmr.msra.gmra.mxu0 %vm100_vm1, %v1262_v23 }
0x12bc   :  { %3612 = vmatpush3.msra.mxu0 %v4157_v4  ;;  %3627 = vmatprep.mubr.msk.f32.mxu0 %vm4094_vm0, %v5133_v0 }
0x12bd   :  { %3613 = vmatprep.subr.mxu0 %v5133_v0 }
0x12be   :  { %3614 = vmatpush3.msra.mxu0 %v4159_v5 }
0x12bf   :  { %3615 = vmatprep.subr.mxu0 %v5133_v0 }
0x12c0   :  { %3616 = vmatpush3.msra.mxu0 %v4165_v6 }
0x12c1   :  { %3617 = vmatprep.subr.mxu0 %v5133_v0 }
0x12c2   :  { %3618 = vmatpush3.msra.mxu0 %v4170_v8 }
0x12c3   :  { %3619 = vmatprep.subr.mxu0 %v5133_v0 }
0x12c4   :  { %3620 = vmatpush3.msra.mxu0 %v4174_v9 }
0x12c5   :  { %3621 = vmatprep.subr.mxu0 %v5133_v0 }
0x12c6   :  { %3622 = vmatpush3.msra.mxu0 %v4183_v12 }
0x12c7   :  { %3623 = vmatprep.subr.mxu0 %v5133_v0 }
0x12c8   :  { %3624 = vmatpush3.msra.mxu0 %v4187_v13 }
0x12c9   :  { %3625 = vmatprep.subr.mxu0 %v5133_v0 }
0x12ca   :  { %3626 = vmatpush3.msra.mxu0 %v4190_v14 }
0x12cb   :  { %3641 = vmatprep.subr.mxu0 %v5133_v0 }
0x137b   :  { %v1331_v4 = vpop.f32.mrf.mxu0 }
0x137c   :  { %v1332_v5 = vadd.f32 %v1331_v4, %v4480_v10 }
0x137d   :  { %v3610_v6 = vpop.f32.mrf.mxu0 }
0x137e   :  { %v1335_v8 = vmax.f32 %v1332_v5, 0.0 }
0x1380   :  { %v1336_v9 = vsel %vm179_vm2, %v1335_v8, %v4455_v55 }
0x1381   :  { %3628 = vmatmul.mubr.msk.f32.vlgmr.msra.gmra.mxu0 %vm181_vm3, %v1336_v9 }
0x1382   :  { %3642 = vmatpush3.msra.mxu0 %v4227_v38  ;;  %3657 = vmatprep.mubr.msk.f32.mxu0 %vm4094_vm0, %v5133_v0 }
0x1383   :  { %3643 = vmatprep.subr.mxu0 %v5133_v0 }
0x1384   :  { %3644 = vmatpush3.msra.mxu0 %v4229_v39 }
0x1385   :  { %3645 = vmatprep.subr.mxu0 %v5133_v0 }
0x1386   :  { %3646 = vmatpush3.msra.mxu0 %v4233_v40 }
0x1387   :  { %3647 = vmatprep.subr.mxu0 %v5133_v0 }
0x1388   :  { %3648 = vmatpush3.msra.mxu0 %v4237_v41 }
0x1389   :  { %3649 = vmatprep.subr.mxu0 %v5133_v0 }
0x138a   :  { %3650 = vmatpush3.msra.mxu0 %v4241_v42 }
0x138b   :  { %3651 = vmatprep.subr.mxu0 %v5133_v0 }
0x138c   :  { %3652 = vmatpush3.msra.mxu0 %v4245_v45 }
0x138d   :  { %3653 = vmatprep.subr.mxu0 %v5133_v0 }
0x138e   :  { %3654 = vmatpush3.msra.mxu0 %v4267_v50 }
0x138f   :  { %3655 = vmatprep.subr.mxu0 %v5133_v0 }
0x1390   :  { %3656 = vmatpush3.msra.mxu0 %v4271_v51 }
0x1391   :  { %3686 = vmatprep.subr.mxu0 %v5133_v0 }
0x1441   :  { %v1406_v1 = vpop.f32.mrf.mxu0 }
0x1442   :  { %v1407_v59 = vadd.f32 %v4203_v21, %v1406_v1 }
0x1443   :  { %v3629_v62 = vpop.f32.mrf.mxu0 }
0x1444   :  { %1417 = vrot.lane.b32.xlu1 %v1407_v59, %s4095_s0  ;;  %v3205_v63 = vmul.f32 -1.442695, %v1407_v59 }
0x1446   :  { %3928 = vpow2.f32 %v3205_v63 }
0x1453   :  { %v3929_v11 = vpop.eup %3928 }
0x1454   :  { %v1413_v15 = vadd.f32 1.0, %v3929_v11 }
0x1456   :  { %3930 = vrcp.f32 %v1413_v15 }
0x1463   :  { %v3931_v16 = vpop.eup %3930 }
0x1464   :  { %v1427_v21 = vsub.f32 1.0, %v3931_v16  ;;  %v1433_v27 = vmul.f32 %v3931_v16, %v4455_v55 }
0x14b6   :  { %v1418_v48 = vpop.permute.xlu1 %1417 }
0x14b7   :  { %v1420_v57 = vmul.f32 %v3931_v16, %v1418_v48 }
0x14b9   :  { %1422 = vrot.lane.b32.xlu0 %v1420_v57, %s4097_s7 }
0x152b   :  { %v1423_v19 = vpop.permute.xlu0 %1422 }
0x152c   :  { %v1425_v20 = vadd.f32 %v1423_v19, %v1407_v59 }
0x152e   :  { %3932 = vtanh.f32 %v1425_v20  ;;  %v4598_v20 = vld [vmem:[#allocation7 + $0x48] sm:$0xff] }
0x153b   :  { %v3933_v22 = vpop.eup %3932 }
0x153c   :  { %1429 = vrot.lane.b32.xlu1 %v3933_v22, %s4098_s8  ;;  %v4608_v22 = vld [vmem:[#allocation7 + $0x38] sm:$0xff] }
0x1540   :  { %1438 = vrot.lane.b32.xlu1 %v4480_v10, %s4098_s8 }
0x15ae   :  { %v1430_v24 = vpop.permute.xlu1 %1429 }
0x15af   :  { %v1432_v30 = vmul.f32 %v1430_v24, %v1427_v21  ;;  %v4612_v21 = vld [vmem:[#allocation7 + $0x30] sm:$0xff]  ;;  %v4616_v24 = vld [vmem:[#allocation7 + $0x28] sm:$0xff] }
0x15b1   :  { %v4550_v31 = vadd.f32 %v1433_v27, %v1432_v30 }
0x15b2   :  { %v1439_v55 = vpop.permute.xlu1 %1438 }
0x15b3   :  { %1436 = vrot.lane.b32.xlu0 %v4550_v31, %s4098_s8 }
0x1625   :  { %v4554_v32 = vpop.permute.xlu0 %1436 }
0x1626   :  { %3639 = vmatmul.mubr.msk.f32.vlgmr.msra.gmra.mxu1 %vm179_vm2, %v4554_v32 }
0x1627   :  { %3661 = vmatpush3.msra.mxu1 %v4150_v2  ;;  %3664 = vmatprep.mubr.msk.f32.mxu1 %vm4094_vm0, %v5133_v0  ;;  %v4575_v2 = vld [vmem:[#allocation2 + $0x20] sm:$0xff] }
0x1628   :  { %3662 = vmatprep.subr.mxu1 %v5133_v0  ;;  %1639 = vrot.lane.b32.xlu1 %v4575_v2, %s4097_s7 }
0x1629   :  { %3663 = vmatpush3.msra.mxu1 %v4155_v3 }
0x162a   :  { %3667 = vmatprep.subr.mxu1 %v5133_v0 }
0x169a   :  { %v4589_v16 = vpop.permute.xlu1 %1639 }
0x16e6   :  { %v1509_v10 = vpop.f32.mrf.mxu1 }
0x16e7   :  { %v1510_v37 = vadd.f32 %v1509_v10, %v1439_v55 }
0x16e8   :  { %v3640_v43 = vpop.f32.mrf.mxu1 }
0x16e9   :  { %v1513_v44 = vmax.f32 %v1510_v37, 0.0 }
0x16eb   :  { %3658 = vmatmul.mubr.msk.f32.vlgmr.msra.gmra.mxu0 %vm181_vm3, %v1513_v44 }
0x16ec   :  { %3687 = vmatpush3.msra.mxu0 %v4208_v33  ;;  %3694 = vmatprep.mubr.msk.f32.mxu0 %vm4094_vm0, %v5133_v0 }
0x16ed   :  { %3688 = vmatprep.subr.mxu0 %v5133_v0 }
0x16ee   :  { %3689 = vmatpush3.msra.mxu0 %v4210_v34 }
0x16ef   :  { %3690 = vmatprep.subr.mxu0 %v5133_v0 }
0x16f0   :  { %3691 = vmatpush3.msra.mxu0 %v4214_v35 }
0x16f1   :  { %3692 = vmatprep.subr.mxu0 %v5133_v0 }
0x16f2   :  { %3693 = vmatpush3.msra.mxu0 %v4218_v36 }
0x16f3   :  { %3716 = vmatprep.subr.mxu0 %v5133_v0 }
0x17ab   :  { %v1583_v3 = vpop.f32.mrf.mxu0 }
0x17ac   :  { %v4580_v33 = vadd.f32 %v4293_v58, %v1583_v3 }
0x17ad   :  { %v3659_v34 = vpop.f32.mrf.mxu0 }
0x17ae   :  { %v1588_v47 = vand.u32 2147483647, %v4580_v33  ;;  %v1587_v1 = vmax.f32 %v4580_v33, 0.0 }
0x17b0   :  { %v1589_v52 = vsub.f32 0.0, %v1588_v47 }
0x17b2   :  { %v1590_v35 = vmul.f32 1.442695, %v1589_v52 }
0x17b4   :  { %3934 = vpow2.f32 %v1590_v35 }
0x17c1   :  { %v3935_v17 = vpop.eup %3934 }
0x17c2   :  { %v1592_v23 = vadd.f32 1.0, %v3935_v17  ;;  %v1595_v36 = vmul.f32 -0.5, %v3935_v17  ;;  %v1598_v5 = vand.u32 2147483647, %v3935_v17 }
0x17c4   :  { %3936 = vlog2.f32 %v1592_v23  ;;  %v1596_v4 = vadd.f32 1.0, %v1595_v36  ;;  %vm1599_vm7 = vcmp.lt.f32.partialorder %v1598_v5, 0.0004427343  ;;  %v4668_v23 = vld [vmem:[#allocation7 + $0x8] sm:$0xff] }
0x17c6   :  { %v1597_v9 = vmul.f32 %v3935_v17, %v1596_v4 }
0x17d1   :  { %v3937_v6 = vpop.eup %3936 }
0x17d2   :  { %v1594_v8 = vmul.f32 0.6931472, %v3937_v6 }
0x17d4   :  { %v1600_v59 = vsel %vm1599_vm7, %v1597_v9, %v1594_v8  ;;  %v4679_v8 = vld [vmem:[#allocation7 + $0x68] sm:$0xff]  ;;  %v4685_v9 = vld [vmem:[#allocation7 + $0x60] sm:$0xff] }
0x17d5   :  { %v1601_v62 = vadd.f32 %v1600_v59, %v1587_v1  ;;  %v4689_v1 = vld [vmem:[#allocation7 + $0x58] sm:$0xff]  ;;  %v4693_v59 = vld [vmem:[#allocation7 + $0x50] sm:$0xff] }
0x17d7   :  { %v4584_v63 = vadd.f32 0.1, %v1601_v62  ;;  %v4697_v62 = vld [vmem:[#allocation2 + $0x28] sm:$0xff] }
0x17d9   :  { %v1603_v11 = vmul.f32 %v4584_v63, %v4494_v53  ;;  %v4604_v53 = vld [vmem:[#allocation7 + $0x40] sm:$0xff] }
0x17db   :  { %1605 = vrot.lane.b32.xlu0 %v1603_v11, %s4099_s11 }
0x184d   :  { %v1606_v15 = vpop.permute.xlu0 %1605 }
0x184e   :  { %v4592_v48 = vadd.f32 %v1606_v15, %v4580_v33 }
0x1850   :  { %v1642_v57 = vmul.f32 %v4589_v16, %v4592_v48 }
0x1852   :  { %1644 = vrot.lane.b32.xlu0 %v1642_v57, %s4098_s8 }
0x18c4   :  { %v1645_v19 = vpop.permute.xlu0 %1644 }
0x18c5   :  { %3665 = vmatmul.mubr.msk.f32.vlgmr.msra.gmra.mxu1 %vm100_vm1, %v1645_v19 }
0x18c6   :  { %3668 = vmatpush3.msra.mxu1 %v4598_v20  ;;  %3683 = vmatprep.mubr.msk.f32.mxu1 %vm4094_vm0, %v5133_v0 }
0x18c7   :  { %3669 = vmatprep.subr.mxu1 %v5133_v0 }
0x18c8   :  { %3670 = vmatpush3.msra.mxu1 %v4604_v53 }
0x18c9   :  { %3671 = vmatprep.subr.mxu1 %v5133_v0 }
0x18ca   :  { %3672 = vmatpush3.msra.mxu1 %v4608_v22 }
0x18cb   :  { %3673 = vmatprep.subr.mxu1 %v5133_v0 }
0x18cc   :  { %3674 = vmatpush3.msra.mxu1 %v4612_v21 }
0x18cd   :  { %3675 = vmatprep.subr.mxu1 %v5133_v0 }
0x18ce   :  { %3676 = vmatpush3.msra.mxu1 %v4616_v24 }
0x18cf   :  { %3677 = vmatprep.subr.mxu1 %v5133_v0 }
0x18d0   :  { %3678 = vmatpush3.msra.mxu1 %v4183_v12 }
0x18d1   :  { %3679 = vmatprep.subr.mxu1 %v5133_v0 }
0x18d2   :  { %3680 = vmatpush3.msra.mxu1 %v4187_v13  ;;  %v4651_v13 = vld [vmem:[%s5131_s3] ss:$0 sm:$0xff] }
0x18d3   :  { %3681 = vmatprep.subr.mxu1 %v5133_v0 }
0x18d4   :  { %3682 = vmatpush3.msra.mxu1 %v4190_v14 }
0x18d5   :  { %3697 = vmatprep.subr.mxu1 %v5133_v0 }
0x1985   :  { %v1714_v27 = vpop.f32.mrf.mxu1 }
0x1986   :  { %v1715_v30 = vadd.f32 %v1714_v27, %v4575_v2 }
0x1987   :  { %v3666_v55 = vpop.f32.mrf.mxu1 }
0x1988   :  { %v1718_v10 = vmax.f32 %v1715_v30, 0.0 }
0x198a   :  { %v1719_v37 = vsel %vm179_vm2, %v1718_v10, %v4550_v31 }
0x198b   :  { %3684 = vmatmul.mubr.msk.f32.vlgmr.msra.gmra.mxu1 %vm181_vm3, %v1719_v37 }
0x198c   :  { %3698 = vmatpush3.msra.mxu1 %v4227_v38  ;;  %3713 = vmatprep.mubr.msk.f32.mxu1 %vm4094_vm0, %v5133_v0 }
0x198d   :  { %3699 = vmatprep.subr.mxu1 %v5133_v0 }
0x198e   :  { %3700 = vmatpush3.msra.mxu1 %v4229_v39 }
0x198f   :  { %3701 = vmatprep.subr.mxu1 %v5133_v0 }
0x1990   :  { %3702 = vmatpush3.msra.mxu1 %v4233_v40 }
0x1991   :  { %3703 = vmatprep.subr.mxu1 %v5133_v0 }
0x1992   :  { %3704 = vmatpush3.msra.mxu1 %v4237_v41 }
0x1993   :  { %3705 = vmatprep.subr.mxu1 %v5133_v0 }
0x1994   :  { %3706 = vmatpush3.msra.mxu1 %v4241_v42 }
0x1995   :  { %3707 = vmatprep.subr.mxu1 %v5133_v0 }
0x1996   :  { %3708 = vmatpush3.msra.mxu1 %v4245_v45 }
0x1997   :  { %3709 = vmatprep.subr.mxu1 %v5133_v0 }
0x1998   :  { %3710 = vmatpush3.msra.mxu1 %v4267_v50 }
0x1999   :  { %3711 = vmatprep.subr.mxu1 %v5133_v0 }
0x199a   :  { %3712 = vmatpush3.msra.mxu1 %v4271_v51 }
0x199b   :  { %3742 = vmatprep.subr.mxu1 %v5133_v0 }
0x1a4b   :  { %v1789_v12 = vpop.f32.mrf.mxu1 }
0x1a4c   :  { %v1790_v14 = vadd.f32 %v4651_v13, %v1789_v12 }
0x1a4d   :  { %v3685_v38 = vpop.f32.mrf.mxu1 }
0x1a4e   :  { %1800 = vrot.lane.b32.xlu1 %v1790_v14, %s4095_s0  ;;  %v3210_v39 = vmul.f32 -1.442695, %v1790_v14 }
0x1a50   :  { %3938 = vpow2.f32 %v3210_v39 }
0x1a5d   :  { %v3939_v40 = vpop.eup %3938 }
0x1a5e   :  { %v1796_v41 = vadd.f32 1.0, %v3939_v40 }
0x1a60   :  { %3940 = vrcp.f32 %v1796_v41 }
0x1a6d   :  { %v3941_v42 = vpop.eup %3940 }
0x1a6e   :  { %v1810_v3 = vsub.f32 1.0, %v3941_v42  ;;  %v1816_v47 = vmul.f32 %v3941_v42, %v4550_v31  ;;  %v4674_v31 = vld [vmem:[#allocation7] sm:$0xff] }
0x1ac0   :  { %v1801_v45 = vpop.permute.xlu1 %1800 }
0x1ac1   :  { %v1803_v50 = vmul.f32 %v3941_v42, %v1801_v45 }
0x1ac3   :  { %1805 = vrot.lane.b32.xlu0 %v1803_v50, %s4097_s7 }
0x1b35   :  { %v1806_v51 = vpop.permute.xlu0 %1805 }
0x1b36   :  { %v1808_v43 = vadd.f32 %v1806_v51, %v1790_v14 }
0x1b38   :  { %3942 = vtanh.f32 %v1808_v43 }
0x1b45   :  { %v3943_v44 = vpop.eup %3942 }
0x1b46   :  { %1812 = vrot.lane.b32.xlu1 %v3943_v44, %s4098_s8 }
0x1b4a   :  { %1821 = vrot.lane.b32.xlu1 %v4575_v2, %s4098_s8 }
0x1b4e   :  { %2022 = vrot.lane.b32.xlu1 %v4697_v62, %s4097_s7 }
0x1bb8   :  { %v1813_v34 = vpop.permute.xlu1 %1812 }
0x1bb9   :  { %v1815_v52 = vmul.f32 %v1813_v34, %v1810_v3 }
0x1bbb   :  { %v4660_v35 = vadd.f32 %v1816_v47, %v1815_v52  ;;  %v4736_v47 = vld [vmem:[#allocation7 + $0x18] sm:$0xff]  ;;  %v4740_v52 = vld [vmem:[#allocation7 + $0x10] sm:$0xff] }
0x1bbc   :  { %v1822_v2 = vpop.permute.xlu1 %1821 }
0x1bbd   :  { %1819 = vrot.lane.b32.xlu0 %v4660_v35, %s4098_s8 }
0x1bc0   :  { %v4711_v43 = vpop.permute.xlu1 %2022 }
0x1c2f   :  { %v4664_v17 = vpop.permute.xlu0 %1819 }
0x1c30   :  { %3695 = vmatmul.mubr.msk.f32.vlgmr.msra.gmra.mxu0 %vm179_vm2, %v4664_v17 }
0x1c31   :  { %3717 = vmatpush3.msra.mxu0 %v4668_v23  ;;  %3720 = vmatprep.mubr.msk.f32.mxu0 %vm4094_vm0, %v5133_v0 }
0x1c32   :  { %3718 = vmatprep.subr.mxu0 %v5133_v0 }
0x1c33   :  { %3719 = vmatpush3.msra.mxu0 %v4674_v31 }
0x1c34   :  { %3723 = vmatprep.subr.mxu0 %v5133_v0 }
0x1cf0   :  { %v1892_v36 = vpop.f32.mrf.mxu0 }
0x1cf1   :  { %v1893_v4 = vadd.f32 %v1892_v36, %v1822_v2 }
0x1cf2   :  { %v3696_v5 = vpop.f32.mrf.mxu0 }
0x1cf3   :  { %v1896_v6 = vmax.f32 %v1893_v4, 0.0 }
0x1cf5   :  { %3714 = vmatmul.mubr.msk.f32.vlgmr.msra.gmra.mxu1 %vm181_vm3, %v1896_v6 }
0x1cf6   :  { %3743 = vmatpush3.msra.mxu1 %v4679_v8  ;;  %3750 = vmatprep.mubr.msk.f32.mxu1 %vm4094_vm0, %v5133_v0 }
0x1cf7   :  { %3744 = vmatprep.subr.mxu1 %v5133_v0 }
0x1cf8   :  { %3745 = vmatpush3.msra.mxu1 %v4685_v9 }
0x1cf9   :  { %3746 = vmatprep.subr.mxu1 %v5133_v0 }
0x1cfa   :  { %3747 = vmatpush3.msra.mxu1 %v4689_v1 }
0x1cfb   :  { %3748 = vmatprep.subr.mxu1 %v5133_v0 }
0x1cfc   :  { %3749 = vmatpush3.msra.mxu1 %v4693_v59 }
0x1cfd   :  { %3772 = vmatprep.subr.mxu1 %v5133_v0 }
0x1db5   :  { %v1966_v11 = vpop.f32.mrf.mxu1 }
0x1db6   :  { %v4702_v15 = vadd.f32 %v4293_v58, %v1966_v11  ;;  %v4748_v11 = vld [vmem:[#allocation7 + $0xa8] sm:$0xff] }
0x1db7   :  { %v3715_v57 = vpop.f32.mrf.mxu1 }
0x1db8   :  { %v1971_v19 = vand.u32 2147483647, %v4702_v15  ;;  %v1970_v41 = vmax.f32 %v4702_v15, 0.0  ;;  %v4754_v57 = vld [vmem:[#allocation7 + $0xa0] sm:$0xff] }
0x1dba   :  { %v1972_v27 = vsub.f32 0.0, %v1971_v19  ;;  %v4758_v19 = vld [vmem:[#allocation7 + $0x98] sm:$0xff] }
0x1dbc   :  { %v1973_v30 = vmul.f32 1.442695, %v1972_v27  ;;  %v4762_v27 = vld [vmem:[#allocation7 + $0x90] sm:$0xff] }
0x1dbe   :  { %3944 = vpow2.f32 %v1973_v30  ;;  %v4766_v30 = vld [vmem:[#allocation7 + $0x88] sm:$0xff] }
0x1dcb   :  { %v3945_v55 = vpop.eup %3944 }
0x1dcc   :  { %v1975_v10 = vadd.f32 1.0, %v3945_v55  ;;  %v1978_v37 = vmul.f32 -0.5, %v3945_v55  ;;  %v1981_v14 = vand.u32 2147483647, %v3945_v55 }
0x1dce   :  { %3946 = vlog2.f32 %v1975_v10  ;;  %v1979_v12 = vadd.f32 1.0, %v1978_v37  ;;  %vm1982_vm8 = vcmp.lt.f32.partialorder %v1981_v14, 0.0004427343  ;;  %v4774_v10 = vld [vmem:[#allocation7 + $0x78] sm:$0xff]  ;;  %v4778_v37 = vld [vmem:[#allocation7 + $0x70] sm:$0xff] }
0x1dd0   :  { %v1980_v40 = vmul.f32 %v3945_v55, %v1979_v12  ;;  %v4770_v55 = vld [vmem:[#allocation7 + $0x80] sm:$0xff] }
0x1ddb   :  { %v3947_v38 = vpop.eup %3946 }
0x1ddc   :  { %v1977_v39 = vmul.f32 0.6931472, %v3947_v38 }
0x1dde   :  { %v1983_v58 = vsel %vm1982_vm8, %v1980_v40, %v1977_v39 }
0x1ddf   :  { %v1984_v42 = vadd.f32 %v1983_v58, %v1970_v41 }
0x1de1   :  { %v4706_v45 = vadd.f32 0.1, %v1984_v42 }
0x1de3   :  { %v1986_v50 = vmul.f32 %v4706_v45, %v4589_v16  ;;  %v4732_v16 = vld [vmem:[#allocation7 + $0x20] sm:$0xff] }
0x1de5   :  { %1988 = vrot.lane.b32.xlu0 %v1986_v50, %s4099_s11 }
0x1e57   :  { %v1989_v51 = vpop.permute.xlu0 %1988 }
0x1e58   :  { %v4714_v44 = vadd.f32 %v1989_v51, %v4702_v15 }
0x1e5a   :  { %v2025_v3 = vmul.f32 %v4711_v43, %v4714_v44 }
0x1e5c   :  { %2027 = vrot.lane.b32.xlu0 %v2025_v3, %s4098_s8 }
0x1ece   :  { %v2028_v34 = vpop.permute.xlu0 %2027 }
0x1ecf   :  { %3721 = vmatmul.mubr.msk.f32.vlgmr.msra.gmra.mxu0 %vm100_vm1, %v2028_v34 }
0x1ed0   :  { %3724 = vmatpush3.msra.mxu0 %v4598_v20  ;;  %3739 = vmatprep.mubr.msk.f32.mxu0 %vm4094_vm0, %v5133_v0 }
0x1ed1   :  { %3725 = vmatprep.subr.mxu0 %v5133_v0 }
0x1ed2   :  { %3726 = vmatpush3.msra.mxu0 %v4604_v53 }
0x1ed3   :  { %3727 = vmatprep.subr.mxu0 %v5133_v0 }
0x1ed4   :  { %3728 = vmatpush3.msra.mxu0 %v4608_v22 }
0x1ed5   :  { %3729 = vmatprep.subr.mxu0 %v5133_v0 }
0x1ed6   :  { %3730 = vmatpush3.msra.mxu0 %v4612_v21 }
0x1ed7   :  { %3731 = vmatprep.subr.mxu0 %v5133_v0 }
0x1ed8   :  { %3732 = vmatpush3.msra.mxu0 %v4616_v24 }
0x1ed9   :  { %3733 = vmatprep.subr.mxu0 %v5133_v0 }
0x1eda   :  { %3734 = vmatpush3.msra.mxu0 %v4732_v16 }
0x1edb   :  { %3735 = vmatprep.subr.mxu0 %v5133_v0 }
0x1edc   :  { %3736 = vmatpush3.msra.mxu0 %v4736_v47 }
0x1edd   :  { %3737 = vmatprep.subr.mxu0 %v5133_v0 }
0x1ede   :  { %3738 = vmatpush3.msra.mxu0 %v4740_v52 }
0x1edf   :  { %3753 = vmatprep.subr.mxu0 %v5133_v0 }
0x1f8f   :  { %v2097_v2 = vpop.f32.mrf.mxu0 }
0x1f90   :  { %v2098_v36 = vadd.f32 %v2097_v2, %v4697_v62 }
0x1f91   :  { %v3722_v4 = vpop.f32.mrf.mxu0 }
0x1f92   :  { %v2101_v5 = vmax.f32 %v2098_v36, 0.0 }
0x1f94   :  { %v2102_v6 = vsel %vm179_vm2, %v2101_v5, %v4660_v35 }
0x1f95   :  { %3740 = vmatmul.mubr.msk.f32.vlgmr.msra.gmra.mxu0 %vm181_vm3, %v2102_v6 }
0x1f96   :  { %3754 = vmatpush3.msra.mxu0 %v4748_v11  ;;  %3769 = vmatprep.mubr.msk.f32.mxu0 %vm4094_vm0, %v5133_v0 }
0x1f97   :  { %3755 = vmatprep.subr.mxu0 %v5133_v0 }
0x1f98   :  { %3756 = vmatpush3.msra.mxu0 %v4754_v57 }
0x1f99   :  { %3757 = vmatprep.subr.mxu0 %v5133_v0 }
0x1f9a   :  { %3758 = vmatpush3.msra.mxu0 %v4758_v19 }
0x1f9b   :  { %3759 = vmatprep.subr.mxu0 %v5133_v0 }
0x1f9c   :  { %3760 = vmatpush3.msra.mxu0 %v4762_v27 }
0x1f9d   :  { %3761 = vmatprep.subr.mxu0 %v5133_v0 }
0x1f9e   :  { %3762 = vmatpush3.msra.mxu0 %v4766_v30 }
0x1f9f   :  { %3763 = vmatprep.subr.mxu0 %v5133_v0 }
0x1fa0   :  { %3764 = vmatpush3.msra.mxu0 %v4770_v55 }
0x1fa1   :  { %3765 = vmatprep.subr.mxu0 %v5133_v0 }
0x1fa2   :  { %3766 = vmatpush3.msra.mxu0 %v4774_v10 }
0x1fa3   :  { %3767 = vmatprep.subr.mxu0 %v5133_v0 }
0x1fa4   :  { %3768 = vmatpush3.msra.mxu0 %v4778_v37 }
0x1fa5   :  { %3798 = vmatprep.subr.mxu0 %v5133_v0 }
0x2055   :  { %v2172_v12 = vpop.f32.mrf.mxu0 }
0x2056   :  { %v2173_v14 = vadd.f32 %v4651_v13, %v2172_v12 }
0x2057   :  { %v3741_v38 = vpop.f32.mrf.mxu0 }
0x2058   :  { %2183 = vrot.lane.b32.xlu1 %v2173_v14, %s4095_s0  ;;  %v3215_v39 = vmul.f32 -1.442695, %v2173_v14 }
0x205a   :  { %3948 = vpow2.f32 %v3215_v39 }
0x2067   :  { %v3949_v40 = vpop.eup %3948 }
0x2068   :  { %v2179_v41 = vadd.f32 1.0, %v3949_v40  ;;  %v4814_v40 = vld [vmem:[#allocation2 + $0x30] sm:$0xff] }
0x206a   :  { %3950 = vrcp.f32 %v2179_v41 }
0x2077   :  { %v3951_v58 = vpop.eup %3950 }
0x2078   :  { %v2193_v2 = vsub.f32 1.0, %v3951_v58  ;;  %v2199_v4 = vmul.f32 %v3951_v58, %v4660_v35 }
0x20ca   :  { %v2184_v42 = vpop.permute.xlu1 %2183 }
0x20cb   :  { %v2186_v50 = vmul.f32 %v3951_v58, %v2184_v42  ;;  %v4821_v58 = vld [vmem:[%s5131_s3 + $0x1] ss:$0 sm:$0xff]  ;;  %s4100_s3 = smov 48  }
0x20cd   :  { %2188 = vrot.lane.b32.xlu0 %v2186_v50, %s4097_s7 }
0x213f   :  { %v2189_v51 = vpop.permute.xlu0 %2188 }
0x2140   :  { %v2191_v3 = vadd.f32 %v2189_v51, %v2173_v14 }
0x2142   :  { %3952 = vtanh.f32 %v2191_v3 }
0x214f   :  { %v3953_v34 = vpop.eup %3952 }
0x2150   :  { %2195 = vrot.lane.b32.xlu1 %v3953_v34, %s4098_s8 }
0x2154   :  { %2204 = vrot.lane.b32.xlu1 %v4697_v62, %s4098_s8 }
0x2158   :  { %2405 = vrot.lane.b32.xlu1 %v4814_v40, %s4097_s7 }
0x21c2   :  { %v2196_v36 = vpop.permute.xlu1 %2195 }
0x21c3   :  { %v2198_v5 = vmul.f32 %v2196_v36, %v2193_v2 }
0x21c5   :  { %v4789_v6 = vadd.f32 %v2199_v4, %v2198_v5 }
0x21c6   :  { %v2205_v35 = vpop.permute.xlu1 %2204 }
0x21c7   :  { %2202 = vrot.lane.b32.xlu0 %v4789_v6, %s4098_s8 }
0x2239   :  { %v4793_v12 = vpop.permute.xlu0 %2202 }
0x223a   :  { %3751 = vmatmul.mubr.msk.f32.vlgmr.msra.gmra.mxu1 %vm179_vm2, %v4793_v12 }
0x223b   :  { %3773 = vmatpush3.msra.mxu1 %v4668_v23  ;;  %3776 = vmatprep.mubr.msk.f32.mxu1 %vm4094_vm0, %v5133_v0 }
0x223c   :  { %3774 = vmatprep.subr.mxu1 %v5133_v0 }
0x223d   :  { %3775 = vmatpush3.msra.mxu1 %v4674_v31 }
0x223e   :  { %3779 = vmatprep.subr.mxu1 %v5133_v0 }
0x22fa   :  { %v2275_v62 = vpop.f32.mrf.mxu1 }
0x22fb   :  { %v2276_v14 = vadd.f32 %v2275_v62, %v2205_v35 }
0x22fc   :  { %v3752_v38 = vpop.f32.mrf.mxu1 }
0x22fd   :  { %v2279_v39 = vmax.f32 %v2276_v14, 0.0 }
0x22ff   :  { %3770 = vmatmul.mubr.msk.f32.vlgmr.msra.gmra.mxu0 %vm181_vm3, %v2279_v39 }
0x2300   :  { %3799 = vmatpush3.msra.mxu0 %v4679_v8  ;;  %3806 = vmatprep.mubr.msk.f32.mxu0 %vm4094_vm0, %v5133_v0 }
0x2301   :  { %3800 = vmatprep.subr.mxu0 %v5133_v0 }
0x2302   :  { %3801 = vmatpush3.msra.mxu0 %v4685_v9 }
0x2303   :  { %3802 = vmatprep.subr.mxu0 %v5133_v0 }
0x2304   :  { %3803 = vmatpush3.msra.mxu0 %v4689_v1 }
0x2305   :  { %3804 = vmatprep.subr.mxu0 %v5133_v0 }
0x2306   :  { %3805 = vmatpush3.msra.mxu0 %v4693_v59 }
0x2307   :  { %3828 = vmatprep.subr.mxu0 %v5133_v0 }
0x23bf   :  { %v2349_v41 = vpop.f32.mrf.mxu0 }
0x23c0   :  { %v4824_v42 = vadd.f32 %v4821_v58, %v2349_v41 }
0x23c1   :  { %v3771_v50 = vpop.f32.mrf.mxu0 }
0x23c2   :  { %v2354_v51 = vand.u32 2147483647, %v4824_v42  ;;  %v2353_v39 = vmax.f32 %v4824_v42, 0.0 }
0x23c4   :  { %v2355_v3 = vsub.f32 0.0, %v2354_v51 }
0x23c6   :  { %v2356_v34 = vmul.f32 1.442695, %v2355_v3 }
0x23c8   :  { %3954 = vpow2.f32 %v2356_v34  ;;  %v4833_v34 = vpop.permute.xlu1 %2405 }
0x23d5   :  { %v3955_v2 = vpop.eup %3954 }
0x23d6   :  { %v2358_v36 = vadd.f32 1.0, %v3955_v2  ;;  %v2361_v4 = vmul.f32 -0.5, %v3955_v2  ;;  %v2364_v35 = vand.u32 2147483647, %v3955_v2 }
0x23d8   :  { %3956 = vlog2.f32 %v2358_v36  ;;  %v2362_v5 = vadd.f32 1.0, %v2361_v4  ;;  %vm2365_vm9 = vcmp.lt.f32.partialorder %v2364_v35, 0.0004427343 }
0x23da   :  { %v2363_v38 = vmul.f32 %v3955_v2, %v2362_v5 }
0x23e5   :  { %v3957_v62 = vpop.eup %3956 }
0x23e6   :  { %v2360_v14 = vmul.f32 0.6931472, %v3957_v62 }
0x23e8   :  { %v2366_v41 = vsel %vm2365_vm9, %v2363_v38, %v2360_v14 }
0x23e9   :  { %v2367_v0 = vadd.f32 %v2366_v41, %v2353_v39 }
0x23eb   :  { %v4828_v50 = vadd.f32 0.1, %v2367_v0  ;;  %v5135_v0 = vmov 0.0  }
0x23ed   :  { %v2369_v51 = vmul.f32 %v4828_v50, %v4711_v43 }
0x23ef   :  { %2371 = vrot.lane.b32.xlu0 %v2369_v51, %s4099_s11 }
0x2461   :  { %v2372_v3 = vpop.permute.xlu0 %2371 }
0x2462   :  { %v4836_v36 = vadd.f32 %v2372_v3, %v4824_v42 }
0x2464   :  { %v2408_v2 = vmul.f32 %v4833_v34, %v4836_v36 }
0x2466   :  { %2410 = vrot.lane.b32.xlu0 %v2408_v2, %s4098_s8 }
0x24d8   :  { %v2411_v4 = vpop.permute.xlu0 %2410 }
0x24d9   :  { %3777 = vmatmul.mubr.msk.f32.vlgmr.msra.gmra.mxu1 %vm100_vm1, %v2411_v4 }
0x24da   :  { %3780 = vmatpush3.msra.mxu1 %v4598_v20  ;;  %3795 = vmatprep.mubr.msk.f32.mxu1 %vm4094_vm0, %v5135_v0 }
0x24db   :  { %3781 = vmatprep.subr.mxu1 %v5135_v0 }
0x24dc   :  { %3782 = vmatpush3.msra.mxu1 %v4604_v53 }
0x24dd   :  { %3783 = vmatprep.subr.mxu1 %v5135_v0 }
0x24de   :  { %3784 = vmatpush3.msra.mxu1 %v4608_v22 }
0x24df   :  { %3785 = vmatprep.subr.mxu1 %v5135_v0 }
0x24e0   :  { %3786 = vmatpush3.msra.mxu1 %v4612_v21 }
0x24e1   :  { %3787 = vmatprep.subr.mxu1 %v5135_v0 }
0x24e2   :  { %3788 = vmatpush3.msra.mxu1 %v4616_v24 }
0x24e3   :  { %3789 = vmatprep.subr.mxu1 %v5135_v0 }
0x24e4   :  { %3790 = vmatpush3.msra.mxu1 %v4732_v16 }
0x24e5   :  { %3791 = vmatprep.subr.mxu1 %v5135_v0 }
0x24e6   :  { %3792 = vmatpush3.msra.mxu1 %v4736_v47 }
0x24e7   :  { %3793 = vmatprep.subr.mxu1 %v5135_v0 }
0x24e8   :  { %3794 = vmatpush3.msra.mxu1 %v4740_v52 }
0x24e9   :  { %3809 = vmatprep.subr.mxu1 %v5135_v0 }
0x2599   :  { %v2480_v43 = vpop.f32.mrf.mxu1 }
0x259a   :  { %v2481_v5 = vadd.f32 %v2480_v43, %v4814_v40 }
0x259b   :  { %v3778_v35 = vpop.f32.mrf.mxu1 }
0x259c   :  { %v2484_v62 = vmax.f32 %v2481_v5, 0.0 }
0x259e   :  { %v2485_v14 = vsel %vm179_vm2, %v2484_v62, %v4789_v6 }
0x259f   :  { %3796 = vmatmul.mubr.msk.f32.vlgmr.msra.gmra.mxu1 %vm181_vm3, %v2485_v14 }
0x25a0   :  { %3810 = vmatpush3.msra.mxu1 %v4748_v11  ;;  %3825 = vmatprep.mubr.msk.f32.mxu1 %vm4094_vm0, %v5135_v0 }
0x25a1   :  { %3811 = vmatprep.subr.mxu1 %v5135_v0 }
0x25a2   :  { %3812 = vmatpush3.msra.mxu1 %v4754_v57 }
0x25a3   :  { %3813 = vmatprep.subr.mxu1 %v5135_v0 }
0x25a4   :  { %3814 = vmatpush3.msra.mxu1 %v4758_v19 }
0x25a5   :  { %3815 = vmatprep.subr.mxu1 %v5135_v0 }
0x25a6   :  { %3816 = vmatpush3.msra.mxu1 %v4762_v27 }
0x25a7   :  { %3817 = vmatprep.subr.mxu1 %v5135_v0 }
0x25a8   :  { %3818 = vmatpush3.msra.mxu1 %v4766_v30 }
0x25a9   :  { %3819 = vmatprep.subr.mxu1 %v5135_v0 }
0x25aa   :  { %3820 = vmatpush3.msra.mxu1 %v4770_v55 }
0x25ab   :  { %3821 = vmatprep.subr.mxu1 %v5135_v0 }
0x25ac   :  { %3822 = vmatpush3.msra.mxu1 %v4774_v10 }
0x25ad   :  { %3823 = vmatprep.subr.mxu1 %v5135_v0 }
0x25ae   :  { %3824 = vmatpush3.msra.mxu1 %v4778_v37 }
0x25af   :  { %3854 = vmatprep.subr.mxu1 %v5135_v0 }
0x265f   :  { %v2555_v38 = vpop.f32.mrf.mxu1 }
0x2660   :  { %v2556_v39 = vadd.f32 %v4651_v13, %v2555_v38 }
0x2661   :  { %v3797_v41 = vpop.f32.mrf.mxu1 }
0x2662   :  { %2566 = vrot.lane.b32.xlu1 %v2556_v39, %s4095_s0  ;;  %v3220_v51 = vmul.f32 -1.442695, %v2556_v39 }
0x2664   :  { %3958 = vpow2.f32 %v3220_v51 }
0x2671   :  { %v3959_v3 = vpop.eup %3958 }
0x2672   :  { %v2562_v2 = vadd.f32 1.0, %v3959_v3 }
0x2674   :  { %3960 = vrcp.f32 %v2562_v2 }
0x2681   :  { %v3961_v4 = vpop.eup %3960 }
0x2682   :  { %v2576_v38 = vsub.f32 1.0, %v3961_v4  ;;  %v2582_v51 = vmul.f32 %v3961_v4, %v4789_v6 }
0x26d4   :  { %v2567_v43 = vpop.permute.xlu1 %2566 }
0x26d5   :  { %v2569_v5 = vmul.f32 %v3961_v4, %v2567_v43 }
0x26d7   :  { %2571 = vrot.lane.b32.xlu0 %v2569_v5, %s4097_s7 }
0x2749   :  { %v2572_v35 = vpop.permute.xlu0 %2571 }
0x274a   :  { %v2574_v62 = vadd.f32 %v2572_v35, %v2556_v39 }
0x274c   :  { %3962 = vtanh.f32 %v2574_v62 }
0x2759   :  { %v3963_v14 = vpop.eup %3962 }
0x275a   :  { %2578 = vrot.lane.b32.xlu1 %v3963_v14, %s4098_s8 }
0x275e   :  { %2587 = vrot.lane.b32.xlu1 %v4814_v40, %s4098_s8 }
0x27cc   :  { %v2579_v41 = vpop.permute.xlu1 %2578 }
0x27cd   :  { %v2581_v3 = vmul.f32 %v2579_v41, %v2576_v38 }
0x27cf   :  { %v4889_v2 = vadd.f32 %v2582_v51, %v2581_v3 }
0x27d0   :  { %v2588_v6 = vpop.permute.xlu1 %2587 }
0x27d1   :  { %2585 = vrot.lane.b32.xlu0 %v4889_v2, %s4098_s8 }
0x2843   :  { %v4893_v43 = vpop.permute.xlu0 %2585 }
0x2844   :  { %3807 = vmatmul.mubr.msk.f32.vlgmr.msra.gmra.mxu0 %vm179_vm2, %v4893_v43 }
0x2845   :  { %3829 = vmatpush3.msra.mxu0 %v4668_v23  ;;  %3832 = vmatprep.mubr.msk.f32.mxu0 %vm4094_vm0, %v5135_v0  ;;  %v4913_v23 = vld [vmem:[#allocation2 + $0x38] sm:$0xff] }
0x2846   :  { %3830 = vmatprep.subr.mxu0 %v5135_v0  ;;  %2788 = vrot.lane.b32.xlu1 %v4913_v23, %s4097_s7 }
0x2847   :  { %3831 = vmatpush3.msra.mxu0 %v4674_v31 }
0x2848   :  { %3835 = vmatprep.subr.mxu0 %v5135_v0 }
0x2904   :  { %v2658_v40 = vpop.f32.mrf.mxu0 }
0x2905   :  { %v2659_v39 = vadd.f32 %v2658_v40, %v2588_v6 }
0x2906   :  { %v3808_v4 = vpop.f32.mrf.mxu0 }
0x2907   :  { %v2662_v5 = vmax.f32 %v2659_v39, 0.0 }
0x2909   :  { %3826 = vmatmul.mubr.msk.f32.vlgmr.msra.gmra.mxu1 %vm181_vm3, %v2662_v5 }
0x290a   :  { %3855 = vmatpush3.msra.mxu1 %v4679_v8  ;;  %3862 = vmatprep.mubr.msk.f32.mxu1 %vm4094_vm0, %v5135_v0 }
0x290b   :  { %3856 = vmatprep.subr.mxu1 %v5135_v0 }
0x290c   :  { %3857 = vmatpush3.msra.mxu1 %v4685_v9 }
0x290d   :  { %3858 = vmatprep.subr.mxu1 %v5135_v0 }
0x290e   :  { %3859 = vmatpush3.msra.mxu1 %v4689_v1 }
0x290f   :  { %3860 = vmatprep.subr.mxu1 %v5135_v0 }
0x2910   :  { %3861 = vmatpush3.msra.mxu1 %v4693_v59 }
0x29c9   :  { %v2732_v31 = vpop.f32.mrf.mxu1 }
0x29ca   :  { %v4918_v8 = vadd.f32 %v4821_v58, %v2732_v31 }
0x29cb   :  { %v3827_v35 = vpop.f32.mrf.mxu1 }
0x29cc   :  { %v2737_v9 = vand.u32 2147483647, %v4918_v8  ;;  %v2736_v39 = vmax.f32 %v4918_v8, 0.0 }
0x29ce   :  { %v2738_v62 = vsub.f32 0.0, %v2737_v9 }
0x29d0   :  { %v2739_v14 = vmul.f32 1.442695, %v2738_v62  ;;  %v4927_v62 = vpop.permute.xlu1 %2788 }
0x29d2   :  { %3964 = vpow2.f32 %v2739_v14 }
0x29df   :  { %v3965_v1 = vpop.eup %3964 }
0x29e0   :  { %v2741_v38 = vadd.f32 1.0, %v3965_v1  ;;  %v2744_v41 = vmul.f32 -0.5, %v3965_v1  ;;  %v2747_v51 = vand.u32 2147483647, %v3965_v1 }
0x29e2   :  { %3966 = vlog2.f32 %v2741_v38  ;;  %v2745_v59 = vadd.f32 1.0, %v2744_v41  ;;  %vm2748_vm10 = vcmp.lt.f32.partialorder %v2747_v51, 0.0004427343 }
0x29e4   :  { %v2746_v40 = vmul.f32 %v3965_v1, %v2745_v59 }
0x29ef   :  { %v3967_v3 = vpop.eup %3966 }
0x29f0   :  { %v2743_v6 = vmul.f32 0.6931472, %v3967_v3 }
0x29f2   :  { %v2749_v4 = vsel %vm2748_vm10, %v2746_v40, %v2743_v6 }
0x29f3   :  { %v2750_v5 = vadd.f32 %v2749_v4, %v2736_v39 }
0x29f5   :  { %v4922_v31 = vadd.f32 0.1, %v2750_v5 }
0x29f7   :  { %v2752_v35 = vmul.f32 %v4922_v31, %v4833_v34 }
0x29f9   :  { %2754 = vrot.lane.b32.xlu0 %v2752_v35, %s4099_s11 }
0x2a6b   :  { %v2755_v9 = vpop.permute.xlu0 %2754 }
0x2a6c   :  { %v4930_v14 = vadd.f32 %v2755_v9, %v4918_v8 }
0x2a6e   :  { %v2791_v1 = vmul.f32 %v4927_v62, %v4930_v14 }
0x2a70   :  { %2793 = vrot.lane.b32.xlu0 %v2791_v1, %s4098_s8 }
0x2ae2   :  { %v2794_v38 = vpop.permute.xlu0 %2793 }
0x2ae3   :  { %3833 = vmatmul.mubr.msk.f32.vlgmr.msra.gmra.mxu0 %vm100_vm1, %v2794_v38 }
0x2ae4   :  { %3836 = vmatpush3.msra.mxu0 %v4598_v20  ;;  %3851 = vmatprep.mubr.msk.f32.mxu0 %vm4094_vm0, %v5135_v0 }
0x2ae5   :  { %3837 = vmatprep.subr.mxu0 %v5135_v0 }
0x2ae6   :  { %3838 = vmatpush3.msra.mxu0 %v4604_v53 }
0x2ae7   :  { %3839 = vmatprep.subr.mxu0 %v5135_v0 }
0x2ae8   :  { %3840 = vmatpush3.msra.mxu0 %v4608_v22 }
0x2ae9   :  { %3841 = vmatprep.subr.mxu0 %v5135_v0 }
0x2aea   :  { %3842 = vmatpush3.msra.mxu0 %v4612_v21 }
0x2aeb   :  { %3843 = vmatprep.subr.mxu0 %v5135_v0 }
0x2aec   :  { %3844 = vmatpush3.msra.mxu0 %v4616_v24 }
0x2aed   :  { %3845 = vmatprep.subr.mxu0 %v5135_v0 }
0x2aee   :  { %3846 = vmatpush3.msra.mxu0 %v4732_v16 }
0x2aef   :  { %3847 = vmatprep.subr.mxu0 %v5135_v0 }
0x2af0   :  { %3848 = vmatpush3.msra.mxu0 %v4736_v47 }
0x2af1   :  { %3849 = vmatprep.subr.mxu0 %v5135_v0 }
0x2af2   :  { %3850 = vmatpush3.msra.mxu0 %v4740_v52 }
0x2af3   :  { %3865 = vmatprep.subr.mxu0 %v5135_v0 }
0x2ba3   :  { %v2863_v20 = vpop.f32.mrf.mxu0 }
0x2ba4   :  { %v2864_v53 = vadd.f32 %v2863_v20, %v4913_v23 }
0x2ba5   :  { %v3834_v22 = vpop.f32.mrf.mxu0 }
0x2ba6   :  { %v2867_v21 = vmax.f32 %v2864_v53, 0.0 }
0x2ba8   :  { %v2868_v24 = vsel %vm179_vm2, %v2867_v21, %v4889_v2 }
0x2ba9   :  { %3852 = vmatmul.mubr.msk.f32.vlgmr.msra.gmra.mxu0 %vm181_vm3, %v2868_v24 }
0x2baa   :  { %3866 = vmatpush3.msra.mxu0 %v4748_v11  ;;  %3881 = vmatprep.mubr.msk.f32.mxu0 %vm4094_vm0, %v5135_v0 }
0x2bab   :  { %3867 = vmatprep.subr.mxu0 %v5135_v0 }
0x2bac   :  { %3868 = vmatpush3.msra.mxu0 %v4754_v57 }
0x2bad   :  { %3869 = vmatprep.subr.mxu0 %v5135_v0 }
0x2bae   :  { %3870 = vmatpush3.msra.mxu0 %v4758_v19 }
0x2baf   :  { %3871 = vmatprep.subr.mxu0 %v5135_v0 }
0x2bb0   :  { %3872 = vmatpush3.msra.mxu0 %v4762_v27 }
0x2bb1   :  { %3873 = vmatprep.subr.mxu0 %v5135_v0 }
0x2bb2   :  { %3874 = vmatpush3.msra.mxu0 %v4766_v30 }
0x2bb3   :  { %3875 = vmatprep.subr.mxu0 %v5135_v0 }
0x2bb4   :  { %3876 = vmatpush3.msra.mxu0 %v4770_v55 }
0x2bb5   :  { %3877 = vmatprep.subr.mxu0 %v5135_v0 }
0x2bb6   :  { %3878 = vmatpush3.msra.mxu0 %v4774_v10 }
0x2bb7   :  { %3879 = vmatprep.subr.mxu0 %v5135_v0 }
0x2bb8   :  { %3880 = vmatpush3.msra.mxu0 %v4778_v37 }
0x2c69   :  { %v2938_v16 = vpop.f32.mrf.mxu0 }
0x2c6a   :  { %v2939_v47 = vadd.f32 %v4651_v13, %v2938_v16 }
0x2c6b   :  { %v3853_v52 = vpop.f32.mrf.mxu0 }
0x2c6c   :  { %2949 = vrot.lane.b32.xlu1 %v2939_v47, %s4095_s0  ;;  %v3225_v11 = vmul.f32 -1.442695, %v2939_v47 }
0x2c6e   :  { %3968 = vpow2.f32 %v3225_v11 }
0x2c7b   :  { %v3969_v57 = vpop.eup %3968 }
0x2c7c   :  { %v2945_v19 = vadd.f32 1.0, %v3969_v57 }
0x2c7e   :  { %3970 = vrcp.f32 %v2945_v19 }
0x2c8b   :  { %v3971_v27 = vpop.eup %3970 }
0x2c8c   :  { %v2965_v0 = vmul.f32 %v3971_v27, %v4889_v2 }
0x2cde   :  { %v2950_v30 = vpop.permute.xlu1 %2949 }
0x2cdf   :  { %v2952_v55 = vmul.f32 %v3971_v27, %v2950_v30 }
0x2ce1   :  { %2954 = vrot.lane.b32.xlu0 %v2952_v55, %s4097_s7 }
0x2d53   :  { %v2955_v10 = vpop.permute.xlu0 %2954 }
0x2d54   :  { %v2957_v34 = vadd.f32 %v2955_v10, %v2939_v47 }
0x2d56   :  { %3972 = vtanh.f32 %v2957_v34 }
0x2d63   :  { %v3973_v37 = vpop.eup %3972 }
0x2d64   :  { %2961 = vrot.lane.b32.xlu1 %v3973_v37, %s4098_s8 }
0x2d68   :  { %2970 = vrot.lane.b32.xlu1 %v4913_v23, %s4098_s8 }
0x2d6c   :  { %459 = vrot.lane.b32.xlu1 %v4296_v60, %s4095_s0 }
0x2d70   :  { %467 = vrot.lane.b32.xlu1 %v4307_v29, %s4095_s0  ;;  %v2959_v29 = vsub.f32 1.0, %v3971_v27 }
0x2d74   :  { %473 = vrot.lane.b32.xlu1 %v4300_v25, %s4100_s3 }
0x2d78   :  { %849 = vrot.lane.b32.xlu1 %v4394_v61, %s4095_s0 }
0x2d7c   :  { %1228 = vrot.lane.b32.xlu1 %v4485_v28, %s4095_s0 }
0x2d80   :  { %1994 = vrot.lane.b32.xlu1 %v4702_v15, %s4095_s0 }
0x2d84   :  { %2760 = vrot.lane.b32.xlu1 %v4918_v8, %s4095_s0 }
0x2d88   :  { %1232 = vrot.lane.b32.xlu1 %v4489_v46, %s4095_s0 }
0x2d8c   :  { %1998 = vrot.lane.b32.xlu1 %v4706_v45, %s4095_s0 }
0x2d90   :  { %2764 = vrot.lane.b32.xlu1 %v4922_v31, %s4095_s0 }
0x2d94   :  { %1236 = vrot.lane.b32.xlu1 %v4497_v54, %s4095_s0 }
0x2d98   :  { %2002 = vrot.lane.b32.xlu1 %v4714_v44, %s4095_s0 }
0x2d9c   :  { %2768 = vrot.lane.b32.xlu1 %v4930_v14, %s4095_s0 }
0x2da0   :  { %856 = vrot.lane.b32.xlu1 %v4390_v26, %s4100_s3 }
0x2da4   :  { %1622 = vrot.lane.b32.xlu1 %v4580_v33, %s4100_s3 }
0x2da8   :  { %2388 = vrot.lane.b32.xlu1 %v4824_v42, %s4100_s3 }
0x2dd6   :  { %v2962_v13 = vpop.permute.xlu1 %2961 }
0x2dd7   :  { %v2964_v54 = vmul.f32 %v2962_v13, %v2959_v29 }
0x2dd9   :  { %v2966_v23 = vadd.f32 %v2965_v0, %v2964_v54 }
0x2dda   :  { %v2971_v44 = vpop.permute.xlu1 %2970 }
0x2ddb   :  { %2968 = vrot.lane.b32.xlu0 %v2966_v23, %s4098_s8 }
0x2dde   :  { %v460_v41 = vpop.permute.xlu1 %459 }
0x2ddf   :  { %463 = vrot.lane.b32.xlu0 %v4300_v25, %s4095_s0  ;;  %v476_v25 = vsel %vm179_vm2, %v4257_v49, %v460_v41 }
0x2de2   :  { %v468_v2 = vpop.permute.xlu1 %467 }
0x2de3   :  { %470 = vrot.lane.b32.xlu0 %v4296_v60, %s4100_s3 }
0x2de6   :  { %v474_v3 = vpop.permute.xlu1 %473 }
0x2de7   :  { %845 = vrot.lane.b32.xlu0 %v4390_v26, %s4095_s0 }
0x2deb   :  { %853 = vrot.lane.b32.xlu0 %v4402_v7, %s4095_s0 }
0x2e4d   :  { %v5023_v59 = vpop.permute.xlu0 %2968 }
0x2e4e   :  { %3863 = vmatmul.mubr.msk.f32.vlgmr.msra.gmra.mxu1 %vm179_vm2, %v5023_v59 }
0x2e51   :  { %v464_v51 = vpop.permute.xlu0 %463 }
0x2e52   :  { %v478_v60 = vsel %vm477_vm11, %v476_v25, %v464_v51 }
0x2e53   :  { %v479_v7 = vsel %vm181_vm3, %v478_v60, %v468_v2 }
0x2e55   :  { %v471_v26 = vpop.permute.xlu0 %470 }
0x2e56   :  { %v481_v6 = vsel %vm480_vm12, %v479_v7, %v471_v26 }
0x2e57   :  { %v483_v40 = vsel %vm482_vm13, %v481_v6, %v474_v3 }
0x2e58   :  { %v485_v39 = vsel %vm484_vm14, %v483_v40, 0.0 }
0x2e59   :  { %486 = vst [vmem:[#allocation8] sm:$0xff] %v485_v39 }
0x2f0e   :  { %v3041_v4 = vpop.f32.mrf.mxu1 }
0x2f0f   :  { %v3042_v49 = vadd.f32 %v3041_v4, %v2971_v44 }
0x2f10   :  { %v3864_v5 = vpop.f32.mrf.mxu1 }
0x2f11   :  { %v3045_v35 = vmax.f32 %v3042_v49, 0.0 }
0x2f13   :  { %3882 = vmatmul.mubr.msk.f32.vlgmr.msra.gmra.mxu0 %vm181_vm3, %v3045_v35 }
0x2fd3   :  { %v3115_v9 = vpop.f32.mrf.mxu0 }
0x2fd4   :  { %v3116_v14 = vadd.f32 %v4821_v58, %v3115_v9 }
0x2fd5   :  { %v3883_v1 = vpop.f32.mrf.mxu0 }
0x2fd6   :  { %v3120_v38 = vand.u32 2147483647, %v3116_v14  ;;  %3154 = vrot.lane.b32.xlu1 %v3116_v14, %s4100_s3  ;;  %v3119_v57 = vmax.f32 %v3116_v14, 0.0 }
0x2fd8   :  { %v3121_v20 = vsub.f32 0.0, %v3120_v38 }
0x2fda   :  { %v3122_v53 = vmul.f32 1.442695, %v3121_v20  ;;  %1242 = vrot.lane.b32.xlu1 %v4489_v46, %s4100_s3 }
0x2fdc   :  { %3974 = vpow2.f32 %v3122_v53 }
0x2fde   :  { %2008 = vrot.lane.b32.xlu1 %v4706_v45, %s4100_s3 }
0x2fe2   :  { %2774 = vrot.lane.b32.xlu1 %v4922_v31, %s4100_s3 }
0x2fe9   :  { %v3975_v22 = vpop.eup %3974 }
0x2fea   :  { %v3124_v21 = vadd.f32 1.0, %v3975_v22  ;;  %v3127_v58 = vmul.f32 -0.5, %v3975_v22  ;;  %v3130_v16 = vand.u32 2147483647, %v3975_v22 }
0x2fec   :  { %3976 = vlog2.f32 %v3124_v21  ;;  %v3128_v24 = vadd.f32 1.0, %v3127_v58  ;;  %vm3131_vm15 = vcmp.lt.f32.partialorder %v3130_v16, 0.0004427343 }
0x2fee   :  { %v3129_v11 = vmul.f32 %v3975_v22, %v3128_v24 }
0x2ff9   :  { %v3977_v47 = vpop.eup %3976 }
0x2ffa   :  { %v3126_v52 = vmul.f32 0.6931472, %v3977_v47 }
0x2ffc   :  { %v3132_v19 = vsel %vm3131_vm15, %v3129_v11, %v3126_v52 }
0x2ffd   :  { %v3133_v46 = vadd.f32 %v3132_v19, %v3119_v57 }
0x2fff   :  { %v3134_v27 = vadd.f32 0.1, %v3133_v46 }
0x3001   :  { %v3135_v30 = vmul.f32 %v3134_v27, %v4927_v62 }
0x3003   :  { %3137 = vrot.lane.b32.xlu0 %v3135_v30, %s4099_s11 }
0x3007   :  { %1611 = vrot.lane.b32.xlu0 %v4580_v33, %s4095_s0  ;;  %v850_v33 = vpop.permute.xlu1 %849 }
0x300b   :  { %2377 = vrot.lane.b32.xlu0 %v4824_v42, %s4095_s0 }
0x300f   :  { %3143 = vrot.lane.b32.xlu0 %v3116_v14, %s4095_s0 }
0x3013   :  { %1615 = vrot.lane.b32.xlu0 %v4584_v63, %s4095_s0 }
0x3017   :  { %2381 = vrot.lane.b32.xlu0 %v4828_v50, %s4095_s0 }
0x301b   :  { %3147 = vrot.lane.b32.xlu0 %v3134_v27, %s4095_s0 }
0x301f   :  { %1619 = vrot.lane.b32.xlu0 %v4592_v48, %s4095_s0  ;;  %v1229_v48 = vpop.permute.xlu1 %1228 }
0x3020   :  { %v1245_v7 = vsel %vm179_vm2, %v4459_v56, %v1229_v48 }
0x3023   :  { %2385 = vrot.lane.b32.xlu0 %v4836_v36, %s4095_s0  ;;  %v1995_v45 = vpop.permute.xlu1 %1994 }
0x3027   :  { %1239 = vrot.lane.b32.xlu0 %v4485_v28, %s4100_s3  ;;  %v2761_v42 = vpop.permute.xlu1 %2760 }
0x3028   :  { %v2777_v38 = vsel %vm179_vm2, %v4893_v43, %v2761_v42 }
0x302b   :  { %2005 = vrot.lane.b32.xlu0 %v4702_v15, %s4100_s3  ;;  %v1233_v28 = vpop.permute.xlu1 %1232  ;;  %v846_v15 = vpop.permute.xlu0 %845 }
0x302c   :  { %v1246_v3 = vsel %vm477_vm11, %v1245_v7, %v1233_v28 }
0x302f   :  { %2771 = vrot.lane.b32.xlu0 %v4918_v8, %s4100_s3  ;;  %v1999_v36 = vpop.permute.xlu1 %1998  ;;  %v854_v55 = vpop.permute.xlu0 %853 }
0x3033   :  { %859 = vrot.lane.b32.xlu0 %v4394_v61, %s4100_s3  ;;  %v2765_v31 = vpop.permute.xlu1 %2764 }
0x3034   :  { %v2778_v20 = vsel %vm477_vm11, %v2777_v38, %v2765_v31 }
0x3037   :  { %1625 = vrot.lane.b32.xlu0 %v4584_v63, %s4100_s3  ;;  %v1237_v62 = vpop.permute.xlu1 %1236 }
0x3038   :  { %v1247_v6 = vsel %vm181_vm3, %v1246_v3, %v1237_v62 }
0x303b   :  { %2391 = vrot.lane.b32.xlu0 %v4828_v50, %s4100_s3  ;;  %v2003_v8 = vpop.permute.xlu1 %2002 }
0x303f   :  { %v2769_v63 = vpop.permute.xlu1 %2768 }
0x3040   :  { %v2779_v22 = vsel %vm181_vm3, %v2778_v20, %v2769_v63 }
0x3043   :  { %v857_v37 = vpop.permute.xlu1 %856 }
0x3047   :  { %v1623_v0 = vpop.permute.xlu1 %1622 }
0x304b   :  { %v2389_v23 = vpop.permute.xlu1 %2388 }
0x304f   :  { %v3155_v25 = vpop.permute.xlu1 %3154 }
0x3053   :  { %v1243_v26 = vpop.permute.xlu1 %1242 }
0x3057   :  { %v2009_v5 = vpop.permute.xlu1 %2008 }
0x3075   :  { %v3138_v10 = vpop.permute.xlu0 %3137 }
0x3076   :  { %v3140_v34 = vadd.f32 %v3138_v10, %v3116_v14  ;;  %v862_v14 = vsel %vm179_vm2, %v4352_v18, %v846_v15  ;;  %v2775_v18 = vpop.permute.xlu1 %2774 }
0x3077   :  { %v863_v21 = vsel %vm477_vm11, %v862_v14, %v850_v33 }
0x3078   :  { %3151 = vrot.lane.b32.xlu0 %v3140_v34, %s4095_s0  ;;  %v864_v24 = vsel %vm181_vm3, %v863_v21, %v854_v55 }
0x3079   :  { %v1612_v61 = vpop.permute.xlu0 %1611  ;;  %v865_v57 = vsel %vm480_vm12, %v864_v24, %v857_v37 }
0x307a   :  { %v1628_v43 = vsel %vm179_vm2, %v4554_v32, %v1612_v61 }
0x307c   :  { %3157 = vrot.lane.b32.xlu0 %v3134_v27, %s4100_s3 }
0x307d   :  { %v2378_v50 = vpop.permute.xlu0 %2377 }
0x307e   :  { %v2394_v33 = vsel %vm179_vm2, %v4793_v12, %v2378_v50 }
0x3081   :  { %v3144_v29 = vpop.permute.xlu0 %3143 }
0x3082   :  { %v3160_v44 = vsel %vm179_vm2, %v5023_v59, %v3144_v29  ;;  %v2011_v59 = vsel %vm179_vm2, %v4664_v17, %v1995_v45 }
0x3083   :  { %v2012_v49 = vsel %vm477_vm11, %v2011_v59, %v1999_v36 }
0x3084   :  { %v2013_v9 = vsel %vm181_vm3, %v2012_v49, %v2003_v8 }
0x3085   :  { %v1616_v13 = vpop.permute.xlu0 %1615 }
0x3086   :  { %v1629_v11 = vsel %vm477_vm11, %v1628_v43, %v1616_v13 }
0x3089   :  { %v2382_v54 = vpop.permute.xlu0 %2381 }
0x308a   :  { %v2395_v32 = vsel %vm477_vm11, %v2394_v33, %v2382_v54 }
0x308d   :  { %v3148_v41 = vpop.permute.xlu0 %3147 }
0x308e   :  { %v3161_v2 = vsel %vm477_vm11, %v3160_v44, %v3148_v41 }
0x3091   :  { %v1620_v51 = vpop.permute.xlu0 %1619 }
0x3092   :  { %v1630_v46 = vsel %vm181_vm3, %v1629_v11, %v1620_v51 }
0x3093   :  { %v1631_v48 = vsel %vm480_vm12, %v1630_v46, %v1623_v0 }
0x3095   :  { %v2386_v60 = vpop.permute.xlu0 %2385 }
0x3096   :  { %v2396_v42 = vsel %vm181_vm3, %v2395_v32, %v2386_v60 }
0x3097   :  { %v2397_v31 = vsel %vm480_vm12, %v2396_v42, %v2389_v23 }
0x3099   :  { %v1240_v40 = vpop.permute.xlu0 %1239 }
0x309a   :  { %v1248_v39 = vsel %vm480_vm12, %v1247_v6, %v1240_v40 }
0x309b   :  { %v1249_v4 = vsel %vm482_vm13, %v1248_v39, %v1243_v26 }
0x309c   :  { %v1250_v35 = vsel %vm484_vm14, %v1249_v4, 0.0 }
0x309d   :  { %1252 = vst [vmem:[#allocation8 + $0x10] sm:$0xff] %v1250_v35  ;;  %v2006_v56 = vpop.permute.xlu0 %2005 }
0x309e   :  { %v2014_v1 = vsel %vm480_vm12, %v2013_v9, %v2006_v56 }
0x309f   :  { %v2015_v17 = vsel %vm482_vm13, %v2014_v1, %v2009_v5 }
0x30a0   :  { %v2016_v53 = vsel %vm484_vm14, %v2015_v17, 0.0 }
0x30a1   :  { %2018 = vst [vmem:[#allocation8 + $0x20] sm:$0xff] %v2016_v53  ;;  %v2772_v58 = vpop.permute.xlu0 %2771 }
0x30a2   :  { %v2780_v16 = vsel %vm480_vm12, %v2779_v22, %v2772_v58 }
0x30a3   :  { %v2781_v47 = vsel %vm482_vm13, %v2780_v16, %v2775_v18 }
0x30a4   :  { %v2782_v52 = vsel %vm484_vm14, %v2781_v47, 0.0 }
0x30a5   :  { %2784 = vst [vmem:[#allocation8 + $0x30] sm:$0xff] %v2782_v52  ;;  %v860_v19 = vpop.permute.xlu0 %859 }
0x30a6   :  { %v866_v27 = vsel %vm482_vm13, %v865_v57, %v860_v19 }
0x30a7   :  { %v867_v30 = vsel %vm484_vm14, %v866_v27, 0.0 }
0x30a8   :  { %869 = vst [vmem:[#allocation8 + $0x8] sm:$0xff] %v867_v30 }
0x30a9   :  { %v1626_v45 = vpop.permute.xlu0 %1625 }
0x30aa   :  { %v1632_v28 = vsel %vm482_vm13, %v1631_v48, %v1626_v45 }
0x30ab   :  { %v1633_v36 = vsel %vm484_vm14, %v1632_v28, 0.0 }
0x30ac   :  { %1635 = vst [vmem:[#allocation8 + $0x18] sm:$0xff] %v1633_v36 }
0x30ad   :  { %v2392_v15 = vpop.permute.xlu0 %2391 }
0x30ae   :  { %v2398_v62 = vsel %vm482_vm13, %v2397_v31, %v2392_v15 }
0x30af   :  { %v2399_v12 = vsel %vm484_vm14, %v2398_v62, 0.0 }
0x30b0   :  { %2401 = vst [vmem:[#allocation8 + $0x28] sm:$0xff] %v2399_v12 }
0x30ea   :  { %v3152_v55 = vpop.permute.xlu0 %3151 }
0x30eb   :  { %v3162_v8 = vsel %vm181_vm3, %v3161_v2, %v3152_v55 }
0x30ec   :  { %v3163_v10 = vsel %vm480_vm12, %v3162_v8, %v3155_v25 }
0x30ee   :  { %v3158_v34 = vpop.permute.xlu0 %3157 }
0x30ef   :  { %v3164_v61 = vsel %vm482_vm13, %v3163_v10, %v3158_v34 }
0x30f0   :  { %v3165_v63 = vsel %vm484_vm14, %v3164_v61, 0.0 }
0x30f1   :  { %3167 = vst [vmem:[#allocation8 + $0x38] sm:$0xff] %v3165_v63 }
0x30f2   :  { %4073 = shalt.err (!%p4070_p5)
}
0x30f3   :  { %3179 = dma.vmem_to_hbm [thread:$0]  %s3174_s17, 1024, %s5132_s4, [#allocation4], %s4090_s23, %s4090_s23, %s4091_s24  }
0x30f4   :  { %4086 = dma.done.wait [#allocation4], 1024  }
0x30f5   :  { %4087 = vsyncadd [#allocation4], 4294966272 }
0x30f6   :  { %3183 = vsyncpa [#allocation3], 1 }
0x30f7   :  { %3184 = vsyncpa [#allocation6], 1 }
0x30f8   :  { %3185 = vsyncpa [#allocation4], 1 }

</bundles_post_ra>
